<compile_context>
chip_gen: v7x
topology: tpu7x:2x2x1
jax: 0.10.0
libtpu: 0.0.40
codegen_flags: <defaults>
</compile_context>

<pallas_src>
from functools import partial

import jax
import jax.numpy as jnp
from jax.experimental import pallas as pl
from jax.experimental.pallas import tpu as pltpu


def feature_encoder_kernel(x_ref, pos_ref, ln_w_ref, ln_b_ref,
                           dw_w_ref, pw_w_ref, pw_b_ref, out_ref,
                           *, dim, seq_len, mxu_dtype):
    # x_ref:   (Bt, Lp, Dp) batch-tile of activations (f32, zero-padded)
    # pos_ref: (Lp, Dp)     positional embeddings (first L rows, zero-padded)
    # ln_w/ln_b: (NL, Dp)   LayerNorm scale / bias per layer (pad lanes = 0)
    # dw_w:    (NL, K, Dp)  depthwise conv taps, tap-major, channels last
    # pw_w:    (NL, Dp, Dp) pointwise weights, pre-transposed (in, out)
    # pw_b:    (NL, Dp)     pointwise bias
    # dim:     true feature dim D (<= Dp); LN stats divide by this
    # seq_len: true sequence length L (<= Lp); rows >= L are masked after LN
    Bt, Lp, Dp = x_ref.shape
    num_layers, K, _ = dw_w_ref.shape
    pad = K // 2
    eps = 1e-6
    M = Bt * Lp
    inv_d = 1.0 / dim

    # Positional embedding add on the 3-D view, then fuse (Bt, Lp) -> M rows.
    # Lp is a multiple of 8 and Dp of 128, so this reshape is a layout no-op.
    feat = (x_ref[...] + pos_ref[...]).reshape(M, Dp)            # f32 stream

    # Row position within each (padded) sequence, shape (M, 1).  Drives the
    # FIR edge masks (zero padding + no leakage across the fused batch
    # boundary) and the padded-row mask; (M, 1) broadcasts along lanes.
    row = jax.lax.broadcasted_iota(jnp.int32, (Bt, Lp, 1), 1).reshape(M, 1)
    tap_masks = []
    for k in range(K):
        s = pad - k                        # signed shift of tap k
        if s > 0:
            tap_masks.append(row >= s)
        elif s < 0:
            tap_masks.append(row < Lp + s)
        else:
            tap_masks.append(None)         # centre tap needs no mask
    valid_row = (row < seq_len) if seq_len != Lp else None

    for layer in range(num_layers):        # NL=4: static unroll is fine here
        residual = feat

        # ---- LayerNorm over the feature axis: single-pass f32 stats ----
        ln_w = ln_w_ref[layer][None, :]
        ln_b = ln_b_ref[layer][None, :]
        mu = jnp.sum(feat, axis=-1, keepdims=True) * inv_d
        ex2 = jnp.sum(feat * feat, axis=-1, keepdims=True) * inv_d
        var = jnp.maximum(ex2 - mu * mu, 0.0)
        normed = (feat - mu) * jax.lax.rsqrt(var + eps) * ln_w + ln_b
        if valid_row is not None:
            # Rows past the true sequence length must look like Conv1d zero
            # padding to the FIR taps of the real rows.
            normed = jnp.where(valid_row, normed, 0.0)

        # ---- Depthwise conv along L: K-tap FIR via XLU rolls + edge masks ---
        # rolled[i] == normed[i + k - pad]; (M,1) masks zero out-of-range rows.
        dw_out = normed * dw_w_ref[layer, pad][None, :]          # centre tap
        for k in range(K):
            s = pad - k
            if s == 0:
                continue
            tap = pltpu.roll(normed, s % M, axis=0)
            tap = jnp.where(tap_masks[k], tap, 0.0)
            dw_out = dw_out + tap * dw_w_ref[layer, k][None, :]

        # ---- Pointwise (1x1) conv == MXU matmul (bf16 operands, f32 acc,
        #      or full f32 on the precise/debug path) ----
        pw_out = jnp.dot(dw_out.astype(mxu_dtype), pw_w_ref[layer],
                         preferred_element_type=jnp.float32)
        pw_out = pw_out + pw_b_ref[layer][None, :]

        # ReLU, (dropout p=0.0 is identity), residual add -- f32 on the VPU.
        feat = jnp.maximum(pw_out, 0.0) + residual

    out_ref[...] = feat.reshape(Bt, Lp, Dp)


def _round_up(x, m):
    return -(-x // m) * m


def _device_config():
    """Per-generation VMEM budget.  v7x has 64 MiB VMEM per TensorCore,
    v5e/v6e have 128 MiB.  Unknown kinds fall back to the conservative 64."""
    kind = ""
    try:
        kind = jax.devices()[0].device_kind.lower()
    except Exception:  # pragma: no cover - defensive only
        pass
    is_v7 = ("v7" in kind) or ("7x" in kind)
    if is_v7:
        vmem_phys = 64 << 20
    elif ("v5" in kind) or ("v6" in kind):
        vmem_phys = 128 << 20
    else:
        vmem_phys = 64 << 20
    vmem_limit = (vmem_phys * 3) // 4          # leave headroom vs. physical
    return vmem_limit


def _pick_batch_tile(B, Lp, Dp, num_layers, ksize, tile_budget_bytes,
                     target_rows=1024, min_rows=256):
    """Rows per grid step = Bt*Lp.  Target >=1024 fused rows (HBM-bound
    regime: ~85% of roofline at 512+ rows vs ~29% at 128; also amortises the
    ~0.35us grid-step overhead and the per-layer MXU weight push), bounded by
    an explicit VMEM budget, while preferring >=2 grid steps so the parallel
    axis can split across v7x's 2 TensorCores and pipelining stays alive."""
    # Double-buffered parameter footprint (pos + per-layer LN/dw/pw params;
    # pw weights are bf16 on the fast path).
    param_bytes = 2 * (Lp * Dp * 4
                       + num_layers * (2 * Dp * 4 + ksize * Dp * 4
                                       + Dp * Dp * 2 + Dp * 4))
    avail = max(tile_budget_bytes - param_bytes, 1 << 20)
    # Per fused row: f32 in/out double-buffers + ~6 live (., Dp) f32 temps.
    bytes_per_row = 40 * Dp
    max_rows = max(avail // bytes_per_row, Lp)
    rows = min(target_rows, max_rows)
    bt = max(1, min(B, rows // Lp))
    while bt > 1 and B % bt:                   # keep B divisible by the tile
        bt -= 1
    if B // bt < 2 and B > 1 and (B // 2) * Lp >= min_rows:
        bt = B // 2
        while bt > 1 and B % bt:
            bt -= 1
    return max(bt, 1)


@partial(jax.jit, static_argnames=("precise",))
def feature_encoder(x, pos_table, ln_w, ln_b, dw_w, pw_w_t, pw_b,
                    precise=False):
    B, L, D = x.shape
    NL, K, _ = dw_w.shape
    assert L <= pos_table.shape[0], "sequence length exceeds max_pos_len"

    vmem_limit = _device_config()
    tile_budget = (vmem_limit * 3) // 4

    # Pad to a lane/sublane-dense layout: L -> multiple of 8, D -> multiple of
    # 128.  Zero-padded lanes stay exactly zero through every layer because
    # the parameters are zero-padded and LN stats divide by the true D.
    Lp = _round_up(L, 8)
    Dp = _round_up(D, 128)
    xp = jnp.pad(x, ((0, 0), (0, Lp - L), (0, Dp - D)))
    pos = jnp.pad(pos_table[:L], ((0, Lp - L), (0, Dp - D)))
    ln_w_p = jnp.pad(ln_w, ((0, 0), (0, Dp - D)))
    ln_b_p = jnp.pad(ln_b, ((0, 0), (0, Dp - D)))
    dw_w_p = jnp.pad(dw_w, ((0, 0), (0, 0), (0, Dp - D)))
    pw_w_p = jnp.pad(pw_w_t, ((0, 0), (0, Dp - D), (0, Dp - D)))
    pw_b_p = jnp.pad(pw_b, ((0, 0), (0, Dp - D)))

    mxu_dtype = jnp.float32 if precise else jnp.bfloat16
    pw_w_p = pw_w_p.astype(mxu_dtype)          # bf16 MXU operand, half the DMA

    Bt = _pick_batch_tile(B, Lp, Dp, NL, K, tile_budget)

    kernel = partial(feature_encoder_kernel, dim=D, seq_len=L,
                     mxu_dtype=mxu_dtype)

    out = pl.pallas_call(
        kernel,
        out_shape=jax.ShapeDtypeStruct((B, Lp, Dp), jnp.float32),
        grid_spec=pl.GridSpec(
            grid=(B // Bt,),
            in_specs=[
                pl.BlockSpec((Bt, Lp, Dp), lambda b: (b, 0, 0)),
                pl.BlockSpec((Lp, Dp), lambda b: (0, 0)),
                pl.BlockSpec((NL, Dp), lambda b: (0, 0)),
                pl.BlockSpec((NL, Dp), lambda b: (0, 0)),
                pl.BlockSpec((NL, K, Dp), lambda b: (0, 0, 0)),
                pl.BlockSpec((NL, Dp, Dp), lambda b: (0, 0, 0)),
                pl.BlockSpec((NL, Dp), lambda b: (0, 0)),
            ],
            out_specs=pl.BlockSpec((Bt, Lp, Dp), lambda b: (b, 0, 0)),
        ),
        compiler_params=pltpu.CompilerParams(
            dimension_semantics=("parallel",),
            vmem_limit_bytes=int(vmem_limit)),
    )(xp, pos, ln_w_p, ln_b_p, dw_w_p, pw_w_p, pw_b_p)

    return out[:, :L, :D]


def reference(x, pos_table, ln_w, ln_b, dw_w, pw_w_t, pw_b):
    """Pure-JAX f32 reference mirroring the PyTorch forward."""
    B, L, D = x.shape
    NL, K, _ = dw_w.shape
    pad = K // 2
    feat = x + pos_table[:L][None]
    for l in range(NL):
        res = feat
        mu = feat.mean(-1, keepdims=True)
        var = ((feat - mu) ** 2).mean(-1, keepdims=True)
        normed = (feat - mu) / jnp.sqrt(var + 1e-6)
        normed = normed * ln_w[l] + ln_b[l]
        padded = jnp.pad(normed, ((0, 0), (pad, pad), (0, 0)))
        dw = jnp.zeros_like(feat)
        for k in range(K):
            dw = dw + padded[:, k:k + L, :] * dw_w[l, k]
        pw = jnp.einsum('bld,de->ble', dw, pw_w_t[l]) + pw_b[l]
        feat = jnp.maximum(pw, 0.0) + res
    return feat


if __name__ == "__main__":
    # Small shapes consistent with the module: x is (batch, seq, dim).
    # L=13 / D=32 deliberately exercise the sublane/lane padding paths.
    B, L, D = 4, 13, 32
    max_pos_len = 16
    K = 7
    NL = 4

    key = jax.random.PRNGKey(0)
    ks = jax.random.split(key, 8)

    x = jax.random.normal(ks[0], (B, L, D), jnp.float32)

    # Deterministic synthetic parameters (shapes from __init__).
    pos_table = 0.02 * jax.random.normal(ks[1], (max_pos_len, D), jnp.float32)
    ln_w = jnp.ones((NL, D), jnp.float32) + \
        0.01 * jax.random.normal(ks[2], (NL, D), jnp.float32)
    ln_b = 0.01 * jax.random.normal(ks[3], (NL, D), jnp.float32)
    # PyTorch depthwise weight is (dim, 1, K); stored here tap-major: (NL, K, D)
    dw_w = (1.0 / K) * jax.random.normal(ks[4], (NL, K, D), jnp.float32)
    # PyTorch pointwise weight is (out, in, 1); stored pre-transposed (in, out)
    pw_w_t = (1.0 / jnp.sqrt(D)) * jax.random.normal(
        ks[5], (NL, D, D), jnp.float32)
    pw_b = 0.01 * jax.random.normal(ks[6], (NL, D), jnp.float32)

    ref = reference(x, pos_table, ln_w, ln_b, dw_w, pw_w_t, pw_b)

    # Fast path: bf16 MXU operands, f32 everywhere else.
    out = feature_encoder(x, pos_table, ln_w, ln_b, dw_w, pw_w_t, pw_b)
    out = jax.block_until_ready(out)
    assert out.shape == (B, L, D)
    err = float(jnp.max(jnp.abs(out - ref)))
    assert jnp.allclose(out, ref, rtol=2e-2, atol=2e-2), \
        f"bf16-MXU path max err {err}"

    # Precise/debug path: full f32 matmul, tight tolerance (guards against
    # structural regressions that the bf16 tolerance would hide).
    out_p = feature_encoder(x, pos_table, ln_w, ln_b, dw_w, pw_w_t, pw_b,
                            precise=True)
    out_p = jax.block_until_ready(out_p)
    err_p = float(jnp.max(jnp.abs(out_p - ref)))
    assert jnp.allclose(out_p, ref, rtol=1e-3, atol=1e-3), \
        f"f32 debug path max err {err_p}"

    print("KERNEL_OK")
</pallas_src>

<mosaic_0001>
module attributes {stable_mosaic.version = 11 : i64} {
  func.func @feature_encoder_kernel(%arg0: i32, %arg1: memref<4x16x128xf32, #tpu.memory_space<vmem>>, %arg2: memref<16x128xf32, #tpu.memory_space<vmem>>, %arg3: memref<4x128xf32, #tpu.memory_space<vmem>>, %arg4: memref<4x128xf32, #tpu.memory_space<vmem>>, %arg5: memref<4x7x128xf32, #tpu.memory_space<vmem>>, %arg6: memref<4x128x128xbf16, #tpu.memory_space<vmem>>, %arg7: memref<4x128xf32, #tpu.memory_space<vmem>>, %arg8: memref<4x16x128xf32, #tpu.memory_space<vmem>>) attributes {dimension_semantics = [#tpu.dimension_semantics<parallel>], iteration_bounds = array<i64: 1>, scalar_prefetch = 0 : i64, scratch_operands = 0 : i64, tpu.core_type = #tpu.core_type<tc>, window_params = [{transform_indices = @transform_0, window_bounds = array<i64: 4, 16, 128>}, {pipeline_mode = #tpu.pipeline_mode<synchronous>, transform_indices = @transform_1, window_bounds = array<i64: 16, 128>}, {pipeline_mode = #tpu.pipeline_mode<synchronous>, transform_indices = @transform_2, window_bounds = array<i64: 4, 128>}, {pipeline_mode = #tpu.pipeline_mode<synchronous>, transform_indices = @transform_3, window_bounds = array<i64: 4, 128>}, {pipeline_mode = #tpu.pipeline_mode<synchronous>, transform_indices = @transform_4, window_bounds = array<i64: 4, 7, 128>}, {pipeline_mode = #tpu.pipeline_mode<synchronous>, transform_indices = @transform_5, window_bounds = array<i64: 4, 128, 128>}, {pipeline_mode = #tpu.pipeline_mode<synchronous>, transform_indices = @transform_6, window_bounds = array<i64: 4, 128>}, {transform_indices = @transform_7, window_bounds = array<i64: 4, 16, 128>}]} {
    %c0 = arith.constant 0 : index
    %c0_0 = arith.constant 0 : index
    %c0_1 = arith.constant 0 : index
    %0 = vector.load %arg1[%c0, %c0_0, %c0_1] : memref<4x16x128xf32, #tpu.memory_space<vmem>>, vector<4x16x128xf32>
    %c0_2 = arith.constant 0 : index
    %c0_3 = arith.constant 0 : index
    %1 = vector.load %arg2[%c0_2, %c0_3] : memref<16x128xf32, #tpu.memory_space<vmem>>, vector<16x128xf32>
    %2 = vector.shape_cast %1 : vector<16x128xf32> to vector<1x16x128xf32>
    %3 = vector.broadcast %2 : vector<1x16x128xf32> to vector<4x16x128xf32>
    %4 = arith.addf %0, %3 : vector<4x16x128xf32>
    %5 = vector.shape_cast %4 : vector<4x16x128xf32> to vector<64x128xf32>
    %6 = tpu.iota {dimensions = array<i32: 1>} : vector<4x16x1xi32>
    %7 = vector.shape_cast %6 : vector<4x16x1xi32> to vector<64x1xi32>
    %c3_i32 = arith.constant 3 : i32
    %8 = vector.broadcast %c3_i32 : i32 to vector<64x1xi32>
    %9 = arith.cmpi sge, %7, %8 : vector<64x1xi32>
    %c2_i32 = arith.constant 2 : i32
    %10 = vector.broadcast %c2_i32 : i32 to vector<64x1xi32>
    %11 = arith.cmpi sge, %7, %10 : vector<64x1xi32>
    %c1_i32 = arith.constant 1 : i32
    %12 = vector.broadcast %c1_i32 : i32 to vector<64x1xi32>
    %13 = arith.cmpi sge, %7, %12 : vector<64x1xi32>
    %c15_i32 = arith.constant 15 : i32
    %14 = vector.broadcast %c15_i32 : i32 to vector<64x1xi32>
    %15 = arith.cmpi slt, %7, %14 : vector<64x1xi32>
    %c14_i32 = arith.constant 14 : i32
    %16 = vector.broadcast %c14_i32 : i32 to vector<64x1xi32>
    %17 = arith.cmpi slt, %7, %16 : vector<64x1xi32>
    %c13_i32 = arith.constant 13 : i32
    %18 = vector.broadcast %c13_i32 : i32 to vector<64x1xi32>
    %19 = arith.cmpi slt, %7, %18 : vector<64x1xi32>
    %c13_i32_4 = arith.constant 13 : i32
    %20 = vector.broadcast %c13_i32_4 : i32 to vector<64x1xi32>
    %21 = arith.cmpi slt, %7, %20 : vector<64x1xi32>
    %c0_5 = arith.constant 0 : index
    %c0_6 = arith.constant 0 : index
    %22 = vector.load %arg3[%c0_5, %c0_6] : memref<4x128xf32, #tpu.memory_space<vmem>>, vector<1x128xf32>
    %23 = vector.shape_cast %22 : vector<1x128xf32> to vector<128xf32>
    %24 = vector.shape_cast %23 : vector<128xf32> to vector<1x128xf32>
    %c0_7 = arith.constant 0 : index
    %c0_8 = arith.constant 0 : index
    %25 = vector.load %arg4[%c0_7, %c0_8] : memref<4x128xf32, #tpu.memory_space<vmem>>, vector<1x128xf32>
    %26 = vector.shape_cast %25 : vector<1x128xf32> to vector<128xf32>
    %27 = vector.shape_cast %26 : vector<128xf32> to vector<1x128xf32>
    %cst = arith.constant dense<0.000000e+00> : vector<64xf32>
    %28 = vector.multi_reduction <add>, %5, %cst [1] : vector<64x128xf32> to vector<64xf32>
    %29 = vector.shape_cast %28 : vector<64xf32> to vector<64x1xf32>
    %cst_9 = arith.constant 3.125000e-02 : f32
    %30 = vector.broadcast %cst_9 : f32 to vector<64x1xf32>
    %31 = arith.mulf %29, %30 : vector<64x1xf32>
    %32 = arith.mulf %5, %5 : vector<64x128xf32>
    %cst_10 = arith.constant dense<0.000000e+00> : vector<64xf32>
    %33 = vector.multi_reduction <add>, %32, %cst_10 [1] : vector<64x128xf32> to vector<64xf32>
    %34 = vector.shape_cast %33 : vector<64xf32> to vector<64x1xf32>
    %cst_11 = arith.constant 3.125000e-02 : f32
    %35 = vector.broadcast %cst_11 : f32 to vector<64x1xf32>
    %36 = arith.mulf %34, %35 : vector<64x1xf32>
    %37 = arith.mulf %31, %31 : vector<64x1xf32>
    %38 = arith.subf %36, %37 : vector<64x1xf32>
    %cst_12 = arith.constant 0.000000e+00 : f32
    %39 = vector.broadcast %cst_12 : f32 to vector<64x1xf32>
    %40 = arith.maximumf %38, %39 : vector<64x1xf32>
    %41 = vector.broadcast %31 : vector<64x1xf32> to vector<64x128xf32>
    %42 = arith.subf %5, %41 : vector<64x128xf32>
    %cst_13 = arith.constant 9.99999997E-7 : f32
    %43 = vector.broadcast %cst_13 : f32 to vector<64x1xf32>
    %44 = arith.addf %40, %43 : vector<64x1xf32>
    %45 = math.rsqrt %44 : vector<64x1xf32>
    %46 = vector.broadcast %45 : vector<64x1xf32> to vector<64x128xf32>
    %47 = arith.mulf %42, %46 : vector<64x128xf32>
    %48 = vector.broadcast %24 : vector<1x128xf32> to vector<64x128xf32>
    %49 = arith.mulf %47, %48 : vector<64x128xf32>
    %50 = vector.broadcast %27 : vector<1x128xf32> to vector<64x128xf32>
    %51 = arith.addf %49, %50 : vector<64x128xf32>
    %cst_14 = arith.constant 0.000000e+00 : f32
    %52 = vector.shape_cast %21 : vector<64x1xi1> to vector<64x1xi1>
    %53 = vector.broadcast %52 : vector<64x1xi1> to vector<64x128xi1>
    %54 = vector.broadcast %cst_14 : f32 to vector<64x128xf32>
    %55 = arith.select %53, %51, %54 : vector<64x128xi1>, vector<64x128xf32>
    %c0_15 = arith.constant 0 : index
    %c3 = arith.constant 3 : index
    %c0_16 = arith.constant 0 : index
    %56 = vector.load %arg5[%c0_15, %c3, %c0_16] : memref<4x7x128xf32, #tpu.memory_space<vmem>>, vector<1x1x128xf32>
    %57 = vector.shape_cast %56 : vector<1x1x128xf32> to vector<128xf32>
    %58 = vector.shape_cast %57 : vector<128xf32> to vector<1x128xf32>
    %59 = vector.broadcast %58 : vector<1x128xf32> to vector<64x128xf32>
    %60 = arith.mulf %55, %59 : vector<64x128xf32>
    %c3_i32_17 = arith.constant 3 : i32
    %61 = tpu.dynamic_rotate %55 by %c3_i32_17 dim 0 : vector<64x128xf32>, i32 -> vector<64x128xf32>
    %cst_18 = arith.constant 0.000000e+00 : f32
    %62 = vector.shape_cast %9 : vector<64x1xi1> to vector<64x1xi1>
    %63 = vector.broadcast %62 : vector<64x1xi1> to vector<64x128xi1>
    %64 = vector.broadcast %cst_18 : f32 to vector<64x128xf32>
    %65 = arith.select %63, %61, %64 : vector<64x128xi1>, vector<64x128xf32>
    %c0_19 = arith.constant 0 : index
    %c0_20 = arith.constant 0 : index
    %c0_21 = arith.constant 0 : index
    %66 = vector.load %arg5[%c0_19, %c0_20, %c0_21] : memref<4x7x128xf32, #tpu.memory_space<vmem>>, vector<1x1x128xf32>
    %67 = vector.shape_cast %66 : vector<1x1x128xf32> to vector<128xf32>
    %68 = vector.shape_cast %67 : vector<128xf32> to vector<1x128xf32>
    %69 = vector.broadcast %68 : vector<1x128xf32> to vector<64x128xf32>
    %70 = arith.mulf %65, %69 : vector<64x128xf32>
    %71 = arith.addf %60, %70 : vector<64x128xf32>
    %c2_i32_22 = arith.constant 2 : i32
    %72 = tpu.dynamic_rotate %55 by %c2_i32_22 dim 0 : vector<64x128xf32>, i32 -> vector<64x128xf32>
    %cst_23 = arith.constant 0.000000e+00 : f32
    %73 = vector.shape_cast %11 : vector<64x1xi1> to vector<64x1xi1>
    %74 = vector.broadcast %73 : vector<64x1xi1> to vector<64x128xi1>
    %75 = vector.broadcast %cst_23 : f32 to vector<64x128xf32>
    %76 = arith.select %74, %72, %75 : vector<64x128xi1>, vector<64x128xf32>
    %c0_24 = arith.constant 0 : index
    %c1 = arith.constant 1 : index
    %c0_25 = arith.constant 0 : index
    %77 = vector.load %arg5[%c0_24, %c1, %c0_25] : memref<4x7x128xf32, #tpu.memory_space<vmem>>, vector<1x1x128xf32>
    %78 = vector.shape_cast %77 : vector<1x1x128xf32> to vector<128xf32>
    %79 = vector.shape_cast %78 : vector<128xf32> to vector<1x128xf32>
    %80 = vector.broadcast %79 : vector<1x128xf32> to vector<64x128xf32>
    %81 = arith.mulf %76, %80 : vector<64x128xf32>
    %82 = arith.addf %71, %81 : vector<64x128xf32>
    %c1_i32_26 = arith.constant 1 : i32
    %83 = tpu.dynamic_rotate %55 by %c1_i32_26 dim 0 : vector<64x128xf32>, i32 -> vector<64x128xf32>
    %cst_27 = arith.constant 0.000000e+00 : f32
    %84 = vector.shape_cast %13 : vector<64x1xi1> to vector<64x1xi1>
    %85 = vector.broadcast %84 : vector<64x1xi1> to vector<64x128xi1>
    %86 = vector.broadcast %cst_27 : f32 to vector<64x128xf32>
    %87 = arith.select %85, %83, %86 : vector<64x128xi1>, vector<64x128xf32>
    %c0_28 = arith.constant 0 : index
    %c2 = arith.constant 2 : index
    %c0_29 = arith.constant 0 : index
    %88 = vector.load %arg5[%c0_28, %c2, %c0_29] : memref<4x7x128xf32, #tpu.memory_space<vmem>>, vector<1x1x128xf32>
    %89 = vector.shape_cast %88 : vector<1x1x128xf32> to vector<128xf32>
    %90 = vector.shape_cast %89 : vector<128xf32> to vector<1x128xf32>
    %91 = vector.broadcast %90 : vector<1x128xf32> to vector<64x128xf32>
    %92 = arith.mulf %87, %91 : vector<64x128xf32>
    %93 = arith.addf %82, %92 : vector<64x128xf32>
    %c63_i32 = arith.constant 63 : i32
    %94 = tpu.dynamic_rotate %55 by %c63_i32 dim 0 : vector<64x128xf32>, i32 -> vector<64x128xf32>
    %cst_30 = arith.constant 0.000000e+00 : f32
    %95 = vector.shape_cast %15 : vector<64x1xi1> to vector<64x1xi1>
    %96 = vector.broadcast %95 : vector<64x1xi1> to vector<64x128xi1>
    %97 = vector.broadcast %cst_30 : f32 to vector<64x128xf32>
    %98 = arith.select %96, %94, %97 : vector<64x128xi1>, vector<64x128xf32>
    %c0_31 = arith.constant 0 : index
    %c4 = arith.constant 4 : index
    %c0_32 = arith.constant 0 : index
    %99 = vector.load %arg5[%c0_31, %c4, %c0_32] : memref<4x7x128xf32, #tpu.memory_space<vmem>>, vector<1x1x128xf32>
    %100 = vector.shape_cast %99 : vector<1x1x128xf32> to vector<128xf32>
    %101 = vector.shape_cast %100 : vector<128xf32> to vector<1x128xf32>
    %102 = vector.broadcast %101 : vector<1x128xf32> to vector<64x128xf32>
    %103 = arith.mulf %98, %102 : vector<64x128xf32>
    %104 = arith.addf %93, %103 : vector<64x128xf32>
    %c62_i32 = arith.constant 62 : i32
    %105 = tpu.dynamic_rotate %55 by %c62_i32 dim 0 : vector<64x128xf32>, i32 -> vector<64x128xf32>
    %cst_33 = arith.constant 0.000000e+00 : f32
    %106 = vector.shape_cast %17 : vector<64x1xi1> to vector<64x1xi1>
    %107 = vector.broadcast %106 : vector<64x1xi1> to vector<64x128xi1>
    %108 = vector.broadcast %cst_33 : f32 to vector<64x128xf32>
    %109 = arith.select %107, %105, %108 : vector<64x128xi1>, vector<64x128xf32>
    %c0_34 = arith.constant 0 : index
    %c5 = arith.constant 5 : index
    %c0_35 = arith.constant 0 : index
    %110 = vector.load %arg5[%c0_34, %c5, %c0_35] : memref<4x7x128xf32, #tpu.memory_space<vmem>>, vector<1x1x128xf32>
    %111 = vector.shape_cast %110 : vector<1x1x128xf32> to vector<128xf32>
    %112 = vector.shape_cast %111 : vector<128xf32> to vector<1x128xf32>
    %113 = vector.broadcast %112 : vector<1x128xf32> to vector<64x128xf32>
    %114 = arith.mulf %109, %113 : vector<64x128xf32>
    %115 = arith.addf %104, %114 : vector<64x128xf32>
    %c61_i32 = arith.constant 61 : i32
    %116 = tpu.dynamic_rotate %55 by %c61_i32 dim 0 : vector<64x128xf32>, i32 -> vector<64x128xf32>
    %cst_36 = arith.constant 0.000000e+00 : f32
    %117 = vector.shape_cast %19 : vector<64x1xi1> to vector<64x1xi1>
    %118 = vector.broadcast %117 : vector<64x1xi1> to vector<64x128xi1>
    %119 = vector.broadcast %cst_36 : f32 to vector<64x128xf32>
    %120 = arith.select %118, %116, %119 : vector<64x128xi1>, vector<64x128xf32>
    %c0_37 = arith.constant 0 : index
    %c6 = arith.constant 6 : index
    %c0_38 = arith.constant 0 : index
    %121 = vector.load %arg5[%c0_37, %c6, %c0_38] : memref<4x7x128xf32, #tpu.memory_space<vmem>>, vector<1x1x128xf32>
    %122 = vector.shape_cast %121 : vector<1x1x128xf32> to vector<128xf32>
    %123 = vector.shape_cast %122 : vector<128xf32> to vector<1x128xf32>
    %124 = vector.broadcast %123 : vector<1x128xf32> to vector<64x128xf32>
    %125 = arith.mulf %120, %124 : vector<64x128xf32>
    %126 = arith.addf %115, %125 : vector<64x128xf32>
    %127 = arith.truncf %126 : vector<64x128xf32> to vector<64x128xbf16>
    %c0_39 = arith.constant 0 : index
    %c0_40 = arith.constant 0 : index
    %c0_41 = arith.constant 0 : index
    %128 = vector.load %arg6[%c0_39, %c0_40, %c0_41] : memref<4x128x128xbf16, #tpu.memory_space<vmem>>, vector<1x128x128xbf16>
    %129 = vector.shape_cast %128 : vector<1x128x128xbf16> to vector<128x128xbf16>
    %cst_42 = arith.constant dense<0.000000e+00> : vector<64x128xf32>
    %130 = tpu.matmul %127, %129, %cst_42 {dimension_numbers = #tpu.dot_dimension_numbers<[1], [0], [0], [1], [0, 0, 1, 1], [], []>} : vector<64x128xbf16>, vector<128x128xbf16>, vector<64x128xf32> -> vector<64x128xf32>
    %c0_43 = arith.constant 0 : index
    %c0_44 = arith.constant 0 : index
    %131 = vector.load %arg7[%c0_43, %c0_44] : memref<4x128xf32, #tpu.memory_space<vmem>>, vector<1x128xf32>
    %132 = vector.shape_cast %131 : vector<1x128xf32> to vector<128xf32>
    %133 = vector.shape_cast %132 : vector<128xf32> to vector<1x128xf32>
    %134 = vector.broadcast %133 : vector<1x128xf32> to vector<64x128xf32>
    %135 = arith.addf %130, %134 : vector<64x128xf32>
    %cst_45 = arith.constant 0.000000e+00 : f32
    %136 = vector.broadcast %cst_45 : f32 to vector<64x128xf32>
    %137 = arith.maximumf %135, %136 : vector<64x128xf32>
    %138 = arith.addf %137, %5 : vector<64x128xf32>
    %c1_46 = arith.constant 1 : index
    %c0_47 = arith.constant 0 : index
    %139 = vector.load %arg3[%c1_46, %c0_47] : memref<4x128xf32, #tpu.memory_space<vmem>>, vector<1x128xf32>
    %140 = vector.shape_cast %139 : vector<1x128xf32> to vector<128xf32>
    %141 = vector.shape_cast %140 : vector<128xf32> to vector<1x128xf32>
    %c1_48 = arith.constant 1 : index
    %c0_49 = arith.constant 0 : index
    %142 = vector.load %arg4[%c1_48, %c0_49] : memref<4x128xf32, #tpu.memory_space<vmem>>, vector<1x128xf32>
    %143 = vector.shape_cast %142 : vector<1x128xf32> to vector<128xf32>
    %144 = vector.shape_cast %143 : vector<128xf32> to vector<1x128xf32>
    %cst_50 = arith.constant dense<0.000000e+00> : vector<64xf32>
    %145 = vector.multi_reduction <add>, %138, %cst_50 [1] : vector<64x128xf32> to vector<64xf32>
    %146 = vector.shape_cast %145 : vector<64xf32> to vector<64x1xf32>
    %cst_51 = arith.constant 3.125000e-02 : f32
    %147 = vector.broadcast %cst_51 : f32 to vector<64x1xf32>
    %148 = arith.mulf %146, %147 : vector<64x1xf32>
    %149 = arith.mulf %138, %138 : vector<64x128xf32>
    %cst_52 = arith.constant dense<0.000000e+00> : vector<64xf32>
    %150 = vector.multi_reduction <add>, %149, %cst_52 [1] : vector<64x128xf32> to vector<64xf32>
    %151 = vector.shape_cast %150 : vector<64xf32> to vector<64x1xf32>
    %cst_53 = arith.constant 3.125000e-02 : f32
    %152 = vector.broadcast %cst_53 : f32 to vector<64x1xf32>
    %153 = arith.mulf %151, %152 : vector<64x1xf32>
    %154 = arith.mulf %148, %148 : vector<64x1xf32>
    %155 = arith.subf %153, %154 : vector<64x1xf32>
    %cst_54 = arith.constant 0.000000e+00 : f32
    %156 = vector.broadcast %cst_54 : f32 to vector<64x1xf32>
    %157 = arith.maximumf %155, %156 : vector<64x1xf32>
    %158 = vector.broadcast %148 : vector<64x1xf32> to vector<64x128xf32>
    %159 = arith.subf %138, %158 : vector<64x128xf32>
    %cst_55 = arith.constant 9.99999997E-7 : f32
    %160 = vector.broadcast %cst_55 : f32 to vector<64x1xf32>
    %161 = arith.addf %157, %160 : vector<64x1xf32>
    %162 = math.rsqrt %161 : vector<64x1xf32>
    %163 = vector.broadcast %162 : vector<64x1xf32> to vector<64x128xf32>
    %164 = arith.mulf %159, %163 : vector<64x128xf32>
    %165 = vector.broadcast %141 : vector<1x128xf32> to vector<64x128xf32>
    %166 = arith.mulf %164, %165 : vector<64x128xf32>
    %167 = vector.broadcast %144 : vector<1x128xf32> to vector<64x128xf32>
    %168 = arith.addf %166, %167 : vector<64x128xf32>
    %cst_56 = arith.constant 0.000000e+00 : f32
    %169 = vector.shape_cast %21 : vector<64x1xi1> to vector<64x1xi1>
    %170 = vector.broadcast %169 : vector<64x1xi1> to vector<64x128xi1>
    %171 = vector.broadcast %cst_56 : f32 to vector<64x128xf32>
    %172 = arith.select %170, %168, %171 : vector<64x128xi1>, vector<64x128xf32>
    %c1_57 = arith.constant 1 : index
    %c3_58 = arith.constant 3 : index
    %c0_59 = arith.constant 0 : index
    %173 = vector.load %arg5[%c1_57, %c3_58, %c0_59] : memref<4x7x128xf32, #tpu.memory_space<vmem>>, vector<1x1x128xf32>
    %174 = vector.shape_cast %173 : vector<1x1x128xf32> to vector<128xf32>
    %175 = vector.shape_cast %174 : vector<128xf32> to vector<1x128xf32>
    %176 = vector.broadcast %175 : vector<1x128xf32> to vector<64x128xf32>
    %177 = arith.mulf %172, %176 : vector<64x128xf32>
    %c3_i32_60 = arith.constant 3 : i32
    %178 = tpu.dynamic_rotate %172 by %c3_i32_60 dim 0 : vector<64x128xf32>, i32 -> vector<64x128xf32>
    %cst_61 = arith.constant 0.000000e+00 : f32
    %179 = vector.shape_cast %9 : vector<64x1xi1> to vector<64x1xi1>
    %180 = vector.broadcast %179 : vector<64x1xi1> to vector<64x128xi1>
    %181 = vector.broadcast %cst_61 : f32 to vector<64x128xf32>
    %182 = arith.select %180, %178, %181 : vector<64x128xi1>, vector<64x128xf32>
    %c1_62 = arith.constant 1 : index
    %c0_63 = arith.constant 0 : index
    %c0_64 = arith.constant 0 : index
    %183 = vector.load %arg5[%c1_62, %c0_63, %c0_64] : memref<4x7x128xf32, #tpu.memory_space<vmem>>, vector<1x1x128xf32>
    %184 = vector.shape_cast %183 : vector<1x1x128xf32> to vector<128xf32>
    %185 = vector.shape_cast %184 : vector<128xf32> to vector<1x128xf32>
    %186 = vector.broadcast %185 : vector<1x128xf32> to vector<64x128xf32>
    %187 = arith.mulf %182, %186 : vector<64x128xf32>
    %188 = arith.addf %177, %187 : vector<64x128xf32>
    %c2_i32_65 = arith.constant 2 : i32
    %189 = tpu.dynamic_rotate %172 by %c2_i32_65 dim 0 : vector<64x128xf32>, i32 -> vector<64x128xf32>
    %cst_66 = arith.constant 0.000000e+00 : f32
    %190 = vector.shape_cast %11 : vector<64x1xi1> to vector<64x1xi1>
    %191 = vector.broadcast %190 : vector<64x1xi1> to vector<64x128xi1>
    %192 = vector.broadcast %cst_66 : f32 to vector<64x128xf32>
    %193 = arith.select %191, %189, %192 : vector<64x128xi1>, vector<64x128xf32>
    %c1_67 = arith.constant 1 : index
    %c1_68 = arith.constant 1 : index
    %c0_69 = arith.constant 0 : index
    %194 = vector.load %arg5[%c1_67, %c1_68, %c0_69] : memref<4x7x128xf32, #tpu.memory_space<vmem>>, vector<1x1x128xf32>
    %195 = vector.shape_cast %194 : vector<1x1x128xf32> to vector<128xf32>
    %196 = vector.shape_cast %195 : vector<128xf32> to vector<1x128xf32>
    %197 = vector.broadcast %196 : vector<1x128xf32> to vector<64x128xf32>
    %198 = arith.mulf %193, %197 : vector<64x128xf32>
    %199 = arith.addf %188, %198 : vector<64x128xf32>
    %c1_i32_70 = arith.constant 1 : i32
    %200 = tpu.dynamic_rotate %172 by %c1_i32_70 dim 0 : vector<64x128xf32>, i32 -> vector<64x128xf32>
    %cst_71 = arith.constant 0.000000e+00 : f32
    %201 = vector.shape_cast %13 : vector<64x1xi1> to vector<64x1xi1>
    %202 = vector.broadcast %201 : vector<64x1xi1> to vector<64x128xi1>
    %203 = vector.broadcast %cst_71 : f32 to vector<64x128xf32>
    %204 = arith.select %202, %200, %203 : vector<64x128xi1>, vector<64x128xf32>
    %c1_72 = arith.constant 1 : index
    %c2_73 = arith.constant 2 : index
    %c0_74 = arith.constant 0 : index
    %205 = vector.load %arg5[%c1_72, %c2_73, %c0_74] : memref<4x7x128xf32, #tpu.memory_space<vmem>>, vector<1x1x128xf32>
    %206 = vector.shape_cast %205 : vector<1x1x128xf32> to vector<128xf32>
    %207 = vector.shape_cast %206 : vector<128xf32> to vector<1x128xf32>
    %208 = vector.broadcast %207 : vector<1x128xf32> to vector<64x128xf32>
    %209 = arith.mulf %204, %208 : vector<64x128xf32>
    %210 = arith.addf %199, %209 : vector<64x128xf32>
    %c63_i32_75 = arith.constant 63 : i32
    %211 = tpu.dynamic_rotate %172 by %c63_i32_75 dim 0 : vector<64x128xf32>, i32 -> vector<64x128xf32>
    %cst_76 = arith.constant 0.000000e+00 : f32
    %212 = vector.shape_cast %15 : vector<64x1xi1> to vector<64x1xi1>
    %213 = vector.broadcast %212 : vector<64x1xi1> to vector<64x128xi1>
    %214 = vector.broadcast %cst_76 : f32 to vector<64x128xf32>
    %215 = arith.select %213, %211, %214 : vector<64x128xi1>, vector<64x128xf32>
    %c1_77 = arith.constant 1 : index
    %c4_78 = arith.constant 4 : index
    %c0_79 = arith.constant 0 : index
    %216 = vector.load %arg5[%c1_77, %c4_78, %c0_79] : memref<4x7x128xf32, #tpu.memory_space<vmem>>, vector<1x1x128xf32>
    %217 = vector.shape_cast %216 : vector<1x1x128xf32> to vector<128xf32>
    %218 = vector.shape_cast %217 : vector<128xf32> to vector<1x128xf32>
    %219 = vector.broadcast %218 : vector<1x128xf32> to vector<64x128xf32>
    %220 = arith.mulf %215, %219 : vector<64x128xf32>
    %221 = arith.addf %210, %220 : vector<64x128xf32>
    %c62_i32_80 = arith.constant 62 : i32
    %222 = tpu.dynamic_rotate %172 by %c62_i32_80 dim 0 : vector<64x128xf32>, i32 -> vector<64x128xf32>
    %cst_81 = arith.constant 0.000000e+00 : f32
    %223 = vector.shape_cast %17 : vector<64x1xi1> to vector<64x1xi1>
    %224 = vector.broadcast %223 : vector<64x1xi1> to vector<64x128xi1>
    %225 = vector.broadcast %cst_81 : f32 to vector<64x128xf32>
    %226 = arith.select %224, %222, %225 : vector<64x128xi1>, vector<64x128xf32>
    %c1_82 = arith.constant 1 : index
    %c5_83 = arith.constant 5 : index
    %c0_84 = arith.constant 0 : index
    %227 = vector.load %arg5[%c1_82, %c5_83, %c0_84] : memref<4x7x128xf32, #tpu.memory_space<vmem>>, vector<1x1x128xf32>
    %228 = vector.shape_cast %227 : vector<1x1x128xf32> to vector<128xf32>
    %229 = vector.shape_cast %228 : vector<128xf32> to vector<1x128xf32>
    %230 = vector.broadcast %229 : vector<1x128xf32> to vector<64x128xf32>
    %231 = arith.mulf %226, %230 : vector<64x128xf32>
    %232 = arith.addf %221, %231 : vector<64x128xf32>
    %c61_i32_85 = arith.constant 61 : i32
    %233 = tpu.dynamic_rotate %172 by %c61_i32_85 dim 0 : vector<64x128xf32>, i32 -> vector<64x128xf32>
    %cst_86 = arith.constant 0.000000e+00 : f32
    %234 = vector.shape_cast %19 : vector<64x1xi1> to vector<64x1xi1>
    %235 = vector.broadcast %234 : vector<64x1xi1> to vector<64x128xi1>
    %236 = vector.broadcast %cst_86 : f32 to vector<64x128xf32>
    %237 = arith.select %235, %233, %236 : vector<64x128xi1>, vector<64x128xf32>
    %c1_87 = arith.constant 1 : index
    %c6_88 = arith.constant 6 : index
    %c0_89 = arith.constant 0 : index
    %238 = vector.load %arg5[%c1_87, %c6_88, %c0_89] : memref<4x7x128xf32, #tpu.memory_space<vmem>>, vector<1x1x128xf32>
    %239 = vector.shape_cast %238 : vector<1x1x128xf32> to vector<128xf32>
    %240 = vector.shape_cast %239 : vector<128xf32> to vector<1x128xf32>
    %241 = vector.broadcast %240 : vector<1x128xf32> to vector<64x128xf32>
    %242 = arith.mulf %237, %241 : vector<64x128xf32>
    %243 = arith.addf %232, %242 : vector<64x128xf32>
    %244 = arith.truncf %243 : vector<64x128xf32> to vector<64x128xbf16>
    %c1_90 = arith.constant 1 : index
    %c0_91 = arith.constant 0 : index
    %c0_92 = arith.constant 0 : index
    %245 = vector.load %arg6[%c1_90, %c0_91, %c0_92] : memref<4x128x128xbf16, #tpu.memory_space<vmem>>, vector<1x128x128xbf16>
    %246 = vector.shape_cast %245 : vector<1x128x128xbf16> to vector<128x128xbf16>
    %cst_93 = arith.constant dense<0.000000e+00> : vector<64x128xf32>
    %247 = tpu.matmul %244, %246, %cst_93 {dimension_numbers = #tpu.dot_dimension_numbers<[1], [0], [0], [1], [0, 0, 1, 1], [], []>} : vector<64x128xbf16>, vector<128x128xbf16>, vector<64x128xf32> -> vector<64x128xf32>
    %c1_94 = arith.constant 1 : index
    %c0_95 = arith.constant 0 : index
    %248 = vector.load %arg7[%c1_94, %c0_95] : memref<4x128xf32, #tpu.memory_space<vmem>>, vector<1x128xf32>
    %249 = vector.shape_cast %248 : vector<1x128xf32> to vector<128xf32>
    %250 = vector.shape_cast %249 : vector<128xf32> to vector<1x128xf32>
    %251 = vector.broadcast %250 : vector<1x128xf32> to vector<64x128xf32>
    %252 = arith.addf %247, %251 : vector<64x128xf32>
    %cst_96 = arith.constant 0.000000e+00 : f32
    %253 = vector.broadcast %cst_96 : f32 to vector<64x128xf32>
    %254 = arith.maximumf %252, %253 : vector<64x128xf32>
    %255 = arith.addf %254, %138 : vector<64x128xf32>
    %c2_97 = arith.constant 2 : index
    %c0_98 = arith.constant 0 : index
    %256 = vector.load %arg3[%c2_97, %c0_98] : memref<4x128xf32, #tpu.memory_space<vmem>>, vector<1x128xf32>
    %257 = vector.shape_cast %256 : vector<1x128xf32> to vector<128xf32>
    %258 = vector.shape_cast %257 : vector<128xf32> to vector<1x128xf32>
    %c2_99 = arith.constant 2 : index
    %c0_100 = arith.constant 0 : index
    %259 = vector.load %arg4[%c2_99, %c0_100] : memref<4x128xf32, #tpu.memory_space<vmem>>, vector<1x128xf32>
    %260 = vector.shape_cast %259 : vector<1x128xf32> to vector<128xf32>
    %261 = vector.shape_cast %260 : vector<128xf32> to vector<1x128xf32>
    %cst_101 = arith.constant dense<0.000000e+00> : vector<64xf32>
    %262 = vector.multi_reduction <add>, %255, %cst_101 [1] : vector<64x128xf32> to vector<64xf32>
    %263 = vector.shape_cast %262 : vector<64xf32> to vector<64x1xf32>
    %cst_102 = arith.constant 3.125000e-02 : f32
    %264 = vector.broadcast %cst_102 : f32 to vector<64x1xf32>
    %265 = arith.mulf %263, %264 : vector<64x1xf32>
    %266 = arith.mulf %255, %255 : vector<64x128xf32>
    %cst_103 = arith.constant dense<0.000000e+00> : vector<64xf32>
    %267 = vector.multi_reduction <add>, %266, %cst_103 [1] : vector<64x128xf32> to vector<64xf32>
    %268 = vector.shape_cast %267 : vector<64xf32> to vector<64x1xf32>
    %cst_104 = arith.constant 3.125000e-02 : f32
    %269 = vector.broadcast %cst_104 : f32 to vector<64x1xf32>
    %270 = arith.mulf %268, %269 : vector<64x1xf32>
    %271 = arith.mulf %265, %265 : vector<64x1xf32>
    %272 = arith.subf %270, %271 : vector<64x1xf32>
    %cst_105 = arith.constant 0.000000e+00 : f32
    %273 = vector.broadcast %cst_105 : f32 to vector<64x1xf32>
    %274 = arith.maximumf %272, %273 : vector<64x1xf32>
    %275 = vector.broadcast %265 : vector<64x1xf32> to vector<64x128xf32>
    %276 = arith.subf %255, %275 : vector<64x128xf32>
    %cst_106 = arith.constant 9.99999997E-7 : f32
    %277 = vector.broadcast %cst_106 : f32 to vector<64x1xf32>
    %278 = arith.addf %274, %277 : vector<64x1xf32>
    %279 = math.rsqrt %278 : vector<64x1xf32>
    %280 = vector.broadcast %279 : vector<64x1xf32> to vector<64x128xf32>
    %281 = arith.mulf %276, %280 : vector<64x128xf32>
    %282 = vector.broadcast %258 : vector<1x128xf32> to vector<64x128xf32>
    %283 = arith.mulf %281, %282 : vector<64x128xf32>
    %284 = vector.broadcast %261 : vector<1x128xf32> to vector<64x128xf32>
    %285 = arith.addf %283, %284 : vector<64x128xf32>
    %cst_107 = arith.constant 0.000000e+00 : f32
    %286 = vector.shape_cast %21 : vector<64x1xi1> to vector<64x1xi1>
    %287 = vector.broadcast %286 : vector<64x1xi1> to vector<64x128xi1>
    %288 = vector.broadcast %cst_107 : f32 to vector<64x128xf32>
    %289 = arith.select %287, %285, %288 : vector<64x128xi1>, vector<64x128xf32>
    %c2_108 = arith.constant 2 : index
    %c3_109 = arith.constant 3 : index
    %c0_110 = arith.constant 0 : index
    %290 = vector.load %arg5[%c2_108, %c3_109, %c0_110] : memref<4x7x128xf32, #tpu.memory_space<vmem>>, vector<1x1x128xf32>
    %291 = vector.shape_cast %290 : vector<1x1x128xf32> to vector<128xf32>
    %292 = vector.shape_cast %291 : vector<128xf32> to vector<1x128xf32>
    %293 = vector.broadcast %292 : vector<1x128xf32> to vector<64x128xf32>
    %294 = arith.mulf %289, %293 : vector<64x128xf32>
    %c3_i32_111 = arith.constant 3 : i32
    %295 = tpu.dynamic_rotate %289 by %c3_i32_111 dim 0 : vector<64x128xf32>, i32 -> vector<64x128xf32>
    %cst_112 = arith.constant 0.000000e+00 : f32
    %296 = vector.shape_cast %9 : vector<64x1xi1> to vector<64x1xi1>
    %297 = vector.broadcast %296 : vector<64x1xi1> to vector<64x128xi1>
    %298 = vector.broadcast %cst_112 : f32 to vector<64x128xf32>
    %299 = arith.select %297, %295, %298 : vector<64x128xi1>, vector<64x128xf32>
    %c2_113 = arith.constant 2 : index
    %c0_114 = arith.constant 0 : index
    %c0_115 = arith.constant 0 : index
    %300 = vector.load %arg5[%c2_113, %c0_114, %c0_115] : memref<4x7x128xf32, #tpu.memory_space<vmem>>, vector<1x1x128xf32>
    %301 = vector.shape_cast %300 : vector<1x1x128xf32> to vector<128xf32>
    %302 = vector.shape_cast %301 : vector<128xf32> to vector<1x128xf32>
    %303 = vector.broadcast %302 : vector<1x128xf32> to vector<64x128xf32>
    %304 = arith.mulf %299, %303 : vector<64x128xf32>
    %305 = arith.addf %294, %304 : vector<64x128xf32>
    %c2_i32_116 = arith.constant 2 : i32
    %306 = tpu.dynamic_rotate %289 by %c2_i32_116 dim 0 : vector<64x128xf32>, i32 -> vector<64x128xf32>
    %cst_117 = arith.constant 0.000000e+00 : f32
    %307 = vector.shape_cast %11 : vector<64x1xi1> to vector<64x1xi1>
    %308 = vector.broadcast %307 : vector<64x1xi1> to vector<64x128xi1>
    %309 = vector.broadcast %cst_117 : f32 to vector<64x128xf32>
    %310 = arith.select %308, %306, %309 : vector<64x128xi1>, vector<64x128xf32>
    %c2_118 = arith.constant 2 : index
    %c1_119 = arith.constant 1 : index
    %c0_120 = arith.constant 0 : index
    %311 = vector.load %arg5[%c2_118, %c1_119, %c0_120] : memref<4x7x128xf32, #tpu.memory_space<vmem>>, vector<1x1x128xf32>
    %312 = vector.shape_cast %311 : vector<1x1x128xf32> to vector<128xf32>
    %313 = vector.shape_cast %312 : vector<128xf32> to vector<1x128xf32>
    %314 = vector.broadcast %313 : vector<1x128xf32> to vector<64x128xf32>
    %315 = arith.mulf %310, %314 : vector<64x128xf32>
    %316 = arith.addf %305, %315 : vector<64x128xf32>
    %c1_i32_121 = arith.constant 1 : i32
    %317 = tpu.dynamic_rotate %289 by %c1_i32_121 dim 0 : vector<64x128xf32>, i32 -> vector<64x128xf32>
    %cst_122 = arith.constant 0.000000e+00 : f32
    %318 = vector.shape_cast %13 : vector<64x1xi1> to vector<64x1xi1>
    %319 = vector.broadcast %318 : vector<64x1xi1> to vector<64x128xi1>
    %320 = vector.broadcast %cst_122 : f32 to vector<64x128xf32>
    %321 = arith.select %319, %317, %320 : vector<64x128xi1>, vector<64x128xf32>
    %c2_123 = arith.constant 2 : index
    %c2_124 = arith.constant 2 : index
    %c0_125 = arith.constant 0 : index
    %322 = vector.load %arg5[%c2_123, %c2_124, %c0_125] : memref<4x7x128xf32, #tpu.memory_space<vmem>>, vector<1x1x128xf32>
    %323 = vector.shape_cast %322 : vector<1x1x128xf32> to vector<128xf32>
    %324 = vector.shape_cast %323 : vector<128xf32> to vector<1x128xf32>
    %325 = vector.broadcast %324 : vector<1x128xf32> to vector<64x128xf32>
    %326 = arith.mulf %321, %325 : vector<64x128xf32>
    %327 = arith.addf %316, %326 : vector<64x128xf32>
    %c63_i32_126 = arith.constant 63 : i32
    %328 = tpu.dynamic_rotate %289 by %c63_i32_126 dim 0 : vector<64x128xf32>, i32 -> vector<64x128xf32>
    %cst_127 = arith.constant 0.000000e+00 : f32
    %329 = vector.shape_cast %15 : vector<64x1xi1> to vector<64x1xi1>
    %330 = vector.broadcast %329 : vector<64x1xi1> to vector<64x128xi1>
    %331 = vector.broadcast %cst_127 : f32 to vector<64x128xf32>
    %332 = arith.select %330, %328, %331 : vector<64x128xi1>, vector<64x128xf32>
    %c2_128 = arith.constant 2 : index
    %c4_129 = arith.constant 4 : index
    %c0_130 = arith.constant 0 : index
    %333 = vector.load %arg5[%c2_128, %c4_129, %c0_130] : memref<4x7x128xf32, #tpu.memory_space<vmem>>, vector<1x1x128xf32>
    %334 = vector.shape_cast %333 : vector<1x1x128xf32> to vector<128xf32>
    %335 = vector.shape_cast %334 : vector<128xf32> to vector<1x128xf32>
    %336 = vector.broadcast %335 : vector<1x128xf32> to vector<64x128xf32>
    %337 = arith.mulf %332, %336 : vector<64x128xf32>
    %338 = arith.addf %327, %337 : vector<64x128xf32>
    %c62_i32_131 = arith.constant 62 : i32
    %339 = tpu.dynamic_rotate %289 by %c62_i32_131 dim 0 : vector<64x128xf32>, i32 -> vector<64x128xf32>
    %cst_132 = arith.constant 0.000000e+00 : f32
    %340 = vector.shape_cast %17 : vector<64x1xi1> to vector<64x1xi1>
    %341 = vector.broadcast %340 : vector<64x1xi1> to vector<64x128xi1>
    %342 = vector.broadcast %cst_132 : f32 to vector<64x128xf32>
    %343 = arith.select %341, %339, %342 : vector<64x128xi1>, vector<64x128xf32>
    %c2_133 = arith.constant 2 : index
    %c5_134 = arith.constant 5 : index
    %c0_135 = arith.constant 0 : index
    %344 = vector.load %arg5[%c2_133, %c5_134, %c0_135] : memref<4x7x128xf32, #tpu.memory_space<vmem>>, vector<1x1x128xf32>
    %345 = vector.shape_cast %344 : vector<1x1x128xf32> to vector<128xf32>
    %346 = vector.shape_cast %345 : vector<128xf32> to vector<1x128xf32>
    %347 = vector.broadcast %346 : vector<1x128xf32> to vector<64x128xf32>
    %348 = arith.mulf %343, %347 : vector<64x128xf32>
    %349 = arith.addf %338, %348 : vector<64x128xf32>
    %c61_i32_136 = arith.constant 61 : i32
    %350 = tpu.dynamic_rotate %289 by %c61_i32_136 dim 0 : vector<64x128xf32>, i32 -> vector<64x128xf32>
    %cst_137 = arith.constant 0.000000e+00 : f32
    %351 = vector.shape_cast %19 : vector<64x1xi1> to vector<64x1xi1>
    %352 = vector.broadcast %351 : vector<64x1xi1> to vector<64x128xi1>
    %353 = vector.broadcast %cst_137 : f32 to vector<64x128xf32>
    %354 = arith.select %352, %350, %353 : vector<64x128xi1>, vector<64x128xf32>
    %c2_138 = arith.constant 2 : index
    %c6_139 = arith.constant 6 : index
    %c0_140 = arith.constant 0 : index
    %355 = vector.load %arg5[%c2_138, %c6_139, %c0_140] : memref<4x7x128xf32, #tpu.memory_space<vmem>>, vector<1x1x128xf32>
    %356 = vector.shape_cast %355 : vector<1x1x128xf32> to vector<128xf32>
    %357 = vector.shape_cast %356 : vector<128xf32> to vector<1x128xf32>
    %358 = vector.broadcast %357 : vector<1x128xf32> to vector<64x128xf32>
    %359 = arith.mulf %354, %358 : vector<64x128xf32>
    %360 = arith.addf %349, %359 : vector<64x128xf32>
    %361 = arith.truncf %360 : vector<64x128xf32> to vector<64x128xbf16>
    %c2_141 = arith.constant 2 : index
    %c0_142 = arith.constant 0 : index
    %c0_143 = arith.constant 0 : index
    %362 = vector.load %arg6[%c2_141, %c0_142, %c0_143] : memref<4x128x128xbf16, #tpu.memory_space<vmem>>, vector<1x128x128xbf16>
    %363 = vector.shape_cast %362 : vector<1x128x128xbf16> to vector<128x128xbf16>
    %cst_144 = arith.constant dense<0.000000e+00> : vector<64x128xf32>
    %364 = tpu.matmul %361, %363, %cst_144 {dimension_numbers = #tpu.dot_dimension_numbers<[1], [0], [0], [1], [0, 0, 1, 1], [], []>} : vector<64x128xbf16>, vector<128x128xbf16>, vector<64x128xf32> -> vector<64x128xf32>
    %c2_145 = arith.constant 2 : index
    %c0_146 = arith.constant 0 : index
    %365 = vector.load %arg7[%c2_145, %c0_146] : memref<4x128xf32, #tpu.memory_space<vmem>>, vector<1x128xf32>
    %366 = vector.shape_cast %365 : vector<1x128xf32> to vector<128xf32>
    %367 = vector.shape_cast %366 : vector<128xf32> to vector<1x128xf32>
    %368 = vector.broadcast %367 : vector<1x128xf32> to vector<64x128xf32>
    %369 = arith.addf %364, %368 : vector<64x128xf32>
    %cst_147 = arith.constant 0.000000e+00 : f32
    %370 = vector.broadcast %cst_147 : f32 to vector<64x128xf32>
    %371 = arith.maximumf %369, %370 : vector<64x128xf32>
    %372 = arith.addf %371, %255 : vector<64x128xf32>
    %c3_148 = arith.constant 3 : index
    %c0_149 = arith.constant 0 : index
    %373 = vector.load %arg3[%c3_148, %c0_149] : memref<4x128xf32, #tpu.memory_space<vmem>>, vector<1x128xf32>
    %374 = vector.shape_cast %373 : vector<1x128xf32> to vector<128xf32>
    %375 = vector.shape_cast %374 : vector<128xf32> to vector<1x128xf32>
    %c3_150 = arith.constant 3 : index
    %c0_151 = arith.constant 0 : index
    %376 = vector.load %arg4[%c3_150, %c0_151] : memref<4x128xf32, #tpu.memory_space<vmem>>, vector<1x128xf32>
    %377 = vector.shape_cast %376 : vector<1x128xf32> to vector<128xf32>
    %378 = vector.shape_cast %377 : vector<128xf32> to vector<1x128xf32>
    %cst_152 = arith.constant dense<0.000000e+00> : vector<64xf32>
    %379 = vector.multi_reduction <add>, %372, %cst_152 [1] : vector<64x128xf32> to vector<64xf32>
    %380 = vector.shape_cast %379 : vector<64xf32> to vector<64x1xf32>
    %cst_153 = arith.constant 3.125000e-02 : f32
    %381 = vector.broadcast %cst_153 : f32 to vector<64x1xf32>
    %382 = arith.mulf %380, %381 : vector<64x1xf32>
    %383 = arith.mulf %372, %372 : vector<64x128xf32>
    %cst_154 = arith.constant dense<0.000000e+00> : vector<64xf32>
    %384 = vector.multi_reduction <add>, %383, %cst_154 [1] : vector<64x128xf32> to vector<64xf32>
    %385 = vector.shape_cast %384 : vector<64xf32> to vector<64x1xf32>
    %cst_155 = arith.constant 3.125000e-02 : f32
    %386 = vector.broadcast %cst_155 : f32 to vector<64x1xf32>
    %387 = arith.mulf %385, %386 : vector<64x1xf32>
    %388 = arith.mulf %382, %382 : vector<64x1xf32>
    %389 = arith.subf %387, %388 : vector<64x1xf32>
    %cst_156 = arith.constant 0.000000e+00 : f32
    %390 = vector.broadcast %cst_156 : f32 to vector<64x1xf32>
    %391 = arith.maximumf %389, %390 : vector<64x1xf32>
    %392 = vector.broadcast %382 : vector<64x1xf32> to vector<64x128xf32>
    %393 = arith.subf %372, %392 : vector<64x128xf32>
    %cst_157 = arith.constant 9.99999997E-7 : f32
    %394 = vector.broadcast %cst_157 : f32 to vector<64x1xf32>
    %395 = arith.addf %391, %394 : vector<64x1xf32>
    %396 = math.rsqrt %395 : vector<64x1xf32>
    %397 = vector.broadcast %396 : vector<64x1xf32> to vector<64x128xf32>
    %398 = arith.mulf %393, %397 : vector<64x128xf32>
    %399 = vector.broadcast %375 : vector<1x128xf32> to vector<64x128xf32>
    %400 = arith.mulf %398, %399 : vector<64x128xf32>
    %401 = vector.broadcast %378 : vector<1x128xf32> to vector<64x128xf32>
    %402 = arith.addf %400, %401 : vector<64x128xf32>
    %cst_158 = arith.constant 0.000000e+00 : f32
    %403 = vector.shape_cast %21 : vector<64x1xi1> to vector<64x1xi1>
    %404 = vector.broadcast %403 : vector<64x1xi1> to vector<64x128xi1>
    %405 = vector.broadcast %cst_158 : f32 to vector<64x128xf32>
    %406 = arith.select %404, %402, %405 : vector<64x128xi1>, vector<64x128xf32>
    %c3_159 = arith.constant 3 : index
    %c3_160 = arith.constant 3 : index
    %c0_161 = arith.constant 0 : index
    %407 = vector.load %arg5[%c3_159, %c3_160, %c0_161] : memref<4x7x128xf32, #tpu.memory_space<vmem>>, vector<1x1x128xf32>
    %408 = vector.shape_cast %407 : vector<1x1x128xf32> to vector<128xf32>
    %409 = vector.shape_cast %408 : vector<128xf32> to vector<1x128xf32>
    %410 = vector.broadcast %409 : vector<1x128xf32> to vector<64x128xf32>
    %411 = arith.mulf %406, %410 : vector<64x128xf32>
    %c3_i32_162 = arith.constant 3 : i32
    %412 = tpu.dynamic_rotate %406 by %c3_i32_162 dim 0 : vector<64x128xf32>, i32 -> vector<64x128xf32>
    %cst_163 = arith.constant 0.000000e+00 : f32
    %413 = vector.shape_cast %9 : vector<64x1xi1> to vector<64x1xi1>
    %414 = vector.broadcast %413 : vector<64x1xi1> to vector<64x128xi1>
    %415 = vector.broadcast %cst_163 : f32 to vector<64x128xf32>
    %416 = arith.select %414, %412, %415 : vector<64x128xi1>, vector<64x128xf32>
    %c3_164 = arith.constant 3 : index
    %c0_165 = arith.constant 0 : index
    %c0_166 = arith.constant 0 : index
    %417 = vector.load %arg5[%c3_164, %c0_165, %c0_166] : memref<4x7x128xf32, #tpu.memory_space<vmem>>, vector<1x1x128xf32>
    %418 = vector.shape_cast %417 : vector<1x1x128xf32> to vector<128xf32>
    %419 = vector.shape_cast %418 : vector<128xf32> to vector<1x128xf32>
    %420 = vector.broadcast %419 : vector<1x128xf32> to vector<64x128xf32>
    %421 = arith.mulf %416, %420 : vector<64x128xf32>
    %422 = arith.addf %411, %421 : vector<64x128xf32>
    %c2_i32_167 = arith.constant 2 : i32
    %423 = tpu.dynamic_rotate %406 by %c2_i32_167 dim 0 : vector<64x128xf32>, i32 -> vector<64x128xf32>
    %cst_168 = arith.constant 0.000000e+00 : f32
    %424 = vector.shape_cast %11 : vector<64x1xi1> to vector<64x1xi1>
    %425 = vector.broadcast %424 : vector<64x1xi1> to vector<64x128xi1>
    %426 = vector.broadcast %cst_168 : f32 to vector<64x128xf32>
    %427 = arith.select %425, %423, %426 : vector<64x128xi1>, vector<64x128xf32>
    %c3_169 = arith.constant 3 : index
    %c1_170 = arith.constant 1 : index
    %c0_171 = arith.constant 0 : index
    %428 = vector.load %arg5[%c3_169, %c1_170, %c0_171] : memref<4x7x128xf32, #tpu.memory_space<vmem>>, vector<1x1x128xf32>
    %429 = vector.shape_cast %428 : vector<1x1x128xf32> to vector<128xf32>
    %430 = vector.shape_cast %429 : vector<128xf32> to vector<1x128xf32>
    %431 = vector.broadcast %430 : vector<1x128xf32> to vector<64x128xf32>
    %432 = arith.mulf %427, %431 : vector<64x128xf32>
    %433 = arith.addf %422, %432 : vector<64x128xf32>
    %c1_i32_172 = arith.constant 1 : i32
    %434 = tpu.dynamic_rotate %406 by %c1_i32_172 dim 0 : vector<64x128xf32>, i32 -> vector<64x128xf32>
    %cst_173 = arith.constant 0.000000e+00 : f32
    %435 = vector.shape_cast %13 : vector<64x1xi1> to vector<64x1xi1>
    %436 = vector.broadcast %435 : vector<64x1xi1> to vector<64x128xi1>
    %437 = vector.broadcast %cst_173 : f32 to vector<64x128xf32>
    %438 = arith.select %436, %434, %437 : vector<64x128xi1>, vector<64x128xf32>
    %c3_174 = arith.constant 3 : index
    %c2_175 = arith.constant 2 : index
    %c0_176 = arith.constant 0 : index
    %439 = vector.load %arg5[%c3_174, %c2_175, %c0_176] : memref<4x7x128xf32, #tpu.memory_space<vmem>>, vector<1x1x128xf32>
    %440 = vector.shape_cast %439 : vector<1x1x128xf32> to vector<128xf32>
    %441 = vector.shape_cast %440 : vector<128xf32> to vector<1x128xf32>
    %442 = vector.broadcast %441 : vector<1x128xf32> to vector<64x128xf32>
    %443 = arith.mulf %438, %442 : vector<64x128xf32>
    %444 = arith.addf %433, %443 : vector<64x128xf32>
    %c63_i32_177 = arith.constant 63 : i32
    %445 = tpu.dynamic_rotate %406 by %c63_i32_177 dim 0 : vector<64x128xf32>, i32 -> vector<64x128xf32>
    %cst_178 = arith.constant 0.000000e+00 : f32
    %446 = vector.shape_cast %15 : vector<64x1xi1> to vector<64x1xi1>
    %447 = vector.broadcast %446 : vector<64x1xi1> to vector<64x128xi1>
    %448 = vector.broadcast %cst_178 : f32 to vector<64x128xf32>
    %449 = arith.select %447, %445, %448 : vector<64x128xi1>, vector<64x128xf32>
    %c3_179 = arith.constant 3 : index
    %c4_180 = arith.constant 4 : index
    %c0_181 = arith.constant 0 : index
    %450 = vector.load %arg5[%c3_179, %c4_180, %c0_181] : memref<4x7x128xf32, #tpu.memory_space<vmem>>, vector<1x1x128xf32>
    %451 = vector.shape_cast %450 : vector<1x1x128xf32> to vector<128xf32>
    %452 = vector.shape_cast %451 : vector<128xf32> to vector<1x128xf32>
    %453 = vector.broadcast %452 : vector<1x128xf32> to vector<64x128xf32>
    %454 = arith.mulf %449, %453 : vector<64x128xf32>
    %455 = arith.addf %444, %454 : vector<64x128xf32>
    %c62_i32_182 = arith.constant 62 : i32
    %456 = tpu.dynamic_rotate %406 by %c62_i32_182 dim 0 : vector<64x128xf32>, i32 -> vector<64x128xf32>
    %cst_183 = arith.constant 0.000000e+00 : f32
    %457 = vector.shape_cast %17 : vector<64x1xi1> to vector<64x1xi1>
    %458 = vector.broadcast %457 : vector<64x1xi1> to vector<64x128xi1>
    %459 = vector.broadcast %cst_183 : f32 to vector<64x128xf32>
    %460 = arith.select %458, %456, %459 : vector<64x128xi1>, vector<64x128xf32>
    %c3_184 = arith.constant 3 : index
    %c5_185 = arith.constant 5 : index
    %c0_186 = arith.constant 0 : index
    %461 = vector.load %arg5[%c3_184, %c5_185, %c0_186] : memref<4x7x128xf32, #tpu.memory_space<vmem>>, vector<1x1x128xf32>
    %462 = vector.shape_cast %461 : vector<1x1x128xf32> to vector<128xf32>
    %463 = vector.shape_cast %462 : vector<128xf32> to vector<1x128xf32>
    %464 = vector.broadcast %463 : vector<1x128xf32> to vector<64x128xf32>
    %465 = arith.mulf %460, %464 : vector<64x128xf32>
    %466 = arith.addf %455, %465 : vector<64x128xf32>
    %c61_i32_187 = arith.constant 61 : i32
    %467 = tpu.dynamic_rotate %406 by %c61_i32_187 dim 0 : vector<64x128xf32>, i32 -> vector<64x128xf32>
    %cst_188 = arith.constant 0.000000e+00 : f32
    %468 = vector.shape_cast %19 : vector<64x1xi1> to vector<64x1xi1>
    %469 = vector.broadcast %468 : vector<64x1xi1> to vector<64x128xi1>
    %470 = vector.broadcast %cst_188 : f32 to vector<64x128xf32>
    %471 = arith.select %469, %467, %470 : vector<64x128xi1>, vector<64x128xf32>
    %c3_189 = arith.constant 3 : index
    %c6_190 = arith.constant 6 : index
    %c0_191 = arith.constant 0 : index
    %472 = vector.load %arg5[%c3_189, %c6_190, %c0_191] : memref<4x7x128xf32, #tpu.memory_space<vmem>>, vector<1x1x128xf32>
    %473 = vector.shape_cast %472 : vector<1x1x128xf32> to vector<128xf32>
    %474 = vector.shape_cast %473 : vector<128xf32> to vector<1x128xf32>
    %475 = vector.broadcast %474 : vector<1x128xf32> to vector<64x128xf32>
    %476 = arith.mulf %471, %475 : vector<64x128xf32>
    %477 = arith.addf %466, %476 : vector<64x128xf32>
    %478 = arith.truncf %477 : vector<64x128xf32> to vector<64x128xbf16>
    %c3_192 = arith.constant 3 : index
    %c0_193 = arith.constant 0 : index
    %c0_194 = arith.constant 0 : index
    %479 = vector.load %arg6[%c3_192, %c0_193, %c0_194] : memref<4x128x128xbf16, #tpu.memory_space<vmem>>, vector<1x128x128xbf16>
    %480 = vector.shape_cast %479 : vector<1x128x128xbf16> to vector<128x128xbf16>
    %cst_195 = arith.constant dense<0.000000e+00> : vector<64x128xf32>
    %481 = tpu.matmul %478, %480, %cst_195 {dimension_numbers = #tpu.dot_dimension_numbers<[1], [0], [0], [1], [0, 0, 1, 1], [], []>} : vector<64x128xbf16>, vector<128x128xbf16>, vector<64x128xf32> -> vector<64x128xf32>
    %c3_196 = arith.constant 3 : index
    %c0_197 = arith.constant 0 : index
    %482 = vector.load %arg7[%c3_196, %c0_197] : memref<4x128xf32, #tpu.memory_space<vmem>>, vector<1x128xf32>
    %483 = vector.shape_cast %482 : vector<1x128xf32> to vector<128xf32>
    %484 = vector.shape_cast %483 : vector<128xf32> to vector<1x128xf32>
    %485 = vector.broadcast %484 : vector<1x128xf32> to vector<64x128xf32>
    %486 = arith.addf %481, %485 : vector<64x128xf32>
    %cst_198 = arith.constant 0.000000e+00 : f32
    %487 = vector.broadcast %cst_198 : f32 to vector<64x128xf32>
    %488 = arith.maximumf %486, %487 : vector<64x128xf32>
    %489 = arith.addf %488, %372 : vector<64x128xf32>
    %490 = vector.shape_cast %489 : vector<64x128xf32> to vector<4x16x128xf32>
    %c0_199 = arith.constant 0 : index
    %c0_200 = arith.constant 0 : index
    %c0_201 = arith.constant 0 : index
    %491 = vector.load %arg8[%c0_199, %c0_200, %c0_201] : memref<4x16x128xf32, #tpu.memory_space<vmem>>, vector<4x16x128xf32>
    tpu.vector_store %arg8[%c0_199, %c0_200, %c0_201], %490 {strides = array<i32>} : memref<4x16x128xf32, #tpu.memory_space<vmem>>, vector<4x16x128xf32>,
    return
  }
  func.func @transform_0(%arg0: i32) -> (i32, i32, i32) {
    %c0_i32 = arith.constant 0 : i32
    %c0_i32_0 = arith.constant 0 : i32
    %c0_i32_1 = arith.constant 0 : i32
    return %arg0, %c0_i32, %c0_i32_0 : i32, i32, i32
  }
  func.func @transform_1(%arg0: i32) -> (i32, i32) {
    %c0_i32 = arith.constant 0 : i32
    %c0_i32_0 = arith.constant 0 : i32
    %c0_i32_1 = arith.constant 0 : i32
    return %c0_i32, %c0_i32_0 : i32, i32
  }
  func.func @transform_2(%arg0: i32) -> (i32, i32) {
    %c0_i32 = arith.constant 0 : i32
    %c0_i32_0 = arith.constant 0 : i32
    %c0_i32_1 = arith.constant 0 : i32
    return %c0_i32, %c0_i32_0 : i32, i32
  }
  func.func @transform_3(%arg0: i32) -> (i32, i32) {
    %c0_i32 = arith.constant 0 : i32
    %c0_i32_0 = arith.constant 0 : i32
    %c0_i32_1 = arith.constant 0 : i32
    return %c0_i32, %c0_i32_0 : i32, i32
  }
  func.func @transform_4(%arg0: i32) -> (i32, i32, i32) {
    %c0_i32 = arith.constant 0 : i32
    %c0_i32_0 = arith.constant 0 : i32
    %c0_i32_1 = arith.constant 0 : i32
    %c0_i32_2 = arith.constant 0 : i32
    return %c0_i32, %c0_i32_0, %c0_i32_1 : i32, i32, i32
  }
  func.func @transform_5(%arg0: i32) -> (i32, i32, i32) {
    %c0_i32 = arith.constant 0 : i32
    %c0_i32_0 = arith.constant 0 : i32
    %c0_i32_1 = arith.constant 0 : i32
    %c0_i32_2 = arith.constant 0 : i32
    return %c0_i32, %c0_i32_0, %c0_i32_1 : i32, i32, i32
  }
  func.func @transform_6(%arg0: i32) -> (i32, i32) {
    %c0_i32 = arith.constant 0 : i32
    %c0_i32_0 = arith.constant 0 : i32
    %c0_i32_1 = arith.constant 0 : i32
    return %c0_i32, %c0_i32_0 : i32, i32
  }
  func.func @transform_7(%arg0: i32) -> (i32, i32, i32) {
    %c0_i32 = arith.constant 0 : i32
    %c0_i32_0 = arith.constant 0 : i32
    %c0_i32_1 = arith.constant 0 : i32
    return %arg0, %c0_i32, %c0_i32_0 : i32, i32, i32
  }
}

</mosaic_0001>

<bundles_post_ra>
// kernel: feature_encoder.1
= control target key start
LH: loop header
LB: loop body
LE: loop exit
PB: predicated region body
PF: predicated region fallthrough
CT: control target
= control target key end

     0   :  { %s5192_s0 = inlined_call_operand.vmem [shape: f32[4,16,128], index: 0, kind: input, shape index: {}]   ;;  %s5193_s1 = inlined_call_operand.vmem [shape: f32[16,128], index: 1, kind: input, shape index: {}]   ;;  %s5194_s5 = inlined_call_operand.vmem [shape: bf16[4,128,128], index: 5, kind: input, shape index: {}]   ;;  %s5195_s2 = inlined_call_operand.vmem [shape: f32[4,128], index: 2, kind: input, shape index: {}]   ;;  %s5196_s3 = inlined_call_operand.vmem [shape: f32[4,128], index: 3, kind: input, shape index: {}]   ;;  %s5197_s4 = inlined_call_operand.vmem [shape: f32[4,7,128], index: 4, kind: input, shape index: {}]   ;;  %s5198_s6 = inlined_call_operand.vmem [shape: f32[4,128], index: 6, kind: input, shape index: {}]   ;;  %s5199_s7 = inlined_call_operand.vmem [shape: f32[4,16,128], index: 7, kind: output, shape index: {}]  }
   0x1   :  { %v34_v0 = vld [vmem:[%s5192_s0 + $0x38] sm:$0xff]  ;;  %v36_v1 = vld [vmem:[%s5193_s1 + $0x8] sm:$0xff]  ;;  %v29_v5 = vld [vmem:[%s5192_s0 + $0x10] sm:$0xff] }
   0x2   :  { %v28_v2 = vld [vmem:[%s5192_s0 + $0x8] sm:$0xff]  ;;  %v2870_v3 = vadd.f32 %v36_v1, %v34_v0  ;;  %v35_v6 = vld [vmem:[%s5193_s1] sm:$0xff]  ;;  %v30_v10 = vld [vmem:[%s5192_s0 + $0x18] sm:$0xff] }
   0x3   :  { %v2872_v4 = vadd.f32 %v36_v1, %v28_v2  ;;  %v27_v7 = vld [vmem:[%s5192_s0] sm:$0xff]  ;;  %v2885_v8 = vadd.f32 %v35_v6, %v29_v5  ;;  %v2896_v12 = vadd.f32 %v36_v1, %v30_v10  ;;  %v32_v17 = vld [vmem:[%s5192_s0 + $0x28] sm:$0xff]  ;;  %v33_v21 = vld [vmem:[%s5192_s0 + $0x30] sm:$0xff] }
   0x4   :  { %76 = vadd.xlane.f32.xlu0 %v2870_v3  ;;  %v2887_v9 = vadd.f32 %v35_v6, %v27_v7  ;;  %v93_v11 = vmul.f32 %v2870_v3, %v2870_v3  ;;  %v31_v18 = vld [vmem:[%s5192_s0 + $0x20] sm:$0xff]  ;;  %v2913_v19 = vadd.f32 %v36_v1, %v32_v17  ;;  %v2924_v23 = vadd.f32 %v35_v6, %v33_v21  ;;  %v2726_v27 = vld [vmem:[%s5194_s5 + $0x8] sm:$0xff]   ;;  %v2727_v28 = vld [vmem:[%s5194_s5 + $0x10] sm:$0xff]  }
   0x5   :  { %64 = vadd.xlane.f32.xlu1 %v2872_v4  ;;  %v87_v13 = vmul.f32 %v2872_v4, %v2872_v4  ;;  %v89_v15 = vmul.f32 %v2896_v12, %v2896_v12  ;;  %v88_v16 = vmul.f32 %v2885_v8, %v2885_v8  ;;  %v2915_v20 = vadd.f32 %v35_v6, %v31_v18  ;;  %v2725_v26 = vld [vmem:[%s5194_s5] sm:$0xff]   ;;  %v2728_v29 = vld [vmem:[%s5194_s5 + $0x18] sm:$0xff]   ;;  %v2730_v31 = vld [vmem:[%s5194_s5 + $0x28] sm:$0xff]  }
   0x6   :  { %v86_v14 = vmul.f32 %v2887_v9, %v2887_v9  ;;  %v92_v24 = vmul.f32 %v2924_v23, %v2924_v23  ;;  %v91_v25 = vmul.f32 %v2913_v19, %v2913_v19  ;;  %2629 = vmatprep.subr.bf16.mxu0 %v2725_v26  ;;  %v2729_v30 = vld [vmem:[%s5194_s5 + $0x20] sm:$0xff]   ;;  %v2731_v32 = vld [vmem:[%s5194_s5 + $0x30] sm:$0xff]   ;;  %v2732_v33 = vld [vmem:[%s5194_s5 + $0x38] sm:$0xff]   ;;  %v45_v1 = vlaneseq }
   0x7   :  { %v90_v22 = vmul.f32 %v2915_v20, %v2915_v20  ;;  %2630 = vmatpush3.bf16.msra.mxu0 %v2725_v26 }
   0x8   :  { %62 = vadd.xlane.f32.xlu0 %v2887_v9  ;;  %2631 = vmatprep.subr.bf16.mxu0 %v2726_v27 }
   0x9   :  { %66 = vadd.xlane.f32.xlu1 %v2885_v8 }
   0xb   :  { %2632 = vmatpush3.bf16.msra.mxu0 %v2726_v27 }
   0xc   :  { %68 = vadd.xlane.f32.xlu0 %v2896_v12  ;;  %2633 = vmatprep.subr.bf16.mxu0 %v2727_v28 }
   0xd   :  { %108 = vadd.xlane.f32.xlu1 %v93_v11 }
   0xf   :  { %2634 = vmatpush3.bf16.msra.mxu0 %v2727_v28 }
  0x10   :  { %94 = vadd.xlane.f32.xlu0 %v86_v14  ;;  %2635 = vmatprep.subr.bf16.mxu0 %v2728_v29 }
  0x11   :  { %96 = vadd.xlane.f32.xlu1 %v87_v13 }
  0x13   :  { %2636 = vmatpush3.bf16.msra.mxu0 %v2728_v29 }
  0x14   :  { %98 = vadd.xlane.f32.xlu0 %v88_v16  ;;  %2637 = vmatprep.subr.bf16.mxu0 %v2729_v30  ;;  %v2973_v16 = vshrl.u32 %v45_v1, 7 }
  0x15   :  { %100 = vadd.xlane.f32.xlu1 %v89_v15 }
  0x16   :  { %vm231_vm1 = vcmp.lt.s32.totalorder %v2973_v16, 3  ;;  %vm48_vm2 = vcmp.ge.s32.totalorder %v2973_v16, 3  ;;  %vm281_vm3 = vcmp.lt.s32.totalorder %v2973_v16, 2  ;;  %vm50_vm4 = vcmp.ge.s32.totalorder %v2973_v16, 2 }
  0x17   :  { %2638 = vmatpush3.bf16.msra.mxu0 %v2729_v30  ;;  %v2983_v30 = vadd.s32 8, %v2973_v16  ;;  %vm331_vm5 = vcmp.lt.s32.totalorder %v2973_v16, 1  ;;  %vm52_vm6 = vcmp.ge.s32.totalorder %v2973_v16, 1  ;;  %vm381_vm7 = vcmp.lt.s32.totalorder %v2973_v16, 7 }
  0x18   :  { %70 = vadd.xlane.f32.xlu0 %v2915_v20  ;;  %2639 = vmatprep.subr.bf16.mxu0 %v2730_v31  ;;  %vm431_vm8 = vcmp.lt.s32.totalorder %v2973_v16, 6  ;;  %vm481_vm11 = vcmp.lt.s32.totalorder %v2973_v16, 5  ;;  %v2572_v16 = vld [vmem:[%s5198_s6 + $0x3] ss:$0 sm:$0xff] }
  0x19   :  { %72 = vadd.xlane.f32.xlu1 %v2913_v19  ;;  %vm59_vm0 = vcmp.lt.s32.totalorder %v2983_v30, 13  ;;  %vm55_vm9 = vcmp.lt.s32.totalorder %v2983_v30, 15  ;;  %vm57_vm10 = vcmp.lt.s32.totalorder %v2983_v30, 14 }
  0x1b   :  { %2640 = vmatpush3.bf16.msra.mxu0 %v2730_v31 }
  0x1c   :  { %74 = vadd.xlane.f32.xlu0 %v2924_v23  ;;  %2641 = vmatprep.subr.bf16.mxu0 %v2731_v32 }
  0x1d   :  { %102 = vadd.xlane.f32.xlu1 %v90_v22 }
  0x1f   :  { %2642 = vmatpush3.bf16.msra.mxu0 %v2731_v32  ;;  %v2988_v32 = vld [vmem:[%s5195_s2] ss:$0 sm:$0xff] }
  0x20   :  { %104 = vadd.xlane.f32.xlu0 %v91_v25  ;;  %2643 = vmatprep.subr.bf16.mxu0 %v2732_v33 }
  0x21   :  { %106 = vadd.xlane.f32.xlu1 %v92_v24 }
  0x23   :  { %2644 = vmatpush3.bf16.msra.mxu0 %v2732_v33 }
  0x91   :  { %v77_v34 = vpop.xlane.xlu0 %76 }
  0x92   :  { %v65_v35 = vpop.xlane.xlu1 %64  ;;  %v85_v38 = vmul.f32 0.03125, %v77_v34 }
  0x93   :  { %v2955_v39 = vmul.f32 0.03125, %v65_v35 }
  0x94   :  { %v125_v42 = vmul.f32 %v85_v38, %v85_v38  ;;  %v149_v29 = vsub.f32 %v2870_v3, %v85_v38  ;;  %v2995_v38 = vld [vmem:[%s5196_s3] ss:$0 sm:$0xff] }
  0x95   :  { %v63_v37 = vpop.xlane.xlu0 %62  ;;  %v119_v46 = vmul.f32 %v2955_v39, %v2955_v39 }
  0x96   :  { %v67_v36 = vpop.xlane.xlu1 %66  ;;  %v2957_v43 = vmul.f32 0.03125, %v63_v37 }
  0x97   :  { %v2965_v54 = vmul.f32 0.03125, %v67_v36 }
  0x98   :  { %v118_v50 = vmul.f32 %v2957_v43, %v2957_v43 }
  0x99   :  { %v69_v41 = vpop.xlane.xlu0 %68  ;;  %v120_v0 = vmul.f32 %v2965_v54, %v2965_v54 }
  0x9a   :  { %v109_v40 = vpop.xlane.xlu1 %108  ;;  %v2961_v47 = vmul.f32 0.03125, %v69_v41 }
  0x9b   :  { %v117_v44 = vmul.f32 0.03125, %v109_v40 }
  0x9c   :  { %v121_v58 = vmul.f32 %v2961_v47, %v2961_v47 }
  0x9d   :  { %v133_v45 = vsub.f32 %v117_v44, %v125_v42  ;;  %v95_v49 = vpop.xlane.xlu0 %94 }
  0x9e   :  { %v97_v48 = vpop.xlane.xlu1 %96  ;;  %v110_v53 = vmul.f32 0.03125, %v95_v49  ;;  %v142_v49 = vsub.f32 %v2887_v9, %v2957_v43 }
  0x9f   :  { %v141_v51 = vmax.f32 %v133_v45, 0.0  ;;  %v111_v52 = vmul.f32 0.03125, %v97_v48  ;;  %v143_v45 = vsub.f32 %v2872_v4, %v2955_v39  ;;  %v144_v39 = vsub.f32 %v2885_v8, %v2965_v54 }
  0xa0   :  { %v126_v57 = vsub.f32 %v110_v53, %v118_v50 }
  0xa1   :  { %v157_v55 = vadd.f32 1e-06, %v141_v51  ;;  %v127_v56 = vsub.f32 %v111_v52, %v119_v46  ;;  %v99_v60 = vpop.xlane.xlu0 %98 }
  0xa2   :  { %v101_v59 = vpop.xlane.xlu1 %100  ;;  %v134_v62 = vmax.f32 %v126_v57, 0.0  ;;  %v112_v2 = vmul.f32 0.03125, %v99_v60 }
  0xa3   :  { %2757 = vrsqrt.f32 %v157_v55  ;;  %v135_v61 = vmax.f32 %v127_v56, 0.0  ;;  %v113_v63 = vmul.f32 0.03125, %v101_v59  ;;  %v145_v56 = vsub.f32 %v2896_v12, %v2961_v47 }
  0xa4   :  { %v150_v6 = vadd.f32 1e-06, %v134_v62  ;;  %v128_v10 = vsub.f32 %v112_v2, %v120_v0 }
  0xa5   :  { %v151_v5 = vadd.f32 1e-06, %v135_v61  ;;  %v129_v7 = vsub.f32 %v113_v63, %v121_v58  ;;  %v71_v13 = vpop.xlane.xlu0 %70 }
  0xa6   :  { %v73_v11 = vpop.xlane.xlu1 %72  ;;  %v2971_v15 = vmul.f32 0.03125, %v71_v13  ;;  %v136_v17 = vmax.f32 %v128_v10, 0.0 }
  0xa7   :  { %2759 = vrsqrt.f32 %v151_v5  ;;  %v137_v14 = vmax.f32 %v129_v7, 0.0  ;;  %v2977_v26 = vmul.f32 0.03125, %v73_v11  ;;  %v3031_v5 = vld [vmem:[%s5197_s4 + $0x3] ss:$0 sm:$0xff] }
  0xa8   :  { %2761 = vrsqrt.f32 %v150_v6  ;;  %v122_v21 = vmul.f32 %v2971_v15, %v2971_v15  ;;  %v152_v22 = vadd.f32 1e-06, %v136_v17  ;;  %v146_v47 = vsub.f32 %v2915_v20, %v2971_v15 }
  0xa9   :  { %v153_v18 = vadd.f32 1e-06, %v137_v14  ;;  %v75_v25 = vpop.xlane.xlu0 %74  ;;  %v123_v40 = vmul.f32 %v2977_v26, %v2977_v26  ;;  %v147_v61 = vsub.f32 %v2913_v19, %v2977_v26 }
  0xaa   :  { %v103_v24 = vpop.xlane.xlu1 %102  ;;  %v2979_v28 = vmul.f32 0.03125, %v75_v25 }
  0xab   :  { %2763 = vrsqrt.f32 %v153_v18  ;;  %v114_v27 = vmul.f32 0.03125, %v103_v24 }
  0xac   :  { %2765 = vrsqrt.f32 %v152_v22  ;;  %v124_v34 = vmul.f32 %v2979_v28, %v2979_v28  ;;  %v148_v0 = vsub.f32 %v2924_v23, %v2979_v28 }
  0xad   :  { %v2758_v31 = vpop.eup %2757  ;;  %v130_v33 = vsub.f32 %v114_v27, %v122_v21  ;;  %v105_v37 = vpop.xlane.xlu0 %104 }
  0xae   :  { %v173_v35 = vmul.f32 %v2758_v31, %v149_v29  ;;  %v107_v36 = vpop.xlane.xlu1 %106  ;;  %v115_v44 = vmul.f32 0.03125, %v105_v37  ;;  %v3058_v31 = vld [vmem:[%s5197_s4] ss:$0 sm:$0xff]  ;;  %v3068_v37 = vld [vmem:[%s5197_s4 + $0x1] ss:$0 sm:$0xff] }
  0xaf   :  { %v138_v41 = vmax.f32 %v130_v33, 0.0  ;;  %v116_v42 = vmul.f32 0.03125, %v107_v36 }
  0xb0   :  { %v185_v46 = vmul.f32 %v2988_v32, %v173_v35  ;;  %v131_v52 = vsub.f32 %v115_v44, %v123_v40 }
  0xb1   :  { %v2760_v48 = vpop.eup %2759  ;;  %v154_v50 = vadd.f32 1e-06, %v138_v41  ;;  %v132_v51 = vsub.f32 %v116_v42, %v124_v34 }
  0xb2   :  { %v2762_v53 = vpop.eup %2761  ;;  %v197_v55 = vadd.f32 %v2995_v38, %v185_v46  ;;  %v167_v57 = vmul.f32 %v2760_v48, %v143_v45  ;;  %v139_v59 = vmax.f32 %v131_v52, 0.0 }
  0xb3   :  { %v166_v58 = vmul.f32 %v2762_v53, %v142_v49  ;;  %2767 = vrsqrt.f32 %v154_v50  ;;  %v140_v43 = vmax.f32 %v132_v51, 0.0 }
  0xb4   :  { %v3017_v60 = vsel %vm59_vm0, %v197_v55, 0.0  ;;  %v179_v54 = vmul.f32 %v2988_v32, %v167_v57  ;;  %v155_v2 = vadd.f32 1e-06, %v139_v59  ;;  %v3105_v55 = vld [vmem:[%s5197_s4 + $0x2] ss:$0 sm:$0xff] }
  0xb5   :  { %v2764_v62 = vpop.eup %2763  ;;  %v178_v63 = vmul.f32 %v2988_v32, %v166_v58  ;;  %v156_v1 = vadd.f32 1e-06, %v140_v43  ;;  %v230_v11 = vrot.slane %v3017_v60, 5  ;;  %v280_v13 = vrot.slane %v3017_v60, 6 }
  0xb6   :  { %v2766_v6 = vpop.eup %2765  ;;  %v191_v7 = vadd.f32 %v2995_v38, %v179_v54  ;;  %v169_v10 = vmul.f32 %v2764_v62, %v145_v56  ;;  %v330_v17 = vrot.slane %v3017_v60, 7  ;;  %v3047_v22 = vmul.f32 %v3031_v5, %v3017_v60 }
  0xb7   :  { %v3037_v14 = vadd.f32 %v2995_v38, %v178_v63  ;;  %v168_v15 = vmul.f32 %v2766_v6, %v144_v39  ;;  %2769 = vrsqrt.f32 %v156_v1 }
  0xb8   :  { %v3042_v18 = vsel %vm59_vm0, %v191_v7, 0.0  ;;  %v181_v21 = vmul.f32 %v2988_v32, %v169_v10  ;;  %2771 = vrsqrt.f32 %v155_v2 }
  0xb9   :  { %v180_v24 = vmul.f32 %v2988_v32, %v168_v15  ;;  %v215_v25 = vmul.f32 %v3031_v5, %v3037_v14  ;;  %v216_v27 = vmul.f32 %v3031_v5, %v3042_v18  ;;  %v223_v29 = vrot.slane %v3037_v14, 5 }
  0xba   :  { %v193_v33 = vadd.f32 %v2995_v38, %v181_v21  ;;  %v224_v34 = vrot.slane %v3042_v18, 5  ;;  %v273_v35 = vrot.slane %v3037_v14, 6  ;;  %v274_v36 = vrot.slane %v3042_v18, 6 }
  0xbb   :  { %v3072_v40 = vadd.f32 %v2995_v38, %v180_v24  ;;  %v239_v41 = vsel %vm231_vm1, %v230_v11, %v223_v29  ;;  %v323_v42 = vrot.slane %v3037_v14, 7  ;;  %v324_v44 = vrot.slane %v3042_v18, 7 }
  0xbc   :  { %v3083_v45 = vsel %vm59_vm0, %v193_v33, 0.0  ;;  %v238_v46 = vsel %vm231_vm1, %v223_v29, %v224_v34  ;;  %v244_v48 = vsel %vm48_vm2, %v239_v41, 0.0  ;;  %v288_v49 = vsel %vm281_vm3, %v273_v35, %v274_v36  ;;  %v3137_v33 = vld [vmem:[%s5197_s4 + $0x4] ss:$0 sm:$0xff] }
  0xbd   :  { %v2768_v50 = vpop.eup %2767  ;;  %v257_v51 = vmul.f32 %v3058_v31, %v244_v48  ;;  %v258_v52 = vmul.f32 %v3058_v31, %v238_v46  ;;  %v289_v53 = vsel %vm281_vm3, %v280_v13, %v273_v35  ;;  %v308_v39 = vmul.f32 %v3068_v37, %v288_v49 }
  0xbe   :  { %v170_v56 = vmul.f32 %v2768_v50, %v146_v47  ;;  %v294_v57 = vsel %vm50_vm4, %v289_v53, 0.0  ;;  %v338_v58 = vsel %vm331_vm5, %v323_v42, %v324_v44  ;;  %v339_v43 = vsel %vm331_vm5, %v330_v17, %v323_v42 }
  0xbf   :  { %v265_v59 = vadd.f32 %v257_v51, %v215_v25  ;;  %v266_v54 = vadd.f32 %v258_v52, %v216_v27  ;;  %v307_v62 = vmul.f32 %v3068_v37, %v294_v57  ;;  %v344_v47 = vsel %vm52_vm6, %v339_v43, 0.0 }
  0xc0   :  { %v182_v63 = vmul.f32 %v2988_v32, %v170_v56  ;;  %v357_v1 = vmul.f32 %v3105_v55, %v344_v47  ;;  %v358_v2 = vmul.f32 %v3105_v55, %v338_v58  ;;  %v373_v6 = vrot.slane %v3037_v14, 1 }
  0xc1   :  { %v2770_v7 = vpop.eup %2769  ;;  %v315_v10 = vadd.f32 %v307_v62, %v265_v59  ;;  %v316_v15 = vadd.f32 %v308_v39, %v266_v54  ;;  %v374_v21 = vrot.slane %v3042_v18, 1  ;;  %v375_v24 = vrot.slane %v3072_v40, 1 }
  0xc2   :  { %v2772_v25 = vpop.eup %2771  ;;  %v3129_v27 = vadd.f32 %v2995_v38, %v182_v63  ;;  %v172_v29 = vmul.f32 %v2770_v7, %v148_v0  ;;  %v423_v35 = vrot.slane %v3037_v14, 2  ;;  %v424_v41 = vrot.slane %v3042_v18, 2  ;;  %v3151_v0 = vld [vmem:[%s5197_s4 + $0x5] ss:$0 sm:$0xff] }
  0xc3   :  { %v171_v42 = vmul.f32 %v2772_v25, %v147_v61  ;;  %v365_v46 = vadd.f32 %v357_v1, %v315_v10  ;;  %v366_v48 = vadd.f32 %v358_v2, %v316_v15  ;;  %v387_v28 = vsel %vm381_vm7, %v374_v21, %v375_v24  ;;  %v3186_v2 = vld [vmem:[%s5197_s4 + $0x6] ss:$0 sm:$0xff] }
  0xc4   :  { %v184_v49 = vmul.f32 %v2988_v32, %v172_v29  ;;  %v388_v26 = vsel %vm381_vm7, %v373_v6, %v374_v21  ;;  %v395_v61 = vsel %vm55_vm9, %v387_v28, 0.0  ;;  %v425_v50 = vrot.slane %v3072_v40, 2 }
  0xc5   :  { %v183_v51 = vmul.f32 %v2988_v32, %v171_v42  ;;  %v407_v52 = vmul.f32 %v3137_v33, %v388_v26  ;;  %v408_v53 = vmul.f32 %v3137_v33, %v395_v61  ;;  %v438_v39 = vsel %vm431_vm8, %v423_v35, %v424_v41 }
  0xc6   :  { %v3169_v56 = vadd.f32 %v2995_v38, %v184_v49  ;;  %v437_v57 = vsel %vm431_vm8, %v424_v41, %v425_v50  ;;  %v457_v58 = vmul.f32 %v3151_v0, %v438_v39  ;;  %v473_v32 = vrot.slane %v3037_v14, 3  ;;  %v2449_v14 = vld [vmem:[%s5198_s6] ss:$0 sm:$0xff] }
  0xc7   :  { %v195_v43 = vadd.f32 %v2995_v38, %v183_v51  ;;  %v415_v59 = vadd.f32 %v407_v52, %v365_v46  ;;  %v416_v54 = vadd.f32 %v408_v53, %v366_v48  ;;  %v445_v62 = vsel %vm57_vm10, %v437_v57, 0.0 }
  0xc8   :  { %v458_v47 = vmul.f32 %v3151_v0, %v445_v62  ;;  %v474_v63 = vrot.slane %v3042_v18, 3  ;;  %v475_v1 = vrot.slane %v3072_v40, 3  ;;  %v217_v7 = vmul.f32 %v3031_v5, %v3072_v40 }
  0xc9   :  { %v3192_v38 = vsel %vm59_vm0, %v195_v43, 0.0  ;;  %v465_v10 = vadd.f32 %v457_v58, %v415_v59  ;;  %v218_v15 = vmul.f32 %v3031_v5, %v3083_v45  ;;  %v225_v21 = vrot.slane %v3072_v40, 5 }
  0xca   :  { %v466_v25 = vadd.f32 %v458_v47, %v416_v54  ;;  %v487_v29 = vsel %vm481_vm11, %v474_v63, %v475_v1  ;;  %v488_v41 = vsel %vm481_vm11, %v473_v32, %v474_v63  ;;  %v226_v42 = vrot.slane %v3083_v45, 5 }
  0xcb   :  { %v491_v46 = vsel %vm59_vm0, %v487_v29, 0.0  ;;  %v503_v48 = vmul.f32 %v3186_v2, %v488_v41  ;;  %v237_v28 = vsel %vm231_vm1, %v224_v34, %v225_v21  ;;  %v275_v49 = vrot.slane %v3072_v40, 6 }
  0xcc   :  { %v504_v26 = vmul.f32 %v3186_v2, %v491_v46  ;;  %v236_v61 = vsel %vm231_vm1, %v225_v21, %v226_v42  ;;  %v246_v51 = vsel %vm48_vm2, %v237_v28, 0.0  ;;  %v276_v52 = vrot.slane %v3083_v45, 6 }
  0xcd   :  { %v511_v53 = vadd.f32 %v503_v48, %v465_v10  ;;  %v259_v39 = vmul.f32 %v3058_v31, %v246_v51  ;;  %v260_v57 = vmul.f32 %v3058_v31, %v236_v61  ;;  %v287_v34 = vsel %vm281_vm3, %v274_v36, %v275_v49 }
  0xce   :  { %v512_v58 = vadd.f32 %v504_v26, %v466_v25  ;;  %v286_v43 = vsel %vm281_vm3, %v275_v49, %v276_v52  ;;  %v296_v59 = vsel %vm50_vm4, %v287_v34, 0.0  ;;  %v325_v54 = vrot.slane %v3072_v40, 7 }
  0xcf   :  { %v267_v62 = vadd.f32 %v259_v39, %v217_v7  ;;  %v268_v47 = vadd.f32 %v260_v57, %v218_v15  ;;  %v309_v63 = vmul.f32 %v3068_v37, %v296_v59  ;;  %v310_v10 = vmul.f32 %v3068_v37, %v286_v43 }
  0xd0   :  { %v519_v21 = vpack.c.bf16 %v512_v58, %v511_v53  ;;  %v326_v29 = vrot.slane %v3083_v45, 7  ;;  %v337_v36 = vsel %vm331_vm5, %v324_v44, %v325_v54  ;;  %v376_v25 = vrot.slane %v3083_v45, 1 }
  0xd1   :  { %v317_v41 = vadd.f32 %v309_v63, %v267_v62  ;;  %v318_v46 = vadd.f32 %v310_v10, %v268_v47  ;;  %v346_v7 = vsel %vm52_vm6, %v337_v36, 0.0  ;;  %v377_v15 = vrot.slane %v3129_v27, 1 }
  0xd2   :  { %2645 = vmatprep.mubr.bf16.mxu0 %v519_v21  ;;  %v336_v48 = vsel %vm331_vm5, %v325_v54, %v326_v29  ;;  %v359_v28 = vmul.f32 %v3105_v55, %v346_v7  ;;  %v386_v18 = vsel %vm381_vm7, %v375_v24, %v376_v25  ;;  %v426_v44 = vrot.slane %v3083_v45, 2 }
  0xd3   :  { %v360_v49 = vmul.f32 %v3105_v55, %v336_v48  ;;  %v385_v26 = vsel %vm381_vm7, %v376_v25, %v377_v15  ;;  %v409_v61 = vmul.f32 %v3137_v33, %v386_v18  ;;  %v427_v51 = vrot.slane %v3129_v27, 2 }
  0xd4   :  { %v367_v53 = vadd.f32 %v359_v28, %v317_v41  ;;  %v397_v39 = vsel %vm55_vm9, %v385_v26, 0.0  ;;  %v436_v24 = vsel %vm431_vm8, %v425_v50, %v426_v44  ;;  %v476_v57 = vrot.slane %v3083_v45, 3 }
  0xd5   :  { %v368_v34 = vadd.f32 %v360_v49, %v318_v46  ;;  %v410_v58 = vmul.f32 %v3137_v33, %v397_v39  ;;  %v435_v43 = vsel %vm431_vm8, %v426_v44, %v427_v51  ;;  %v459_v59 = vmul.f32 %v3151_v0, %v436_v24 }
  0xd6   :  { %v417_v54 = vadd.f32 %v409_v61, %v367_v53  ;;  %v447_v62 = vsel %vm57_vm10, %v435_v43, 0.0  ;;  %v477_v40 = vrot.slane %v3129_v27, 3  ;;  %v486_v50 = vsel %vm481_vm11, %v475_v1, %v476_v57 }
  0xd7   :  { %v418_v47 = vadd.f32 %v410_v58, %v368_v34  ;;  %v460_v63 = vmul.f32 %v3151_v0, %v447_v62  ;;  %v505_v10 = vmul.f32 %v3186_v2, %v486_v50  ;;  %v219_v21 = vmul.f32 %v3031_v5, %v3129_v27 }
  0xd8   :  { %v467_v36 = vadd.f32 %v459_v59, %v417_v54  ;;  %v485_v25 = vsel %vm481_vm11, %v476_v57, %v477_v40  ;;  %v220_v41 = vmul.f32 %v3031_v5, %v3192_v38  ;;  %v227_v46 = vrot.slane %v3129_v27, 5 }
  0xd9   :  { %v468_v7 = vadd.f32 %v460_v63, %v418_v47  ;;  %v493_v1 = vsel %vm59_vm0, %v485_v25, 0.0  ;;  %v228_v48 = vrot.slane %v3192_v38, 5  ;;  %v277_v28 = vrot.slane %v3129_v27, 6 }
  0xda   :  { %v506_v18 = vmul.f32 %v3186_v2, %v493_v1  ;;  %v513_v44 = vadd.f32 %v505_v10, %v467_v36  ;;  %v235_v49 = vsel %vm231_vm1, %v226_v42, %v227_v46  ;;  %v278_v26 = vrot.slane %v3192_v38, 6 }
  0xdb   :  { %v234_v61 = vsel %vm231_vm1, %v227_v46, %v228_v48  ;;  %v248_v53 = vsel %vm48_vm2, %v235_v49, 0.0  ;;  %v285_v39 = vsel %vm281_vm3, %v276_v52, %v277_v28  ;;  %v327_v24 = vrot.slane %v3129_v27, 7 }
  0xdc   :  { %v514_v57 = vadd.f32 %v506_v18, %v468_v7  ;;  %v261_v45 = vmul.f32 %v3058_v31, %v248_v53  ;;  %v262_v42 = vmul.f32 %v3058_v31, %v234_v61  ;;  %v284_v34 = vsel %vm281_vm3, %v277_v28, %v278_v26 }
  0xdd   :  { %v298_v58 = vsel %vm50_vm4, %v285_v39, 0.0  ;;  %v312_v43 = vmul.f32 %v3068_v37, %v284_v34  ;;  %v328_v59 = vrot.slane %v3192_v38, 7  ;;  %v335_v52 = vsel %vm331_vm5, %v326_v29, %v327_v24 }
  0xde   :  { %v520_v54 = vpack.c.bf16 %v514_v57, %v513_v44  ;;  %v269_v62 = vadd.f32 %v261_v45, %v219_v21  ;;  %v270_v50 = vadd.f32 %v262_v42, %v220_v41  ;;  %v311_v47 = vmul.f32 %v3068_v37, %v298_v58 }
  0xdf   :  { %v334_v63 = vsel %vm331_vm5, %v327_v24, %v328_v59  ;;  %v348_v10 = vsel %vm52_vm6, %v335_v52, 0.0  ;;  %v378_v36 = vrot.slane %v3192_v38, 1  ;;  %v379_v25 = vrot.slane %v3169_v56, 1 }
  0xe0   :  { %2646 = vmatmul.mubr.bf16.vlgmr.msra.gmra.mrb[0].mxu0 %v520_v54  ;;  %v319_v46 = vadd.f32 %v311_v47, %v269_v62  ;;  %v320_v7 = vadd.f32 %v312_v43, %v270_v50  ;;  %v361_v29 = vmul.f32 %v3105_v55, %v348_v10  ;;  %v362_v21 = vmul.f32 %v3105_v55, %v334_v63 }
  0xe1   :  { %v383_v41 = vsel %vm381_vm7, %v378_v36, %v379_v25  ;;  %v384_v1 = vsel %vm381_vm7, %v377_v15, %v378_v36  ;;  %v428_v28 = vrot.slane %v3192_v38, 2  ;;  %v429_v18 = vrot.slane %v3169_v56, 2 }
  0xe2   :  { %v369_v44 = vadd.f32 %v361_v29, %v319_v46  ;;  %v370_v49 = vadd.f32 %v362_v21, %v320_v7  ;;  %v399_v61 = vsel %vm55_vm9, %v383_v41, 0.0  ;;  %v411_v53 = vmul.f32 %v3137_v33, %v384_v1 }
  0xe3   :  { %v412_v39 = vmul.f32 %v3137_v33, %v399_v61  ;;  %v433_v24 = vsel %vm431_vm8, %v428_v28, %v429_v18  ;;  %v434_v15 = vsel %vm431_vm8, %v427_v51, %v428_v28  ;;  %v478_v57 = vrot.slane %v3192_v38, 3 }
  0xe4   :  { %v419_v45 = vadd.f32 %v411_v53, %v369_v44  ;;  %v449_v42 = vsel %vm57_vm10, %v433_v24, 0.0  ;;  %v461_v34 = vmul.f32 %v3151_v0, %v434_v15  ;;  %v479_v58 = vrot.slane %v3169_v56, 3 }
  0xe5   :  { %v420_v43 = vadd.f32 %v412_v39, %v370_v49  ;;  %v462_v52 = vmul.f32 %v3151_v0, %v449_v42  ;;  %v484_v54 = vsel %vm481_vm11, %v477_v40, %v478_v57  ;;  %v380_v27 = vrot.slane %v3017_v60, 1 }
  0xe6   :  { %v469_v62 = vadd.f32 %v461_v34, %v419_v45  ;;  %v483_v51 = vsel %vm481_vm11, %v478_v57, %v479_v58  ;;  %v221_v50 = vmul.f32 %v3031_v5, %v3169_v56  ;;  %v229_v47 = vrot.slane %v3169_v56, 5 }
  0xe7   :  { %v470_v63 = vadd.f32 %v462_v52, %v420_v43  ;;  %v495_v10 = vsel %vm59_vm0, %v483_v51, 0.0  ;;  %v279_v36 = vrot.slane %v3169_v56, 6  ;;  %v329_v46 = vrot.slane %v3169_v56, 7 }
  0xe8   :  { %v507_v40 = vmul.f32 %v3186_v2, %v484_v54  ;;  %v508_v7 = vmul.f32 %v3186_v2, %v495_v10  ;;  %v232_v29 = vsel %vm231_vm1, %v229_v47, %v230_v11  ;;  %v233_v5 = vsel %vm231_vm1, %v228_v48, %v229_v47 }
  0xe9   :  { %v250_v21 = vsel %vm48_vm2, %v233_v5, 0.0  ;;  %v264_v41 = vmul.f32 %v3058_v31, %v232_v29  ;;  %v282_v56 = vsel %vm281_vm3, %v279_v36, %v280_v13  ;;  %v283_v1 = vsel %vm281_vm3, %v278_v26, %v279_v36 }
  0xea   :  { %v515_v28 = vadd.f32 %v507_v40, %v469_v62  ;;  %v516_v11 = vadd.f32 %v508_v7, %v470_v63  ;;  %v263_v38 = vmul.f32 %v3058_v31, %v250_v21  ;;  %v300_v48 = vsel %vm50_vm4, %v283_v1, 0.0 }
  0xeb   :  { %v272_v44 = vadd.f32 %v264_v41, %v3047_v22  ;;  %v314_v49 = vmul.f32 %v3068_v37, %v282_v56  ;;  %v332_v61 = vsel %vm331_vm5, %v329_v46, %v330_v17  ;;  %v333_v13 = vsel %vm331_vm5, %v328_v59, %v329_v46 }
  0xec   :  { %v521_v26 = vpack.c.bf16 %v516_v11, %v515_v28  ;;  %v271_v53 = vadd.f32 %v263_v38, %v221_v50  ;;  %v313_v39 = vmul.f32 %v3068_v37, %v300_v48  ;;  %v350_v31 = vsel %vm52_vm6, %v333_v13, 0.0 }
  0xed   :  { %v322_v24 = vadd.f32 %v314_v49, %v272_v44  ;;  %v364_v22 = vmul.f32 %v3105_v55, %v332_v61  ;;  %v382_v15 = vsel %vm381_vm7, %v379_v25, %v380_v27  ;;  %v389_v17 = vsel %vm381_vm7, %v380_v27, %v373_v6 }
  0xee   :  { %2649 = vmatprep.mubr.bf16.mxu0 %v521_v26  ;;  %v321_v59 = vadd.f32 %v313_v39, %v271_v53  ;;  %v363_v57 = vmul.f32 %v3105_v55, %v350_v31  ;;  %v401_v37 = vsel %vm55_vm9, %v389_v17, 0.0  ;;  %v430_v45 = vrot.slane %v3017_v60, 2 }
  0xef   :  { %v372_v42 = vadd.f32 %v364_v22, %v322_v24  ;;  %v414_v34 = vmul.f32 %v3137_v33, %v401_v37  ;;  %v480_v43 = vrot.slane %v3017_v60, 3  ;;  %v413_v52 = vmul.f32 %v3137_v33, %v382_v15 }
  0xf0   :  { %v371_v25 = vadd.f32 %v363_v57, %v321_v59  ;;  %v432_v6 = vsel %vm431_vm8, %v429_v18, %v430_v45  ;;  %v439_v55 = vsel %vm431_vm8, %v430_v45, %v423_v35 }
  0xf1   :  { %v422_v54 = vadd.f32 %v414_v34, %v372_v42  ;;  %v451_v27 = vsel %vm57_vm10, %v439_v55, 0.0  ;;  %v482_v62 = vsel %vm481_vm11, %v479_v58, %v480_v43  ;;  %v463_v60 = vmul.f32 %v3151_v0, %v432_v6  ;;  %v2737_v6 = vld [vmem:[%s5194_s5 + $0x60] sm:$0xff]   ;;  %v2738_v55 = vld [vmem:[%s5194_s5 + $0x68] sm:$0xff]  }
  0xf2   :  { %v421_v51 = vadd.f32 %v413_v52, %v371_v25  ;;  %v464_v33 = vmul.f32 %v3151_v0, %v451_v27  ;;  %v489_v18 = vsel %vm481_vm11, %v480_v43, %v473_v32  ;;  %v509_v63 = vmul.f32 %v3186_v2, %v482_v62  ;;  %v2734_v43 = vld [vmem:[%s5194_s5 + $0x48] sm:$0xff]   ;;  %v2735_v25 = vld [vmem:[%s5194_s5 + $0x50] sm:$0xff]   ;;  %v2736_v52 = vld [vmem:[%s5194_s5 + $0x58] sm:$0xff]  }
  0xf3   :  { %v497_v35 = vsel %vm59_vm0, %v489_v18, 0.0  ;;  %v2740_v27 = vld [vmem:[%s5194_s5 + $0x78] sm:$0xff]  }
  0xf4   :  { %v471_v50 = vadd.f32 %v463_v60, %v421_v51  ;;  %v472_v47 = vadd.f32 %v464_v33, %v422_v54  ;;  %v510_v10 = vmul.f32 %v3186_v2, %v497_v35  ;;  %v2739_v54 = vld [vmem:[%s5194_s5 + $0x70] sm:$0xff]  }
  0xf6   :  { %v517_v58 = vadd.f32 %v509_v63, %v471_v50  ;;  %v518_v36 = vadd.f32 %v510_v10, %v472_v47 }
  0xf8   :  { %v522_v46 = vpack.c.bf16 %v518_v36, %v517_v58 }
  0xfa   :  { %2650 = vmatmul.mubr.bf16.gmra.mrb[4].mxu0 %v522_v46 }
 0x1b3   :  { %v2647_v0 = vpop.f32.mrb[0].mxu0 }
 0x1b4   :  { %v635_v40 = vadd.f32 %v2647_v0, %v2449_v14  ;;  %v626_v32 = vpop.f32.mrb[1].mxu0 }
 0x1b5   :  { %v627_v7 = vadd.f32 %v2449_v14, %v626_v32  ;;  %v2648_v29 = vpop.f32.mrb[2].mxu0 }
 0x1b6   :  { %v659_v5 = vmax.f32 %v635_v40, 0.0  ;;  %v638_v21 = vadd.f32 %v2648_v29, %v2449_v14  ;;  %v629_v41 = vpop.f32.mrb[3].mxu0 }
 0x1b7   :  { %v657_v2 = vmax.f32 %v627_v7, 0.0  ;;  %v630_v28 = vadd.f32 %v2449_v14, %v629_v41 }
 0x1b8   :  { %v3429_v56 = vadd.f32 %v659_v5, %v2885_v8  ;;  %v660_v1 = vmax.f32 %v638_v21, 0.0 }
 0x1b9   :  { %v3436_v38 = vadd.f32 %v657_v2, %v2887_v9  ;;  %v658_v48 = vmax.f32 %v630_v28, 0.0 }
 0x1ba   :  { %v3432_v11 = vadd.f32 %v660_v1, %v2896_v12  ;;  %679 = vadd.xlane.f32.xlu1 %v3429_v56  ;;  %v701_v8 = vmul.f32 %v3429_v56, %v3429_v56 }
 0x1bb   :  { %v3443_v44 = vadd.f32 %v658_v48, %v2872_v4  ;;  %v699_v49 = vmul.f32 %v3436_v38, %v3436_v38 }
 0x1bc   :  { %681 = vadd.xlane.f32.xlu0 %v3432_v11  ;;  %v702_v12 = vmul.f32 %v3432_v11, %v3432_v11 }
 0x1bd   :  { %v700_v9 = vmul.f32 %v3443_v44, %v3443_v44 }
 0x1be   :  { %675 = vadd.xlane.f32.xlu1 %v3436_v38 }
 0x1c0   :  { %711 = vadd.xlane.f32.xlu0 %v701_v8 }
 0x1c2   :  { %713 = vadd.xlane.f32.xlu1 %v702_v12 }
 0x1c4   :  { %677 = vadd.xlane.f32.xlu0 %v3443_v44 }
 0x1c6   :  { %709 = vadd.xlane.f32.xlu1 %v700_v9 }
 0x1c8   :  { %707 = vadd.xlane.f32.xlu0 %v699_v49 }
 0x1cd   :  { %v2651_v61 = vpop.f32.mrb[4].mxu0 }
 0x1ce   :  { %v642_v13 = vpop.f32.mrb[5].mxu0  ;;  %v651_v22 = vadd.f32 %v2651_v61, %v2449_v14 }
 0x1cf   :  { %v2652_v26 = vpop.f32.mrb[6].mxu0  ;;  %v643_v4 = vadd.f32 %v2449_v14, %v642_v13 }
 0x1d0   :  { %v654_v53 = vadd.f32 %v2652_v26, %v2449_v14  ;;  %v645_v39 = vpop.f32.mrb[7].mxu0  ;;  %v663_v37 = vmax.f32 %v651_v22, 0.0  ;;  %v3510_v22 = vld [vmem:[%s5196_s3 + $0x1] ss:$0 sm:$0xff] }
 0x1d1   :  { %v646_v24 = vadd.f32 %v2449_v14, %v645_v39  ;;  %v661_v15 = vmax.f32 %v643_v4, 0.0 }
 0x1d2   :  { %v664_v31 = vmax.f32 %v654_v53, 0.0  ;;  %v3466_v34 = vadd.f32 %v663_v37, %v2924_v23  ;;  %v2733_v23 = vld [vmem:[%s5194_s5 + $0x40] sm:$0xff]  }
 0x1d3   :  { %v662_v59 = vmax.f32 %v646_v24, 0.0  ;;  %v3459_v45 = vadd.f32 %v661_v15, %v2915_v20  ;;  %2653 = vmatprep.subr.bf16.mxu1 %v2733_v23  ;;  %v3504_v53 = vld [vmem:[%s5195_s2 + $0x1] ss:$0 sm:$0xff] }
 0x1d4   :  { %v3453_v17 = vadd.f32 %v664_v31, %v2870_v3  ;;  %2654 = vmatpush3.bf16.msra.mxu1 %v2733_v23 }
 0x1d5   :  { %v3462_v42 = vadd.f32 %v662_v59, %v2913_v19  ;;  %v703_v3 = vmul.f32 %v3459_v45, %v3459_v45  ;;  %v705_v19 = vmul.f32 %v3466_v34, %v3466_v34  ;;  %2655 = vmatprep.subr.bf16.mxu1 %v2734_v43 }
 0x1d6   :  { %v706_v57 = vmul.f32 %v3453_v17, %v3453_v17  ;;  %689 = vadd.xlane.f32.xlu0 %v3453_v17 }
 0x1d7   :  { %v704_v20 = vmul.f32 %v3462_v42, %v3462_v42 }
 0x1d8   :  { %721 = vadd.xlane.f32.xlu1 %v706_v57  ;;  %2656 = vmatpush3.bf16.msra.mxu1 %v2734_v43  ;;  %v3523_v43 = vld [vmem:[%s5197_s4 + $0xb] ss:$0 sm:$0xff] }
 0x1d9   :  { %2657 = vmatprep.subr.bf16.mxu1 %v2735_v25 }
 0x1da   :  { %683 = vadd.xlane.f32.xlu0 %v3459_v45 }
 0x1dc   :  { %685 = vadd.xlane.f32.xlu1 %v3462_v42  ;;  %2658 = vmatpush3.bf16.msra.mxu1 %v2735_v25 }
 0x1dd   :  { %2659 = vmatprep.subr.bf16.mxu1 %v2736_v52 }
 0x1de   :  { %687 = vadd.xlane.f32.xlu0 %v3466_v34 }
 0x1e0   :  { %715 = vadd.xlane.f32.xlu1 %v703_v3  ;;  %2660 = vmatpush3.bf16.msra.mxu1 %v2736_v52 }
 0x1e1   :  { %2661 = vmatprep.subr.bf16.mxu1 %v2737_v6 }
 0x1e2   :  { %717 = vadd.xlane.f32.xlu0 %v704_v20 }
 0x1e4   :  { %719 = vadd.xlane.f32.xlu1 %v705_v19  ;;  %2662 = vmatpush3.bf16.msra.mxu1 %v2737_v6 }
 0x1e5   :  { %2663 = vmatprep.subr.bf16.mxu1 %v2738_v55 }
 0x1e8   :  { %2664 = vmatpush3.bf16.msra.mxu1 %v2738_v55 }
 0x1e9   :  { %2665 = vmatprep.subr.bf16.mxu1 %v2739_v54 }
 0x1ec   :  { %2666 = vmatpush3.bf16.msra.mxu1 %v2739_v54 }
 0x1ed   :  { %2667 = vmatprep.subr.bf16.mxu1 %v2740_v27 }
 0x1f0   :  { %2668 = vmatpush3.bf16.msra.mxu1 %v2740_v27 }
 0x247   :  { %v680_v62 = vpop.xlane.xlu1 %679 }
 0x248   :  { %v693_v60 = vmul.f32 0.03125, %v680_v62 }
 0x249   :  { %v682_v51 = vpop.xlane.xlu0 %681 }
 0x24a   :  { %v694_v18 = vmul.f32 0.03125, %v682_v51  ;;  %v733_v50 = vmul.f32 %v693_v60, %v693_v60  ;;  %v757_v26 = vsub.f32 %v3429_v56, %v693_v60 }
 0x24b   :  { %v676_v33 = vpop.xlane.xlu1 %675 }
 0x24c   :  { %v734_v10 = vmul.f32 %v694_v18, %v694_v18  ;;  %v691_v14 = vmul.f32 0.03125, %v676_v33  ;;  %v758_v39 = vsub.f32 %v3432_v11, %v694_v18 }
 0x24d   :  { %v712_v35 = vpop.xlane.xlu0 %711 }
 0x24e   :  { %v725_v47 = vmul.f32 0.03125, %v712_v35  ;;  %v731_v1 = vmul.f32 %v691_v14, %v691_v14  ;;  %v755_v3 = vsub.f32 %v3436_v38, %v691_v14 }
 0x24f   :  { %v714_v63 = vpop.xlane.xlu1 %713 }
 0x250   :  { %v741_v58 = vsub.f32 %v725_v47, %v733_v50  ;;  %v726_v36 = vmul.f32 0.03125, %v714_v63 }
 0x251   :  { %v678_v46 = vpop.xlane.xlu0 %677 }
 0x252   :  { %v749_v0 = vmax.f32 %v741_v58, 0.0  ;;  %v742_v40 = vsub.f32 %v726_v36, %v734_v10  ;;  %v692_v32 = vmul.f32 0.03125, %v678_v46 }
 0x253   :  { %v710_v7 = vpop.xlane.xlu1 %709 }
 0x254   :  { %v765_v29 = vadd.f32 1e-06, %v749_v0  ;;  %v750_v5 = vmax.f32 %v742_v40, 0.0  ;;  %v732_v21 = vmul.f32 %v692_v32, %v692_v32  ;;  %v724_v41 = vmul.f32 0.03125, %v710_v7 }
 0x255   :  { %v708_v2 = vpop.xlane.xlu0 %707  ;;  %v756_v25 = vsub.f32 %v3443_v44, %v692_v32 }
 0x256   :  { %2773 = vrsqrt.f32 %v765_v29  ;;  %v766_v28 = vadd.f32 1e-06, %v750_v5  ;;  %v723_v48 = vmul.f32 0.03125, %v708_v2  ;;  %v740_v8 = vsub.f32 %v724_v41, %v732_v21  ;;  %v3557_v41 = vld [vmem:[%s5197_s4 + $0x8] ss:$0 sm:$0xff] }
 0x258   :  { %2775 = vrsqrt.f32 %v766_v28  ;;  %v739_v12 = vsub.f32 %v723_v48, %v731_v1  ;;  %v748_v9 = vmax.f32 %v740_v8, 0.0 }
 0x25a   :  { %v747_v49 = vmax.f32 %v739_v12, 0.0  ;;  %v764_v61 = vadd.f32 1e-06, %v748_v9 }
 0x25c   :  { %v763_v13 = vadd.f32 1e-06, %v747_v49  ;;  %2777 = vrsqrt.f32 %v764_v61 }
 0x25e   :  { %2779 = vrsqrt.f32 %v763_v13 }
 0x260   :  { %v2774_v4 = vpop.eup %2773 }
 0x261   :  { %v781_v31 = vmul.f32 %v2774_v4, %v757_v26 }
 0x262   :  { %v2776_v24 = vpop.eup %2775 }
 0x263   :  { %v793_v15 = vmul.f32 %v3504_v53, %v781_v31  ;;  %v782_v59 = vmul.f32 %v2776_v24, %v758_v39  ;;  %v690_v57 = vpop.xlane.xlu0 %689 }
 0x264   :  { %v3513_v37 = vmul.f32 0.03125, %v690_v57 }
 0x265   :  { %v3517_v20 = vadd.f32 %v3510_v22, %v793_v15  ;;  %v794_v19 = vmul.f32 %v3504_v53, %v782_v59  ;;  %v722_v23 = vpop.xlane.xlu1 %721 }
 0x266   :  { %v730_v52 = vmul.f32 0.03125, %v722_v23  ;;  %v738_v6 = vmul.f32 %v3513_v37, %v3513_v37  ;;  %v762_v55 = vsub.f32 %v3453_v17, %v3513_v37  ;;  %v2778_v54 = vpop.eup %2777  ;;  %v3671_v37 = vld [vmem:[%s5197_s4 + $0xd] ss:$0 sm:$0xff] }
 0x267   :  { %v806_v27 = vadd.f32 %v3510_v22, %v794_v19  ;;  %v684_v62 = vpop.xlane.xlu0 %683  ;;  %v970_v51 = vrot.slane %v3517_v20, 1  ;;  %v1015_v60 = vrot.slane %v3517_v20, 2  ;;  %v1060_v33 = vrot.slane %v3517_v20, 3 }
 0x268   :  { %v2780_v18 = vpop.eup %2779  ;;  %v780_v35 = vmul.f32 %v2778_v54, %v756_v25  ;;  %v746_v50 = vsub.f32 %v730_v52, %v738_v6  ;;  %v3534_v47 = vmul.f32 0.03125, %v684_v62  ;;  %v3538_v63 = vmul.f32 %v3523_v43, %v3517_v20 }
 0x269   :  { %v3542_v10 = vsel %vm59_vm0, %v806_v27, 0.0  ;;  %v779_v58 = vmul.f32 %v2780_v18, %v755_v3  ;;  %v686_v36 = vpop.xlane.xlu1 %685  ;;  %v835_v46 = vrot.slane %v3517_v20, 5  ;;  %v880_v14 = vrot.slane %v3517_v20, 6 }
 0x26a   :  { %v792_v0 = vmul.f32 %v3504_v53, %v780_v35  ;;  %v754_v40 = vmax.f32 %v746_v50, 0.0  ;;  %v3547_v32 = vmul.f32 0.03125, %v686_v36  ;;  %v735_v7 = vmul.f32 %v3534_v47, %v3534_v47 }
 0x26b   :  { %v791_v29 = vmul.f32 %v3504_v53, %v779_v58  ;;  %v759_v5 = vsub.f32 %v3459_v45, %v3534_v47  ;;  %v688_v21 = vpop.xlane.xlu0 %687  ;;  %v3561_v2 = vmul.f32 %v3523_v43, %v3542_v10  ;;  %v836_v1 = vrot.slane %v3542_v10, 5 }
 0x26c   :  { %v804_v28 = vadd.f32 %v3510_v22, %v792_v0  ;;  %v770_v48 = vadd.f32 1e-06, %v754_v40  ;;  %v736_v8 = vmul.f32 %v3547_v32, %v3547_v32  ;;  %v760_v12 = vsub.f32 %v3462_v42, %v3547_v32 }
 0x26d   :  { %v3570_v9 = vadd.f32 %v3510_v22, %v791_v29  ;;  %v716_v49 = vpop.xlane.xlu1 %715  ;;  %v3572_v61 = vmul.f32 0.03125, %v688_v21  ;;  %v845_v13 = vsel %vm231_vm1, %v835_v46, %v836_v1  ;;  %v881_v26 = vrot.slane %v3542_v10, 6 }
 0x26e   :  { %v3583_v4 = vsel %vm59_vm0, %v804_v28, 0.0  ;;  %2781 = vrsqrt.f32 %v770_v48  ;;  %v727_v39 = vmul.f32 0.03125, %v716_v49  ;;  %v3586_v31 = vmul.f32 %v3557_v41, %v845_v13  ;;  %v3629_v13 = vld [vmem:[%s5197_s4 + $0xa] ss:$0 sm:$0xff] }
 0x26f   :  { %v737_v24 = vmul.f32 %v3572_v61, %v3572_v61  ;;  %v761_v15 = vsub.f32 %v3466_v34, %v3572_v61  ;;  %v718_v59 = vpop.xlane.xlu0 %717  ;;  %v3594_v57 = vmul.f32 %v3523_v43, %v3570_v9  ;;  %v826_v3 = vmul.f32 %v3523_v43, %v3583_v4 }
 0x270   :  { %v743_v19 = vsub.f32 %v727_v39, %v735_v7  ;;  %v728_v23 = vmul.f32 0.03125, %v718_v59  ;;  %v833_v25 = vrot.slane %v3570_v9, 5  ;;  %v834_v52 = vrot.slane %v3583_v4, 5  ;;  %v3616_v7 = vld [vmem:[%s5197_s4 + $0x9] ss:$0 sm:$0xff] }
 0x271   :  { %v720_v6 = vpop.xlane.xlu1 %719  ;;  %v878_v54 = vrot.slane %v3570_v9, 6  ;;  %v879_v27 = vrot.slane %v3583_v4, 6  ;;  %v923_v62 = vrot.slane %v3570_v9, 7  ;;  %v924_v18 = vrot.slane %v3583_v4, 7 }
 0x272   :  { %v751_v35 = vmax.f32 %v743_v19, 0.0  ;;  %v729_v50 = vmul.f32 0.03125, %v720_v6  ;;  %v744_v58 = vsub.f32 %v728_v23, %v736_v8  ;;  %v847_v36 = vsel %vm231_vm1, %v833_v25, %v834_v52 }
 0x273   :  { %v863_v0 = vmul.f32 %v3557_v41, %v847_v36  ;;  %v892_v40 = vsel %vm281_vm3, %v878_v54, %v879_v27  ;;  %v937_v29 = vsel %vm331_vm5, %v923_v62, %v924_v18  ;;  %v968_v21 = vrot.slane %v3570_v9, 1 }
 0x274   :  { %v767_v28 = vadd.f32 1e-06, %v751_v35  ;;  %v745_v48 = vsub.f32 %v729_v50, %v737_v24  ;;  %v752_v8 = vmax.f32 %v744_v58, 0.0  ;;  %v908_v49 = vmul.f32 %v3616_v7, %v892_v40  ;;  %v3646_v58 = vld [vmem:[%s5197_s4 + $0xc] ss:$0 sm:$0xff] }
 0x275   :  { %v871_v39 = vadd.f32 %v863_v0, %v826_v3  ;;  %v953_v59 = vmul.f32 %v3629_v13, %v937_v29  ;;  %v969_v19 = vrot.slane %v3583_v4, 1  ;;  %v1013_v23 = vrot.slane %v3570_v9, 2 }
 0x276   :  { %2783 = vrsqrt.f32 %v767_v28  ;;  %v753_v6 = vmax.f32 %v745_v48, 0.0  ;;  %v768_v36 = vadd.f32 1e-06, %v752_v8  ;;  %v1014_v24 = vrot.slane %v3583_v4, 2 }
 0x277   :  { %v916_v35 = vadd.f32 %v908_v49, %v871_v39  ;;  %v981_v50 = vsel %vm381_vm7, %v969_v19, %v970_v51  ;;  %v982_v3 = vsel %vm381_vm7, %v968_v21, %v969_v19  ;;  %v1058_v0 = vrot.slane %v3570_v9, 3  ;;  %v2490_v9 = vld [vmem:[%s5198_s6 + $0x1] ss:$0 sm:$0xff] }
 0x278   :  { %v2782_v40 = vpop.eup %2781  ;;  %v769_v29 = vadd.f32 1e-06, %v753_v6  ;;  %2785 = vrsqrt.f32 %v768_v36  ;;  %v985_v28 = vsel %vm55_vm9, %v981_v50, 0.0  ;;  %v3652_v48 = vmul.f32 %v3646_v58, %v982_v3 }
 0x279   :  { %v786_v8 = vmul.f32 %v2782_v40, %v762_v55  ;;  %v961_v49 = vadd.f32 %v953_v59, %v916_v35  ;;  %v998_v39 = vmul.f32 %v3646_v58, %v985_v28  ;;  %v1026_v19 = vsel %vm431_vm8, %v1014_v24, %v1015_v60 }
 0x27a   :  { %2787 = vrsqrt.f32 %v769_v29  ;;  %v1027_v6 = vsel %vm431_vm8, %v1013_v23, %v1014_v24  ;;  %v1030_v36 = vsel %vm57_vm10, %v1026_v19, 0.0  ;;  %v1059_v55 = vrot.slane %v3583_v4, 3  ;;  %v3690_v29 = vld [vmem:[%s5197_s4 + $0xe] ss:$0 sm:$0xff] }
 0x27b   :  { %v798_v59 = vmul.f32 %v3504_v53, %v786_v8  ;;  %v1006_v35 = vadd.f32 %v998_v39, %v961_v49  ;;  %v3676_v50 = vmul.f32 %v3671_v37, %v1027_v6  ;;  %v1043_v3 = vmul.f32 %v3671_v37, %v1030_v36 }
 0x27c   :  { %v1071_v24 = vsel %vm481_vm11, %v1059_v55, %v1060_v33  ;;  %v1072_v40 = vsel %vm481_vm11, %v1058_v0, %v1059_v55  ;;  %v846_v28 = vsel %vm231_vm1, %v834_v52, %v835_v46  ;;  %v873_v8 = vadd.f32 %v3586_v31, %v3561_v2 }
 0x27d   :  { %v810_v49 = vadd.f32 %v3510_v22, %v798_v59  ;;  %v1051_v39 = vadd.f32 %v1043_v3, %v1006_v35  ;;  %v1075_v19 = vsel %vm59_vm0, %v1071_v24, 0.0  ;;  %v3702_v6 = vmul.f32 %v3690_v29, %v1072_v40 }
 0x27e   :  { %v1088_v36 = vmul.f32 %v3690_v29, %v1075_v19  ;;  %v851_v55 = vsel %vm48_vm2, %v846_v28, 0.0  ;;  %v890_v46 = vsel %vm281_vm3, %v880_v14, %v881_v26  ;;  %v891_v2 = vsel %vm281_vm3, %v879_v27, %v880_v14 }
 0x27f   :  { %v3719_v31 = vsel %vm59_vm0, %v810_v49, 0.0  ;;  %v864_v52 = vmul.f32 %v3557_v41, %v851_v55  ;;  %v896_v59 = vsel %vm50_vm4, %v891_v2, 0.0  ;;  %v910_v35 = vmul.f32 %v3616_v7, %v890_v46 }
 0x280   :  { %v2784_v3 = vpop.eup %2783  ;;  %v840_v24 = vrot.slane %v3719_v31, 5  ;;  %v885_v40 = vrot.slane %v3719_v31, 6  ;;  %v930_v28 = vrot.slane %v3719_v31, 7  ;;  %v3728_v19 = vadd.f32 %v1088_v36, %v1051_v39 }
 0x281   :  { %v783_v14 = vmul.f32 %v2784_v3, %v759_v5  ;;  %v872_v27 = vadd.f32 %v864_v52, %v3538_v63  ;;  %v909_v49 = vmul.f32 %v3616_v7, %v896_v59  ;;  %v918_v55 = vadd.f32 %v910_v35, %v873_v8 }
 0x282   :  { %v2786_v2 = vpop.eup %2785  ;;  %v848_v46 = vsel %vm231_vm1, %v840_v24, %v833_v25  ;;  %v893_v47 = vsel %vm281_vm3, %v885_v40, %v878_v54  ;;  %v938_v63 = vsel %vm331_vm5, %v930_v28, %v923_v62  ;;  %v925_v5 = vrot.slane %v3517_v20, 7 }
 0x283   :  { %v795_v8 = vmul.f32 %v3504_v53, %v783_v14  ;;  %v784_v25 = vmul.f32 %v2786_v2, %v760_v12  ;;  %v849_v39 = vsel %vm48_vm2, %v848_v46, 0.0  ;;  %v894_v54 = vsel %vm50_vm4, %v893_v47, 0.0 }
 0x284   :  { %v2788_v36 = vpop.eup %2787  ;;  %v862_v52 = vmul.f32 %v3557_v41, %v849_v39  ;;  %v907_v59 = vmul.f32 %v3616_v7, %v894_v54  ;;  %v939_v62 = vsel %vm52_vm6, %v938_v63, 0.0  ;;  %v917_v35 = vadd.f32 %v909_v49, %v872_v27 }
 0x285   :  { %v3767_v3 = vadd.f32 %v3510_v22, %v795_v8  ;;  %v785_v32 = vmul.f32 %v2788_v36, %v761_v15  ;;  %v796_v12 = vmul.f32 %v3504_v53, %v784_v25  ;;  %v952_v14 = vmul.f32 %v3629_v13, %v939_v62 }
 0x286   :  { %v870_v2 = vadd.f32 %v862_v52, %v3594_v57  ;;  %v926_v46 = vrot.slane %v3542_v10, 7  ;;  %v936_v27 = vsel %vm331_vm5, %v924_v18, %v925_v5  ;;  %v971_v49 = vrot.slane %v3542_v10, 1 }
 0x287   :  { %v797_v47 = vmul.f32 %v3504_v53, %v785_v32  ;;  %v808_v61 = vadd.f32 %v3510_v22, %v796_v12  ;;  %v941_v15 = vsel %vm52_vm6, %v936_v27, 0.0  ;;  %v972_v63 = vrot.slane %v3767_v3, 1 }
 0x288   :  { %v915_v8 = vadd.f32 %v907_v59, %v870_v2  ;;  %v935_v4 = vsel %vm331_vm5, %v925_v5, %v926_v46  ;;  %v954_v57 = vmul.f32 %v3629_v13, %v941_v15  ;;  %v980_v53 = vsel %vm381_vm7, %v970_v51, %v971_v49 }
 0x289   :  { %v3796_v18 = vadd.f32 %v3510_v22, %v797_v47  ;;  %v3800_v25 = vsel %vm59_vm0, %v808_v61, 0.0  ;;  %v955_v39 = vmul.f32 %v3629_v13, %v935_v4  ;;  %v979_v5 = vsel %vm381_vm7, %v971_v49, %v972_v63 }
 0x28a   :  { %v960_v54 = vadd.f32 %v952_v14, %v915_v8  ;;  %v962_v36 = vadd.f32 %v954_v57, %v917_v35  ;;  %v987_v52 = vsel %vm55_vm9, %v979_v5, 0.0  ;;  %v999_v51 = vmul.f32 %v3646_v58, %v980_v53 }
 0x28b   :  { %v963_v22 = vadd.f32 %v955_v39, %v918_v55  ;;  %v1000_v59 = vmul.f32 %v3646_v58, %v987_v52  ;;  %v1016_v62 = vrot.slane %v3542_v10, 2  ;;  %v1017_v32 = vrot.slane %v3767_v3, 2 }
 0x28c   :  { %v1005_v12 = vadd.f32 %v3652_v48, %v960_v54  ;;  %v1007_v2 = vadd.f32 %v999_v51, %v962_v36  ;;  %v1061_v27 = vrot.slane %v3542_v10, 3  ;;  %v1062_v14 = vrot.slane %v3767_v3, 3 }
 0x28d   :  { %v1008_v35 = vadd.f32 %v1000_v59, %v963_v22  ;;  %v1024_v49 = vsel %vm431_vm8, %v1016_v62, %v1017_v32  ;;  %v1025_v55 = vsel %vm431_vm8, %v1015_v60, %v1016_v62  ;;  %v829_v47 = vmul.f32 %v3523_v43, %v3767_v3 }
 0x28e   :  { %v1050_v61 = vadd.f32 %v3676_v50, %v1005_v12  ;;  %v1032_v48 = vsel %vm57_vm10, %v1024_v49, 0.0  ;;  %v1044_v15 = vmul.f32 %v3671_v37, %v1025_v55  ;;  %v1069_v8 = vsel %vm481_vm11, %v1061_v27, %v1062_v14 }
 0x28f   :  { %v1045_v4 = vmul.f32 %v3671_v37, %v1032_v48  ;;  %v1070_v60 = vsel %vm481_vm11, %v1060_v33, %v1061_v27  ;;  %v1077_v50 = vsel %vm59_vm0, %v1069_v8, 0.0  ;;  %v830_v57 = vmul.f32 %v3523_v43, %v3800_v25 }
 0x290   :  { %v1095_v53 = vadd.f32 %v3702_v6, %v1050_v61  ;;  %v1052_v39 = vadd.f32 %v1044_v15, %v1007_v2  ;;  %v1089_v5 = vmul.f32 %v3690_v29, %v1070_v60  ;;  %v1090_v54 = vmul.f32 %v3690_v29, %v1077_v50 }
 0x291   :  { %v1053_v36 = vadd.f32 %v1045_v4, %v1008_v35  ;;  %v837_v52 = vrot.slane %v3767_v3, 5  ;;  %v838_v20 = vrot.slane %v3800_v25, 5  ;;  %v882_v33 = vrot.slane %v3767_v3, 6 }
 0x292   :  { %v1103_v51 = vpack.c.bf16 %v3728_v19, %v1095_v53  ;;  %v1097_v22 = vadd.f32 %v1089_v5, %v1052_v39  ;;  %v883_v59 = vrot.slane %v3800_v25, 6  ;;  %v927_v62 = vrot.slane %v3767_v3, 7 }
 0x293   :  { %v1098_v6 = vadd.f32 %v1090_v54, %v1053_v36  ;;  %v843_v12 = vsel %vm231_vm1, %v837_v52, %v838_v20  ;;  %v844_v2 = vsel %vm231_vm1, %v836_v1, %v837_v52  ;;  %v889_v19 = vsel %vm281_vm3, %v881_v26, %v882_v33 }
 0x294   :  { %2669 = vmatprep.mubr.bf16.mxu1 %v1103_v51  ;;  %v853_v27 = vsel %vm48_vm2, %v844_v2, 0.0  ;;  %v867_v35 = vmul.f32 %v3557_v41, %v843_v12  ;;  %v888_v49 = vsel %vm281_vm3, %v882_v33, %v883_v59  ;;  %v898_v55 = vsel %vm50_vm4, %v889_v19, 0.0 }
 0x295   :  { %v1104_v1 = vpack.c.bf16 %v1098_v6, %v1097_v22  ;;  %v866_v61 = vmul.f32 %v3557_v41, %v853_v27  ;;  %v911_v48 = vmul.f32 %v3616_v7, %v898_v55  ;;  %v912_v26 = vmul.f32 %v3616_v7, %v888_v49 }
 0x296   :  { %v875_v15 = vadd.f32 %v867_v35, %v830_v57  ;;  %v928_v8 = vrot.slane %v3800_v25, 7  ;;  %v934_v4 = vsel %vm331_vm5, %v926_v46, %v927_v62  ;;  %v973_v60 = vrot.slane %v3800_v25, 1 }
 0x297   :  { %2670 = vmatmul.mubr.bf16.vlgmr.msra.gmra.mrb[0].mxu1 %v1104_v1  ;;  %v874_v50 = vadd.f32 %v866_v61, %v829_v47  ;;  %v943_v53 = vsel %vm52_vm6, %v934_v4, 0.0  ;;  %v974_v39 = vrot.slane %v3796_v18, 1  ;;  %v1018_v5 = vrot.slane %v3800_v25, 2 }
 0x298   :  { %v920_v54 = vadd.f32 %v912_v26, %v875_v15  ;;  %v933_v57 = vsel %vm331_vm5, %v927_v62, %v928_v8  ;;  %v956_v10 = vmul.f32 %v3629_v13, %v943_v53  ;;  %v978_v46 = vsel %vm381_vm7, %v972_v63, %v973_v60 }
 0x299   :  { %v919_v36 = vadd.f32 %v911_v48, %v874_v50  ;;  %v957_v47 = vmul.f32 %v3629_v13, %v933_v57  ;;  %v977_v52 = vsel %vm381_vm7, %v973_v60, %v974_v39  ;;  %v1001_v33 = vmul.f32 %v3646_v58, %v978_v46 }
 0x29a   :  { %v989_v51 = vsel %vm55_vm9, %v977_v52, 0.0  ;;  %v1019_v22 = vrot.slane %v3796_v18, 2  ;;  %v1023_v62 = vsel %vm431_vm8, %v1017_v32, %v1018_v5  ;;  %v1063_v63 = vrot.slane %v3800_v25, 3 }
 0x29b   :  { %v964_v6 = vadd.f32 %v956_v10, %v919_v36  ;;  %v965_v12 = vadd.f32 %v957_v47, %v920_v54  ;;  %v1002_v2 = vmul.f32 %v3646_v58, %v989_v51  ;;  %v1046_v19 = vmul.f32 %v3671_v37, %v1023_v62 }
 0x29c   :  { %v1022_v27 = vsel %vm431_vm8, %v1018_v5, %v1019_v22  ;;  %v1064_v35 = vrot.slane %v3796_v18, 3  ;;  %v1068_v49 = vsel %vm481_vm11, %v1062_v14, %v1063_v63  ;;  %v831_v32 = vmul.f32 %v3523_v43, %v3796_v18 }
 0x29d   :  { %v1009_v55 = vadd.f32 %v1001_v33, %v964_v6  ;;  %v1010_v1 = vadd.f32 %v1002_v2, %v965_v12  ;;  %v1034_v61 = vsel %vm57_vm10, %v1022_v27, 0.0  ;;  %v1091_v48 = vmul.f32 %v3690_v29, %v1068_v49 }
 0x29e   :  { %v1047_v26 = vmul.f32 %v3671_v37, %v1034_v61  ;;  %v1067_v15 = vsel %vm481_vm11, %v1063_v63, %v1064_v35  ;;  %v832_v3 = vmul.f32 %v3523_v43, %v3719_v31  ;;  %v839_v14 = vrot.slane %v3796_v18, 5 }
 0x29f   :  { %v1054_v4 = vadd.f32 %v1046_v19, %v1009_v55  ;;  %v1079_v60 = vsel %vm59_vm0, %v1067_v15, 0.0  ;;  %v884_v50 = vrot.slane %v3796_v18, 6  ;;  %v929_v53 = vrot.slane %v3796_v18, 7 }
 0x2a0   :  { %v1055_v5 = vadd.f32 %v1047_v26, %v1010_v1  ;;  %v1092_v54 = vmul.f32 %v3690_v29, %v1079_v60  ;;  %v841_v57 = vsel %vm231_vm1, %v839_v14, %v840_v24  ;;  %v842_v43 = vsel %vm231_vm1, %v838_v20, %v839_v14 }
 0x2a1   :  { %v1099_v10 = vadd.f32 %v1091_v48, %v1054_v4  ;;  %v855_v46 = vsel %vm48_vm2, %v842_v43, 0.0  ;;  %v869_v36 = vmul.f32 %v3557_v41, %v841_v57  ;;  %v886_v47 = vsel %vm281_vm3, %v884_v50, %v885_v40 }
 0x2a2   :  { %v1100_v52 = vadd.f32 %v1092_v54, %v1055_v5  ;;  %v868_v33 = vmul.f32 %v3557_v41, %v855_v46  ;;  %v887_v24 = vsel %vm281_vm3, %v883_v59, %v884_v50  ;;  %v914_v20 = vmul.f32 %v3616_v7, %v886_v47 }
 0x2a3   :  { %v877_v51 = vadd.f32 %v869_v36, %v832_v3  ;;  %v900_v62 = vsel %vm50_vm4, %v887_v24, 0.0  ;;  %v931_v63 = vsel %vm331_vm5, %v929_v53, %v930_v28  ;;  %v932_v40 = vsel %vm331_vm5, %v928_v8, %v929_v53 }
 0x2a4   :  { %v1105_v41 = vpack.c.bf16 %v1100_v52, %v1099_v10  ;;  %v876_v6 = vadd.f32 %v868_v33, %v831_v32  ;;  %v913_v25 = vmul.f32 %v3616_v7, %v900_v62  ;;  %v945_v59 = vsel %vm52_vm6, %v932_v40, 0.0 }
 0x2a5   :  { %v922_v12 = vadd.f32 %v914_v20, %v877_v51  ;;  %v959_v2 = vmul.f32 %v3629_v13, %v931_v63  ;;  %v975_v19 = vrot.slane %v3719_v31, 1  ;;  %v958_v49 = vmul.f32 %v3629_v13, %v945_v59 }
 0x2a6   :  { %2673 = vmatprep.mubr.bf16.mxu1 %v1105_v41  ;;  %v921_v27 = vadd.f32 %v913_v25, %v876_v6  ;;  %v1020_v28 = vrot.slane %v3719_v31, 2  ;;  %v1065_v8 = vrot.slane %v3719_v31, 3 }
 0x2a7   :  { %v967_v55 = vadd.f32 %v959_v2, %v922_v12  ;;  %v976_v7 = vsel %vm381_vm7, %v974_v39, %v975_v19  ;;  %v983_v32 = vsel %vm381_vm7, %v975_v19, %v968_v21 }
 0x2a8   :  { %v966_v1 = vadd.f32 %v958_v49, %v921_v27  ;;  %v991_v61 = vsel %vm55_vm9, %v983_v32, 0.0  ;;  %v1003_v13 = vmul.f32 %v3646_v58, %v976_v7  ;;  %v1021_v31 = vsel %vm431_vm8, %v1019_v22, %v1020_v28 }
 0x2a9   :  { %v1004_v48 = vmul.f32 %v3646_v58, %v991_v61  ;;  %v1028_v18 = vsel %vm431_vm8, %v1020_v28, %v1013_v23  ;;  %v1066_v39 = vsel %vm481_vm11, %v1064_v35, %v1065_v8  ;;  %v1048_v15 = vmul.f32 %v3671_v37, %v1021_v31  ;;  %v2742_v61 = vld [vmem:[%s5194_s5 + $0x88] sm:$0xff]   ;;  %v2744_v31 = vld [vmem:[%s5194_s5 + $0x98] sm:$0xff]  }
 0x2aa   :  { %v1011_v21 = vadd.f32 %v1003_v13, %v966_v1  ;;  %v1036_v26 = vsel %vm57_vm10, %v1028_v18, 0.0  ;;  %v1073_v22 = vsel %vm481_vm11, %v1065_v8, %v1058_v0  ;;  %v1093_v35 = vmul.f32 %v3690_v29, %v1066_v39  ;;  %v2743_v13 = vld [vmem:[%s5194_s5 + $0x90] sm:$0xff]   ;;  %v2746_v18 = vld [vmem:[%s5194_s5 + $0xa8] sm:$0xff]  }
 0x2ab   :  { %v1012_v58 = vadd.f32 %v1004_v48, %v967_v55  ;;  %v1049_v3 = vmul.f32 %v3671_v37, %v1036_v26  ;;  %v1081_v23 = vsel %vm59_vm0, %v1073_v22, 0.0  ;;  %v2745_v48 = vld [vmem:[%s5194_s5 + $0xa0] sm:$0xff]   ;;  %v2747_v39 = vld [vmem:[%s5194_s5 + $0xb0] sm:$0xff]  }
 0x2ac   :  { %v1056_v14 = vadd.f32 %v1048_v15, %v1011_v21  ;;  %v1094_v60 = vmul.f32 %v3690_v29, %v1081_v23  ;;  %v2748_v21 = vld [vmem:[%s5194_s5 + $0xb8] sm:$0xff]  }
 0x2ad   :  { %v1057_v4 = vadd.f32 %v1049_v3, %v1012_v58 }
 0x2ae   :  { %v1101_v50 = vadd.f32 %v1093_v35, %v1056_v14 }
 0x2af   :  { %v1102_v53 = vadd.f32 %v1094_v60, %v1057_v4 }
 0x2b1   :  { %v1106_v5 = vpack.c.bf16 %v1102_v53, %v1101_v50 }
 0x2b3   :  { %2674 = vmatmul.mubr.bf16.gmra.mrb[4].mxu1 %v1106_v5 }
 0x36a   :  { %v2671_v0 = vpop.f32.mrb[0].mxu1 }
 0x36b   :  { %v1220_v54 = vadd.f32 %v2671_v0, %v2490_v9  ;;  %v1211_v37 = vpop.f32.mrb[1].mxu1 }
 0x36c   :  { %v1212_v57 = vadd.f32 %v2490_v9, %v1211_v37  ;;  %v2672_v43 = vpop.f32.mrb[2].mxu1 }
 0x36d   :  { %v1244_v10 = vmax.f32 %v1220_v54, 0.0  ;;  %v1223_v46 = vadd.f32 %v2672_v43, %v2490_v9  ;;  %v1214_v36 = vpop.f32.mrb[3].mxu1 }
 0x36e   :  { %v1242_v29 = vmax.f32 %v1212_v57, 0.0  ;;  %v1215_v33 = vadd.f32 %v2490_v9, %v1214_v36 }
 0x36f   :  { %v4001_v47 = vadd.f32 %v1244_v10, %v3429_v56  ;;  %v1245_v52 = vmax.f32 %v1223_v46, 0.0 }
 0x370   :  { %v4008_v20 = vadd.f32 %v1242_v29, %v3436_v38  ;;  %v1243_v51 = vmax.f32 %v1215_v33, 0.0 }
 0x371   :  { %v4004_v24 = vadd.f32 %v1245_v52, %v3432_v11  ;;  %1264 = vadd.xlane.f32.xlu1 %v4001_v47  ;;  %v1286_v56 = vmul.f32 %v4001_v47, %v4001_v47 }
 0x372   :  { %v4015_v62 = vadd.f32 %v1243_v51, %v3443_v44  ;;  %v1284_v63 = vmul.f32 %v4008_v20, %v4008_v20 }
 0x373   :  { %1266 = vadd.xlane.f32.xlu0 %v4004_v24  ;;  %v1287_v11 = vmul.f32 %v4004_v24, %v4004_v24 }
 0x374   :  { %v1285_v38 = vmul.f32 %v4015_v62, %v4015_v62 }
 0x375   :  { %1260 = vadd.xlane.f32.xlu1 %v4008_v20 }
 0x377   :  { %1296 = vadd.xlane.f32.xlu0 %v1286_v56 }
 0x379   :  { %1298 = vadd.xlane.f32.xlu1 %v1287_v11 }
 0x37b   :  { %1262 = vadd.xlane.f32.xlu0 %v4015_v62 }
 0x37d   :  { %1294 = vadd.xlane.f32.xlu1 %v1285_v38 }
 0x37f   :  { %1292 = vadd.xlane.f32.xlu0 %v1284_v63 }
 0x386   :  { %v2675_v40 = vpop.f32.mrb[4].mxu1 }
 0x387   :  { %v1227_v41 = vpop.f32.mrb[5].mxu1  ;;  %v1236_v19 = vadd.f32 %v2675_v40, %v2490_v9 }
 0x388   :  { %v2676_v6 = vpop.f32.mrb[6].mxu1  ;;  %v1228_v44 = vadd.f32 %v2490_v9, %v1227_v41 }
 0x389   :  { %v1239_v25 = vadd.f32 %v2676_v6, %v2490_v9  ;;  %v1230_v59 = vpop.f32.mrb[7].mxu1  ;;  %v1248_v55 = vmax.f32 %v1236_v19, 0.0  ;;  %v4082_v19 = vld [vmem:[%s5196_s3 + $0x2] ss:$0 sm:$0xff] }
 0x38a   :  { %v1231_v2 = vadd.f32 %v2490_v9, %v1230_v59  ;;  %v1246_v27 = vmax.f32 %v1228_v44, 0.0 }
 0x38b   :  { %v1249_v12 = vmax.f32 %v1239_v25, 0.0  ;;  %v4038_v1 = vadd.f32 %v1248_v55, %v3466_v34  ;;  %v2741_v34 = vld [vmem:[%s5194_s5 + $0x80] sm:$0xff]  }
 0x38c   :  { %v1247_v28 = vmax.f32 %v1231_v2, 0.0  ;;  %v4031_v7 = vadd.f32 %v1246_v27, %v3459_v45  ;;  %2677 = vmatprep.subr.bf16.mxu0 %v2741_v34  ;;  %v4076_v25 = vld [vmem:[%s5195_s2 + $0x2] ss:$0 sm:$0xff] }
 0x38d   :  { %v4025_v49 = vadd.f32 %v1249_v12, %v3453_v17  ;;  %2678 = vmatpush3.bf16.msra.mxu0 %v2741_v34 }
 0x38e   :  { %v4034_v32 = vadd.f32 %v1247_v28, %v3462_v42  ;;  %v1288_v17 = vmul.f32 %v4031_v7, %v4031_v7  ;;  %v1290_v42 = vmul.f32 %v4038_v1, %v4038_v1  ;;  %2679 = vmatprep.subr.bf16.mxu0 %v2742_v61 }
 0x38f   :  { %v1291_v8 = vmul.f32 %v4025_v49, %v4025_v49  ;;  %1274 = vadd.xlane.f32.xlu0 %v4025_v49 }
 0x390   :  { %v1289_v45 = vmul.f32 %v4034_v32, %v4034_v32 }
 0x391   :  { %1306 = vadd.xlane.f32.xlu1 %v1291_v8  ;;  %2680 = vmatpush3.bf16.msra.mxu0 %v2742_v61  ;;  %v4096_v61 = vld [vmem:[%s5197_s4 + $0x13] ss:$0 sm:$0xff] }
 0x392   :  { %2681 = vmatprep.subr.bf16.mxu0 %v2743_v13 }
 0x393   :  { %1268 = vadd.xlane.f32.xlu0 %v4031_v7 }
 0x395   :  { %1270 = vadd.xlane.f32.xlu1 %v4034_v32  ;;  %2682 = vmatpush3.bf16.msra.mxu0 %v2743_v13 }
 0x396   :  { %2683 = vmatprep.subr.bf16.mxu0 %v2744_v31 }
 0x397   :  { %1272 = vadd.xlane.f32.xlu0 %v4038_v1 }
 0x399   :  { %1300 = vadd.xlane.f32.xlu1 %v1288_v17  ;;  %2684 = vmatpush3.bf16.msra.mxu0 %v2744_v31 }
 0x39a   :  { %2685 = vmatprep.subr.bf16.mxu0 %v2745_v48 }
 0x39b   :  { %1302 = vadd.xlane.f32.xlu0 %v1289_v45 }
 0x39d   :  { %1304 = vadd.xlane.f32.xlu1 %v1290_v42  ;;  %2686 = vmatpush3.bf16.msra.mxu0 %v2745_v48 }
 0x39e   :  { %2687 = vmatprep.subr.bf16.mxu0 %v2746_v18 }
 0x3a1   :  { %2688 = vmatpush3.bf16.msra.mxu0 %v2746_v18 }
 0x3a2   :  { %2689 = vmatprep.subr.bf16.mxu0 %v2747_v39 }
 0x3a5   :  { %2690 = vmatpush3.bf16.msra.mxu0 %v2747_v39 }
 0x3a6   :  { %2691 = vmatprep.subr.bf16.mxu0 %v2748_v21 }
 0x3a9   :  { %2692 = vmatpush3.bf16.msra.mxu0 %v2748_v21 }
 0x3fe   :  { %v1265_v26 = vpop.xlane.xlu1 %1264 }
 0x3ff   :  { %v1278_v22 = vmul.f32 0.03125, %v1265_v26 }
 0x400   :  { %v1267_v15 = vpop.xlane.xlu0 %1266 }
 0x401   :  { %v1279_v3 = vmul.f32 0.03125, %v1267_v15  ;;  %v1318_v14 = vmul.f32 %v1278_v22, %v1278_v22  ;;  %v1342_v6 = vsub.f32 %v4001_v47, %v1278_v22 }
 0x402   :  { %v1261_v58 = vpop.xlane.xlu1 %1260 }
 0x403   :  { %v1319_v60 = vmul.f32 %v1279_v3, %v1279_v3  ;;  %v1276_v9 = vmul.f32 0.03125, %v1261_v58  ;;  %v1343_v59 = vsub.f32 %v4004_v24, %v1279_v3 }
 0x404   :  { %v1297_v23 = vpop.xlane.xlu0 %1296 }
 0x405   :  { %v1310_v35 = vmul.f32 0.03125, %v1297_v23  ;;  %v1316_v52 = vmul.f32 %v1276_v9, %v1276_v9  ;;  %v1340_v45 = vsub.f32 %v4008_v20, %v1276_v9 }
 0x406   :  { %v1299_v4 = vpop.xlane.xlu1 %1298 }
 0x407   :  { %v1326_v50 = vsub.f32 %v1310_v35, %v1318_v14  ;;  %v1311_v53 = vmul.f32 0.03125, %v1299_v4 }
 0x408   :  { %v1263_v5 = vpop.xlane.xlu0 %1262 }
 0x409   :  { %v1334_v0 = vmax.f32 %v1326_v50, 0.0  ;;  %v1327_v54 = vsub.f32 %v1311_v53, %v1319_v60  ;;  %v1277_v37 = vmul.f32 0.03125, %v1263_v5 }
 0x40a   :  { %v1295_v57 = vpop.xlane.xlu1 %1294 }
 0x40b   :  { %v1350_v43 = vadd.f32 1e-06, %v1334_v0  ;;  %v1335_v10 = vmax.f32 %v1327_v54, 0.0  ;;  %v1317_v46 = vmul.f32 %v1277_v37, %v1277_v37  ;;  %v1309_v36 = vmul.f32 0.03125, %v1295_v57 }
 0x40c   :  { %v1293_v29 = vpop.xlane.xlu0 %1292  ;;  %v1341_v42 = vsub.f32 %v4015_v62, %v1277_v37 }
 0x40d   :  { %2789 = vrsqrt.f32 %v1350_v43  ;;  %v1351_v33 = vadd.f32 1e-06, %v1335_v10  ;;  %v1308_v51 = vmul.f32 0.03125, %v1293_v29  ;;  %v1325_v56 = vsub.f32 %v1309_v36, %v1317_v46 }
 0x40f   :  { %2791 = vrsqrt.f32 %v1351_v33  ;;  %v1324_v11 = vsub.f32 %v1308_v51, %v1316_v52  ;;  %v1333_v38 = vmax.f32 %v1325_v56, 0.0 }
 0x411   :  { %v1332_v63 = vmax.f32 %v1324_v11, 0.0  ;;  %v1349_v40 = vadd.f32 1e-06, %v1333_v38 }
 0x413   :  { %v1348_v41 = vadd.f32 1e-06, %v1332_v63  ;;  %2793 = vrsqrt.f32 %v1349_v40 }
 0x415   :  { %2795 = vrsqrt.f32 %v1348_v41 }
 0x417   :  { %v2790_v44 = vpop.eup %2789 }
 0x418   :  { %v1366_v12 = vmul.f32 %v2790_v44, %v1342_v6 }
 0x419   :  { %v2792_v2 = vpop.eup %2791 }
 0x41a   :  { %v1378_v27 = vmul.f32 %v4076_v25, %v1366_v12  ;;  %v1367_v28 = vmul.f32 %v2792_v2, %v1343_v59 }
 0x41c   :  { %v4086_v8 = vadd.f32 %v4082_v19, %v1378_v27  ;;  %v1379_v55 = vmul.f32 %v4076_v25, %v1367_v28  ;;  %v1275_v17 = vpop.xlane.xlu0 %1274 }
 0x41d   :  { %v4091_v34 = vmul.f32 0.03125, %v1275_v17  ;;  %v2794_v13 = vpop.eup %2793 }
 0x41e   :  { %v1391_v31 = vadd.f32 %v4082_v19, %v1379_v55  ;;  %v1307_v48 = vpop.xlane.xlu1 %1306  ;;  %v1555_v18 = vrot.slane %v4086_v8, 1  ;;  %v1600_v39 = vrot.slane %v4086_v8, 2  ;;  %v1645_v21 = vrot.slane %v4086_v8, 3 }
 0x41f   :  { %v2796_v26 = vpop.eup %2795  ;;  %v1365_v15 = vmul.f32 %v2794_v13, %v1341_v42  ;;  %v1315_v22 = vmul.f32 0.03125, %v1307_v48  ;;  %v1323_v58 = vmul.f32 %v4091_v34, %v4091_v34  ;;  %v1347_v3 = vsub.f32 %v4025_v49, %v4091_v34 }
 0x420   :  { %v4108_v23 = vsel %vm59_vm0, %v1391_v31, 0.0  ;;  %v1364_v14 = vmul.f32 %v2796_v26, %v1340_v45  ;;  %v1269_v35 = vpop.xlane.xlu0 %1268  ;;  %v4112_v4 = vmul.f32 %v4096_v61, %v4086_v8  ;;  %v1420_v60 = vrot.slane %v4086_v8, 5 }
 0x421   :  { %v1377_v50 = vmul.f32 %v4076_v25, %v1365_v15  ;;  %v1331_v53 = vsub.f32 %v1315_v22, %v1323_v58  ;;  %v4116_v5 = vmul.f32 0.03125, %v1269_v35  ;;  %v4120_v9 = vmul.f32 %v4096_v61, %v4108_v23  ;;  %v4182_v22 = vld [vmem:[%s5197_s4 + $0x10] ss:$0 sm:$0xff] }
 0x422   :  { %v1376_v0 = vmul.f32 %v4076_v25, %v1364_v14  ;;  %v1271_v54 = vpop.xlane.xlu1 %1270  ;;  %v5201_v37 = vrot.slane %v4108_v23, 5  ;;  %v1465_v57 = vrot.slane %v4086_v8, 6  ;;  %v5200_v43 = vrot.slane %v4108_v23, 6 }
 0x423   :  { %v1389_v10 = vadd.f32 %v4082_v19, %v1377_v50  ;;  %v1339_v46 = vmax.f32 %v1331_v53, 0.0  ;;  %v4127_v36 = vmul.f32 0.03125, %v1271_v54  ;;  %v1320_v29 = vmul.f32 %v4116_v5, %v4116_v5  ;;  %v4195_v53 = vld [vmem:[%s5197_s4 + $0x11] ss:$0 sm:$0xff] }
 0x424   :  { %v4132_v52 = vadd.f32 %v4082_v19, %v1376_v0  ;;  %v1344_v33 = vsub.f32 %v4031_v7, %v4116_v5  ;;  %v1273_v51 = vpop.xlane.xlu0 %1272  ;;  %v1430_v56 = vsel %vm231_vm1, %v1420_v60, %v5201_v37  ;;  %v4148_v11 = vsel %vm281_vm3, %v1465_v57, %v5200_v43 }
 0x425   :  { %v4152_v38 = vsel %vm59_vm0, %v1389_v10, 0.0  ;;  %v1355_v63 = vadd.f32 1e-06, %v1339_v46  ;;  %v1321_v40 = vmul.f32 %v4127_v36, %v4127_v36  ;;  %v1345_v41 = vsub.f32 %v4034_v32, %v4127_v36 }
 0x426   :  { %v1301_v6 = vpop.xlane.xlu1 %1300  ;;  %v4158_v44 = vmul.f32 0.03125, %v1273_v51  ;;  %v4162_v59 = vmul.f32 %v4096_v61, %v4132_v52  ;;  %v1411_v12 = vmul.f32 %v4096_v61, %v4152_v38  ;;  %v1418_v2 = vrot.slane %v4132_v52, 5 }
 0x427   :  { %2797 = vrsqrt.f32 %v1355_v63  ;;  %v1312_v27 = vmul.f32 0.03125, %v1301_v6  ;;  %v1419_v28 = vrot.slane %v4152_v38, 5  ;;  %v1463_v55 = vrot.slane %v4132_v52, 6 }
 0x428   :  { %v1322_v17 = vmul.f32 %v4158_v44, %v4158_v44  ;;  %v1346_v45 = vsub.f32 %v4038_v1, %v4158_v44  ;;  %v1303_v42 = vpop.xlane.xlu0 %1302  ;;  %v1464_v13 = vrot.slane %v4152_v38, 6  ;;  %v1508_v31 = vrot.slane %v4132_v52, 7 }
 0x429   :  { %v1328_v48 = vsub.f32 %v1312_v27, %v1320_v29  ;;  %v1313_v26 = vmul.f32 0.03125, %v1303_v42  ;;  %v1432_v15 = vsel %vm231_vm1, %v1418_v2, %v1419_v28  ;;  %v1509_v58 = vrot.slane %v4152_v38, 7  ;;  %v4209_v27 = vld [vmem:[%s5197_s4 + $0x12] ss:$0 sm:$0xff] }
 0x42a   :  { %v1305_v14 = vpop.xlane.xlu1 %1304  ;;  %v1448_v35 = vmul.f32 %v4182_v22, %v1432_v15  ;;  %v1477_v50 = vsel %vm281_vm3, %v1463_v55, %v1464_v13  ;;  %v5202_v0 = vrot.slane %v4132_v52, 1  ;;  %v1554_v54 = vrot.slane %v4152_v38, 1 }
 0x42b   :  { %v1336_v10 = vmax.f32 %v1328_v48, 0.0  ;;  %v1314_v46 = vmul.f32 0.03125, %v1305_v14  ;;  %v1329_v29 = vsub.f32 %v1313_v26, %v1321_v40  ;;  %v1493_v51 = vmul.f32 %v4195_v53, %v1477_v50  ;;  %v4223_v14 = vld [vmem:[%s5197_s4 + $0x14] ss:$0 sm:$0xff] }
 0x42c   :  { %v1456_v63 = vadd.f32 %v1448_v35, %v1411_v12  ;;  %v1522_v6 = vsel %vm331_vm5, %v1508_v31, %v1509_v58  ;;  %v1566_v40 = vsel %vm381_vm7, %v1554_v54, %v1555_v18  ;;  %v1567_v12 = vsel %vm381_vm7, %v5202_v0, %v1554_v54 }
 0x42d   :  { %v1352_v42 = vadd.f32 1e-06, %v1336_v10  ;;  %v1330_v48 = vsub.f32 %v1314_v46, %v1322_v17  ;;  %v1337_v26 = vmax.f32 %v1329_v29, 0.0  ;;  %v1538_v15 = vmul.f32 %v4209_v27, %v1522_v6 }
 0x42e   :  { %v1501_v35 = vadd.f32 %v1493_v51, %v1456_v63  ;;  %v1570_v50 = vsel %vm55_vm9, %v1566_v40, 0.0  ;;  %v4228_v43 = vmul.f32 %v4223_v14, %v1567_v12  ;;  %v1598_v37 = vrot.slane %v4132_v52, 2 }
 0x42f   :  { %2799 = vrsqrt.f32 %v1352_v42  ;;  %v1338_v54 = vmax.f32 %v1330_v48, 0.0  ;;  %v1353_v17 = vadd.f32 1e-06, %v1337_v26  ;;  %v1583_v10 = vmul.f32 %v4223_v14, %v1570_v50 }
 0x430   :  { %v1546_v46 = vadd.f32 %v1538_v15, %v1501_v35  ;;  %v1599_v29 = vrot.slane %v4152_v38, 2  ;;  %v1643_v6 = vrot.slane %v4132_v52, 3  ;;  %v1644_v51 = vrot.slane %v4152_v38, 3 }
 0x431   :  { %v2798_v63 = vpop.eup %2797  ;;  %v1354_v0 = vadd.f32 1e-06, %v1338_v54  ;;  %2801 = vrsqrt.f32 %v1353_v17  ;;  %v1431_v40 = vsel %vm231_vm1, %v1419_v28, %v1420_v60  ;;  %v1450_v12 = vmul.f32 %v4182_v22, %v1430_v56  ;;  %v4254_v60 = vld [vmem:[%s5197_s4 + $0x15] ss:$0 sm:$0xff]  ;;  %v4276_v54 = vld [vmem:[%s5197_s4 + $0x16] ss:$0 sm:$0xff] }
 0x432   :  { %v1371_v42 = vmul.f32 %v2798_v63, %v1347_v3  ;;  %v1591_v48 = vadd.f32 %v1583_v10, %v1546_v46  ;;  %v1611_v26 = vsel %vm431_vm8, %v1599_v29, %v1600_v39  ;;  %v1612_v15 = vsel %vm431_vm8, %v1598_v37, %v1599_v29 }
 0x433   :  { %2803 = vrsqrt.f32 %v1354_v0  ;;  %v1615_v34 = vsel %vm57_vm10, %v1611_v26, 0.0  ;;  %v4259_v3 = vmul.f32 %v4254_v60, %v1612_v15  ;;  %v1656_v56 = vsel %vm481_vm11, %v1644_v51, %v1645_v21 }
 0x434   :  { %v1383_v28 = vmul.f32 %v4076_v25, %v1371_v42  ;;  %v1628_v35 = vmul.f32 %v4254_v60, %v1615_v34  ;;  %v1657_v0 = vsel %vm481_vm11, %v1643_v6, %v1644_v51  ;;  %v1660_v50 = vsel %vm59_vm0, %v1656_v56, 0.0 }
 0x435   :  { %v4279_v17 = vmul.f32 %v4276_v54, %v1657_v0  ;;  %v1673_v10 = vmul.f32 %v4276_v54, %v1660_v50  ;;  %v1436_v46 = vsel %vm48_vm2, %v1431_v40, 0.0  ;;  %v1458_v29 = vadd.f32 %v1450_v12, %v4120_v9 }
 0x436   :  { %v1395_v51 = vadd.f32 %v4082_v19, %v1383_v28  ;;  %v1636_v63 = vadd.f32 %v1628_v35, %v1591_v48  ;;  %v1449_v42 = vmul.f32 %v4182_v22, %v1436_v46  ;;  %v1476_v26 = vsel %vm281_vm3, %v1464_v13, %v1465_v57 }
 0x437   :  { %v1481_v15 = vsel %vm50_vm4, %v1476_v26, 0.0  ;;  %v1495_v40 = vmul.f32 %v4195_v53, %v4148_v11  ;;  %v1510_v9 = vrot.slane %v4086_v8, 7  ;;  %v1511_v12 = vrot.slane %v4108_v23, 7 }
 0x438   :  { %v4301_v48 = vsel %vm59_vm0, %v1395_v51, 0.0  ;;  %v4303_v34 = vadd.f32 %v1673_v10, %v1636_v63  ;;  %v1457_v56 = vadd.f32 %v1449_v42, %v4112_v4  ;;  %v1494_v57 = vmul.f32 %v4195_v53, %v1481_v15 }
 0x439   :  { %v2800_v13 = vpop.eup %2799  ;;  %v1425_v28 = vrot.slane %v4301_v48, 5  ;;  %v1470_v35 = vrot.slane %v4301_v48, 6  ;;  %v1515_v11 = vrot.slane %v4301_v48, 7  ;;  %v1503_v0 = vadd.f32 %v1495_v40, %v1458_v29 }
 0x43a   :  { %v1368_v50 = vmul.f32 %v2800_v13, %v1344_v33  ;;  %v1502_v46 = vadd.f32 %v1494_v57, %v1457_v56  ;;  %v1520_v4 = vsel %vm331_vm5, %v1510_v9, %v1511_v12  ;;  %v1521_v10 = vsel %vm331_vm5, %v1509_v58, %v1510_v9 }
 0x43b   :  { %v2802_v51 = vpop.eup %2801  ;;  %v1433_v5 = vsel %vm231_vm1, %v1425_v28, %v1418_v2  ;;  %v1478_v33 = vsel %vm281_vm3, %v1470_v35, %v1463_v55  ;;  %v1523_v38 = vsel %vm331_vm5, %v1515_v11, %v1508_v31  ;;  %v1526_v58 = vsel %vm52_vm6, %v1521_v10, 0.0 }
 0x43c   :  { %v1380_v29 = vmul.f32 %v4076_v25, %v1368_v50  ;;  %v1369_v2 = vmul.f32 %v2802_v51, %v1345_v41  ;;  %v1434_v63 = vsel %vm48_vm2, %v1433_v5, 0.0  ;;  %v1479_v55 = vsel %vm50_vm4, %v1478_v33, 0.0 }
 0x43d   :  { %v2804_v42 = vpop.eup %2803  ;;  %v1447_v26 = vmul.f32 %v4182_v22, %v1434_v63  ;;  %v1492_v31 = vmul.f32 %v4195_v53, %v1479_v55  ;;  %v1524_v15 = vsel %vm52_vm6, %v1523_v38, 0.0  ;;  %v1539_v40 = vmul.f32 %v4209_v27, %v1526_v58 }
 0x43e   :  { %v4355_v9 = vadd.f32 %v4082_v19, %v1380_v29  ;;  %v1370_v36 = vmul.f32 %v2804_v42, %v1346_v45  ;;  %v1381_v41 = vmul.f32 %v4076_v25, %v1369_v2  ;;  %v1537_v56 = vmul.f32 %v4209_v27, %v1524_v15 }
 0x43f   :  { %v1455_v57 = vadd.f32 %v1447_v26, %v4162_v59  ;;  %v1540_v13 = vmul.f32 %v4209_v27, %v1520_v4  ;;  %v1547_v50 = vadd.f32 %v1539_v40, %v1502_v46  ;;  %v1556_v10 = vrot.slane %v4108_v23, 1 }
 0x440   :  { %v1382_v51 = vmul.f32 %v4076_v25, %v1370_v36  ;;  %v1393_v5 = vadd.f32 %v4082_v19, %v1381_v41  ;;  %v1557_v33 = vrot.slane %v4355_v9, 1  ;;  %v1601_v44 = vrot.slane %v4108_v23, 2 }
 0x441   :  { %v1500_v45 = vadd.f32 %v1492_v31, %v1455_v57  ;;  %v1548_v38 = vadd.f32 %v1540_v13, %v1503_v0  ;;  %v1565_v59 = vsel %vm381_vm7, %v1555_v18, %v1556_v10  ;;  %v1602_v4 = vrot.slane %v4355_v9, 2 }
 0x442   :  { %v4375_v46 = vadd.f32 %v4082_v19, %v1382_v51  ;;  %v4379_v25 = vsel %vm59_vm0, %v1393_v5, 0.0  ;;  %v1564_v58 = vsel %vm381_vm7, %v1556_v10, %v1557_v33  ;;  %v1584_v0 = vmul.f32 %v4223_v14, %v1565_v59 }
 0x443   :  { %v1545_v29 = vadd.f32 %v1537_v56, %v1500_v45  ;;  %v1572_v18 = vsel %vm55_vm9, %v1564_v58, 0.0  ;;  %v1609_v19 = vsel %vm431_vm8, %v1601_v44, %v1602_v4  ;;  %v1610_v2 = vsel %vm431_vm8, %v1600_v39, %v1601_v44 }
 0x444   :  { %v1585_v63 = vmul.f32 %v4223_v14, %v1572_v18  ;;  %v1592_v55 = vadd.f32 %v1584_v0, %v1547_v50  ;;  %v1617_v42 = vsel %vm57_vm10, %v1609_v19, 0.0  ;;  %v1629_v26 = vmul.f32 %v4254_v60, %v1610_v2 }
 0x445   :  { %v1590_v31 = vadd.f32 %v4228_v43, %v1545_v29  ;;  %v1630_v15 = vmul.f32 %v4254_v60, %v1617_v42  ;;  %v1646_v40 = vrot.slane %v4108_v23, 3  ;;  %v1647_v36 = vrot.slane %v4355_v9, 3 }
 0x446   :  { %v1593_v41 = vadd.f32 %v1585_v63, %v1548_v38  ;;  %v1637_v56 = vadd.f32 %v1629_v26, %v1592_v55  ;;  %v1414_v39 = vmul.f32 %v4096_v61, %v4355_v9  ;;  %v1415_v57 = vmul.f32 %v4096_v61, %v4379_v25 }
 0x447   :  { %v1635_v13 = vadd.f32 %v4259_v3, %v1590_v31  ;;  %v1654_v43 = vsel %vm481_vm11, %v1646_v40, %v1647_v36  ;;  %v1655_v50 = vsel %vm481_vm11, %v1645_v21, %v1646_v40  ;;  %v1422_v10 = vrot.slane %v4355_v9, 5 }
 0x448   :  { %v1638_v51 = vadd.f32 %v1630_v15, %v1593_v41  ;;  %v1662_v5 = vsel %vm59_vm0, %v1654_v43, 0.0  ;;  %v1674_v44 = vmul.f32 %v4276_v54, %v1655_v50  ;;  %v1423_v3 = vrot.slane %v4379_v25, 5 }
 0x449   :  { %v1680_v45 = vadd.f32 %v4279_v17, %v1635_v13  ;;  %v1675_v38 = vmul.f32 %v4276_v54, %v1662_v5  ;;  %v5206_v59 = vrot.slane %v4108_v23, 5  ;;  %v1467_v21 = vrot.slane %v4355_v9, 6 }
 0x44a   :  { %v1682_v58 = vadd.f32 %v1674_v44, %v1637_v56  ;;  %v1428_v0 = vsel %vm231_vm1, %v1422_v10, %v1423_v3  ;;  %v1468_v17 = vrot.slane %v4379_v25, 6  ;;  %v5207_v42 = vrot.slane %v4108_v23, 6 }
 0x44b   :  { %v1429_v8 = vsel %vm231_vm1, %v5206_v59, %v1422_v10  ;;  %v1688_v18 = vpack.c.bf16 %v4303_v34, %v1680_v45  ;;  %v1683_v19 = vadd.f32 %v1675_v38, %v1638_v51  ;;  %v1452_v63 = vmul.f32 %v4182_v22, %v1428_v0 }
 0x44c   :  { %v1438_v29 = vsel %vm48_vm2, %v1429_v8, 0.0  ;;  %v1473_v55 = vsel %vm281_vm3, %v1467_v21, %v1468_v17  ;;  %v1474_v26 = vsel %vm281_vm3, %v5207_v42, %v1467_v21  ;;  %v1512_v31 = vrot.slane %v4355_v9, 7 }
 0x44d   :  { %v1451_v2 = vmul.f32 %v4182_v22, %v1438_v29  ;;  %v1513_v15 = vrot.slane %v4379_v25, 7  ;;  %2693 = vmatprep.mubr.bf16.mxu0 %v1688_v18  ;;  %v1689_v34 = vpack.c.bf16 %v1683_v19, %v1682_v58  ;;  %v1460_v41 = vadd.f32 %v1452_v63, %v1415_v57 }
 0x44e   :  { %v1483_v56 = vsel %vm50_vm4, %v1474_v26, 0.0  ;;  %v1497_v43 = vmul.f32 %v4195_v53, %v1473_v55  ;;  %v1519_v10 = vsel %vm331_vm5, %v1511_v12, %v1512_v31  ;;  %v1558_v51 = vrot.slane %v4379_v25, 1 }
 0x44f   :  { %v1459_v40 = vadd.f32 %v1451_v2, %v1414_v39  ;;  %v1496_v13 = vmul.f32 %v4195_v53, %v1483_v56  ;;  %v1518_v50 = vsel %vm331_vm5, %v1512_v31, %v1513_v15  ;;  %2694 = vmatmul.mubr.bf16.vlgmr.msra.gmra.mrb[8].mxu0 %v1689_v34  ;;  %v1528_v39 = vsel %vm52_vm6, %v1519_v10, 0.0 }
 0x450   :  { %v1542_v57 = vmul.f32 %v4209_v27, %v1518_v50  ;;  %v1559_v5 = vrot.slane %v4375_v46, 1  ;;  %v1505_v45 = vadd.f32 %v1497_v43, %v1460_v41  ;;  %v1541_v38 = vmul.f32 %v4209_v27, %v1528_v39 }
 0x451   :  { %v1504_v44 = vadd.f32 %v1496_v13, %v1459_v40  ;;  %v1603_v59 = vrot.slane %v4379_v25, 2  ;;  %v1563_v12 = vsel %vm381_vm7, %v1557_v33, %v1558_v51  ;;  %v1604_v8 = vrot.slane %v4375_v46, 2 }
 0x452   :  { %v1562_v23 = vsel %vm381_vm7, %v1558_v51, %v1559_v5  ;;  %v1648_v21 = vrot.slane %v4379_v25, 3  ;;  %v1550_v0 = vadd.f32 %v1542_v57, %v1505_v45  ;;  %v1586_v18 = vmul.f32 %v4223_v14, %v1563_v12 }
 0x453   :  { %v1549_v58 = vadd.f32 %v1541_v38, %v1504_v44  ;;  %v1574_v29 = vsel %vm55_vm9, %v1562_v23, 0.0  ;;  %v1607_v2 = vsel %vm431_vm8, %v1603_v59, %v1604_v8  ;;  %v1608_v33 = vsel %vm431_vm8, %v1602_v4, %v1603_v59 }
 0x454   :  { %v1587_v19 = vmul.f32 %v4223_v14, %v1574_v29  ;;  %v1649_v63 = vrot.slane %v4375_v46, 3  ;;  %v1619_v42 = vsel %vm57_vm10, %v1607_v2, 0.0  ;;  %v1631_v26 = vmul.f32 %v4254_v60, %v1608_v33 }
 0x455   :  { %v1594_v55 = vadd.f32 %v1586_v18, %v1549_v58  ;;  %v1653_v31 = vsel %vm481_vm11, %v1647_v36, %v1648_v21  ;;  %v1632_v40 = vmul.f32 %v4254_v60, %v1619_v42  ;;  %v1416_v43 = vmul.f32 %v4096_v61, %v4375_v46 }
 0x456   :  { %v1595_v34 = vadd.f32 %v1587_v19, %v1550_v0  ;;  %v1652_v41 = vsel %vm481_vm11, %v1648_v21, %v1649_v63  ;;  %v1676_v13 = vmul.f32 %v4276_v54, %v1653_v31  ;;  %v1424_v36 = vrot.slane %v4375_v46, 5 }
 0x457   :  { %v1639_v4 = vadd.f32 %v1631_v26, %v1594_v55  ;;  %v1664_v56 = vsel %vm59_vm0, %v1652_v41, 0.0  ;;  %v1469_v10 = vrot.slane %v4375_v46, 6  ;;  %v1417_v57 = vmul.f32 %v4096_v61, %v4301_v48 }
 0x458   :  { %v1640_v50 = vadd.f32 %v1632_v40, %v1595_v34  ;;  %v1677_v9 = vmul.f32 %v4276_v54, %v1664_v56  ;;  %v1514_v51 = vrot.slane %v4375_v46, 7  ;;  %v1560_v44 = vrot.slane %v4301_v48, 1 }
 0x459   :  { %v1684_v39 = vadd.f32 %v1676_v13, %v1639_v4  ;;  %v1426_v38 = vsel %vm231_vm1, %v1424_v36, %v1425_v28  ;;  %v1427_v59 = vsel %vm231_vm1, %v1423_v3, %v1424_v36  ;;  %v1471_v61 = vsel %vm281_vm3, %v1469_v10, %v1470_v35 }
 0x45a   :  { %v1685_v45 = vadd.f32 %v1677_v9, %v1640_v50  ;;  %v1440_v46 = vsel %vm48_vm2, %v1427_v59, 0.0  ;;  %v1454_v23 = vmul.f32 %v4182_v22, %v1426_v38  ;;  %v1472_v28 = vsel %vm281_vm3, %v1468_v17, %v1469_v10 }
 0x45b   :  { %v1605_v12 = vrot.slane %v4301_v48, 2  ;;  %v1453_v3 = vmul.f32 %v4182_v22, %v1440_v46  ;;  %v1485_v58 = vsel %vm50_vm4, %v1472_v28, 0.0  ;;  %v1516_v35 = vsel %vm331_vm5, %v1514_v51, %v1515_v11 }
 0x45c   :  { %v1690_v21 = vpack.c.bf16 %v1685_v45, %v1684_v39  ;;  %v1462_v0 = vadd.f32 %v1454_v23, %v1417_v57  ;;  %v1499_v29 = vmul.f32 %v4195_v53, %v1471_v61  ;;  %v1517_v17 = vsel %vm331_vm5, %v1513_v15, %v1514_v51 }
 0x45d   :  { %v1461_v18 = vadd.f32 %v1453_v3, %v1416_v43  ;;  %v1498_v22 = vmul.f32 %v4195_v53, %v1485_v58  ;;  %v1530_v19 = vsel %vm52_vm6, %v1517_v17, 0.0  ;;  %v5208_v2 = vrot.slane %v4132_v52, 1  ;;  %v2531_v52 = vld [vmem:[%s5198_s6 + $0x2] ss:$0 sm:$0xff] }
 0x45e   :  { %2697 = vmatprep.mubr.bf16.mxu0 %v1690_v21  ;;  %v1507_v33 = vadd.f32 %v1499_v29, %v1462_v0  ;;  %v1544_v55 = vmul.f32 %v4209_v27, %v1516_v35  ;;  %v1561_v25 = vsel %vm381_vm7, %v1559_v5, %v1560_v44  ;;  %v1543_v53 = vmul.f32 %v4209_v27, %v1530_v19 }
 0x45f   :  { %v1568_v11 = vsel %vm381_vm7, %v1560_v44, %v5208_v2  ;;  %v1506_v42 = vadd.f32 %v1498_v22, %v1461_v18  ;;  %v1613_v31 = vsel %vm431_vm8, %v1605_v12, %v1598_v37  ;;  %v1606_v40 = vsel %vm431_vm8, %v1604_v8, %v1605_v12 }
 0x460   :  { %v1576_v15 = vsel %vm55_vm9, %v1568_v11, 0.0  ;;  %v1552_v34 = vadd.f32 %v1544_v55, %v1507_v33  ;;  %v1621_v5 = vsel %vm57_vm10, %v1613_v31, 0.0  ;;  %v1650_v41 = vrot.slane %v4301_v48, 3 }
 0x461   :  { %v1589_v26 = vmul.f32 %v4223_v14, %v1576_v15  ;;  %v1551_v4 = vadd.f32 %v1543_v53, %v1506_v42  ;;  %v1588_v56 = vmul.f32 %v4223_v14, %v1561_v25  ;;  %v1634_v13 = vmul.f32 %v4254_v60, %v1621_v5  ;;  %v2752_v5 = vld [vmem:[%s5194_s5 + $0xd8] sm:$0xff]  }
 0x462   :  { %v1651_v43 = vsel %vm481_vm11, %v1649_v63, %v1650_v41  ;;  %v1658_v37 = vsel %vm481_vm11, %v1650_v41, %v1643_v6  ;;  %v1633_v50 = vmul.f32 %v4254_v60, %v1606_v40  ;;  %v2751_v40 = vld [vmem:[%s5194_s5 + $0xd0] sm:$0xff]   ;;  %v2753_v41 = vld [vmem:[%s5194_s5 + $0xe0] sm:$0xff]  }
 0x463   :  { %v1597_v27 = vadd.f32 %v1589_v26, %v1552_v34  ;;  %v1596_v8 = vadd.f32 %v1588_v56, %v1551_v4  ;;  %v1666_v48 = vsel %vm59_vm0, %v1658_v37, 0.0  ;;  %v1678_v14 = vmul.f32 %v4276_v54, %v1651_v43  ;;  %v2750_v34 = vld [vmem:[%s5194_s5 + $0xc8] sm:$0xff]   ;;  %v2755_v56 = vld [vmem:[%s5194_s5 + $0xf0] sm:$0xff]  }
 0x464   :  { %v1679_v10 = vmul.f32 %v4276_v54, %v1666_v48  ;;  %v2754_v4 = vld [vmem:[%s5194_s5 + $0xe8] sm:$0xff]  }
 0x465   :  { %v1642_v9 = vadd.f32 %v1634_v13, %v1597_v27  ;;  %v1641_v36 = vadd.f32 %v1633_v50, %v1596_v8  ;;  %v2756_v27 = vld [vmem:[%s5194_s5 + $0xf8] sm:$0xff]  }
 0x467   :  { %v1686_v39 = vadd.f32 %v1678_v14, %v1641_v36  ;;  %v1687_v57 = vadd.f32 %v1679_v10, %v1642_v9 }
 0x469   :  { %v1691_v63 = vpack.c.bf16 %v1687_v57, %v1686_v39 }
 0x46b   :  { %2698 = vmatmul.mubr.bf16.gmra.mrb[12].mxu0 %v1691_v63 }
 0x522   :  { %v2695_v6 = vpop.f32.mrb[8].mxu0 }
 0x523   :  { %v1805_v51 = vadd.f32 %v2695_v6, %v2531_v52  ;;  %v1796_v60 = vpop.f32.mrb[9].mxu0 }
 0x524   :  { %v1797_v44 = vadd.f32 %v2531_v52, %v1796_v60  ;;  %v2696_v45 = vpop.f32.mrb[10].mxu0 }
 0x525   :  { %v1829_v38 = vmax.f32 %v1805_v51, 0.0  ;;  %v1808_v59 = vadd.f32 %v2696_v45, %v2531_v52  ;;  %v1799_v61 = vpop.f32.mrb[11].mxu0 }
 0x526   :  { %v1827_v54 = vmax.f32 %v1797_v44, 0.0  ;;  %v1800_v28 = vadd.f32 %v2531_v52, %v1799_v61 }
 0x527   :  { %v4581_v46 = vadd.f32 %v1829_v38, %v4001_v47  ;;  %v1830_v23 = vmax.f32 %v1808_v59, 0.0 }
 0x528   :  { %v4588_v21 = vadd.f32 %v1827_v54, %v4008_v20  ;;  %v1828_v3 = vmax.f32 %v1800_v28, 0.0 }
 0x529   :  { %v4584_v12 = vadd.f32 %v1830_v23, %v4004_v24  ;;  %1849 = vadd.xlane.f32.xlu1 %v4581_v46  ;;  %v1871_v47 = vmul.f32 %v4581_v46, %v4581_v46 }
 0x52a   :  { %v4595_v58 = vadd.f32 %v1828_v3, %v4015_v62  ;;  %v1869_v35 = vmul.f32 %v4588_v21, %v4588_v21 }
 0x52b   :  { %1851 = vadd.xlane.f32.xlu0 %v4584_v12  ;;  %v1872_v24 = vmul.f32 %v4584_v12, %v4584_v12 }
 0x52c   :  { %v1870_v20 = vmul.f32 %v4595_v58, %v4595_v58 }
 0x52d   :  { %1845 = vadd.xlane.f32.xlu1 %v4588_v21 }
 0x52f   :  { %1881 = vadd.xlane.f32.xlu0 %v1871_v47 }
 0x531   :  { %1883 = vadd.xlane.f32.xlu1 %v1872_v24 }
 0x533   :  { %1847 = vadd.xlane.f32.xlu0 %v4595_v58 }
 0x535   :  { %1879 = vadd.xlane.f32.xlu1 %v1870_v20 }
 0x537   :  { %1877 = vadd.xlane.f32.xlu0 %v1869_v35 }
 0x53e   :  { %v2699_v0 = vpop.f32.mrb[12].mxu0 }
 0x53f   :  { %v1812_v29 = vpop.f32.mrb[13].mxu0  ;;  %v1821_v11 = vadd.f32 %v2699_v0, %v2531_v52 }
 0x540   :  { %v2700_v17 = vpop.f32.mrb[14].mxu0  ;;  %v1813_v62 = vadd.f32 %v2531_v52, %v1812_v29 }
 0x541   :  { %v1824_v18 = vadd.f32 %v2700_v17, %v2531_v52  ;;  %v1815_v22 = vpop.f32.mrb[15].mxu0  ;;  %v1833_v42 = vmax.f32 %v1821_v11, 0.0  ;;  %v4662_v11 = vld [vmem:[%s5196_s3 + $0x3] ss:$0 sm:$0xff] }
 0x542   :  { %v1816_v2 = vadd.f32 %v2531_v52, %v1815_v22  ;;  %v1831_v33 = vmax.f32 %v1813_v62, 0.0 }
 0x543   :  { %v1834_v19 = vmax.f32 %v1824_v18, 0.0  ;;  %v4618_v31 = vadd.f32 %v1833_v42, %v4038_v1  ;;  %v2749_v1 = vld [vmem:[%s5194_s5 + $0xc0] sm:$0xff]  }
 0x544   :  { %v1832_v25 = vmax.f32 %v1816_v2, 0.0  ;;  %v4611_v53 = vadd.f32 %v1831_v33, %v4031_v7  ;;  %2701 = vmatprep.subr.bf16.mxu1 %v2749_v1  ;;  %v4656_v18 = vld [vmem:[%s5195_s2 + $0x3] ss:$0 sm:$0xff] }
 0x545   :  { %v4605_v55 = vadd.f32 %v1834_v19, %v4025_v49  ;;  %2702 = vmatpush3.bf16.msra.mxu1 %v2749_v1 }
 0x546   :  { %v4614_v26 = vadd.f32 %v1832_v25, %v4034_v32  ;;  %v1873_v49 = vmul.f32 %v4611_v53, %v4611_v53  ;;  %v1875_v32 = vmul.f32 %v4618_v31, %v4618_v31  ;;  %2703 = vmatprep.subr.bf16.mxu1 %v2750_v34 }
 0x547   :  { %v1876_v15 = vmul.f32 %v4605_v55, %v4605_v55  ;;  %1859 = vadd.xlane.f32.xlu0 %v4605_v55 }
 0x548   :  { %v1874_v7 = vmul.f32 %v4614_v26, %v4614_v26 }
 0x549   :  { %1891 = vadd.xlane.f32.xlu1 %v1876_v15  ;;  %2704 = vmatpush3.bf16.msra.mxu1 %v2750_v34  ;;  %v4676_v34 = vld [vmem:[%s5197_s4 + $0x1b] ss:$0 sm:$0xff] }
 0x54a   :  { %2705 = vmatprep.subr.bf16.mxu1 %v2751_v40 }
 0x54b   :  { %1853 = vadd.xlane.f32.xlu0 %v4611_v53 }
 0x54d   :  { %1855 = vadd.xlane.f32.xlu1 %v4614_v26  ;;  %2706 = vmatpush3.bf16.msra.mxu1 %v2751_v40 }
 0x54e   :  { %2707 = vmatprep.subr.bf16.mxu1 %v2752_v5 }
 0x54f   :  { %1857 = vadd.xlane.f32.xlu0 %v4618_v31 }
 0x551   :  { %1885 = vadd.xlane.f32.xlu1 %v1873_v49  ;;  %2708 = vmatpush3.bf16.msra.mxu1 %v2752_v5 }
 0x552   :  { %2709 = vmatprep.subr.bf16.mxu1 %v2753_v41 }
 0x553   :  { %1887 = vadd.xlane.f32.xlu0 %v1874_v7 }
 0x555   :  { %1889 = vadd.xlane.f32.xlu1 %v1875_v32  ;;  %2710 = vmatpush3.bf16.msra.mxu1 %v2753_v41 }
 0x556   :  { %2711 = vmatprep.subr.bf16.mxu1 %v2754_v4 }
 0x559   :  { %2712 = vmatpush3.bf16.msra.mxu1 %v2754_v4 }
 0x55a   :  { %2713 = vmatprep.subr.bf16.mxu1 %v2755_v56 }
 0x55d   :  { %2714 = vmatpush3.bf16.msra.mxu1 %v2755_v56 }
 0x55e   :  { %2715 = vmatprep.subr.bf16.mxu1 %v2756_v27 }
 0x561   :  { %2716 = vmatpush3.bf16.msra.mxu1 %v2756_v27 }
 0x5b6   :  { %v1850_v13 = vpop.xlane.xlu1 %1849 }
 0x5b7   :  { %v1863_v37 = vmul.f32 0.03125, %v1850_v13 }
 0x5b8   :  { %v1852_v43 = vpop.xlane.xlu0 %1851 }
 0x5b9   :  { %v1864_v50 = vmul.f32 0.03125, %v1852_v43  ;;  %v1903_v9 = vmul.f32 %v1863_v37, %v1863_v37  ;;  %v1927_v17 = vsub.f32 %v4581_v46, %v1863_v37 }
 0x5ba   :  { %v1846_v8 = vpop.xlane.xlu1 %1845 }
 0x5bb   :  { %v1904_v10 = vmul.f32 %v1864_v50, %v1864_v50  ;;  %v1861_v52 = vmul.f32 0.03125, %v1846_v8  ;;  %v1928_v22 = vsub.f32 %v4584_v12, %v1864_v50 }
 0x5bc   :  { %v1882_v48 = vpop.xlane.xlu0 %1881 }
 0x5bd   :  { %v1895_v36 = vmul.f32 0.03125, %v1882_v48  ;;  %v1901_v23 = vmul.f32 %v1861_v52, %v1861_v52  ;;  %v1925_v7 = vsub.f32 %v4588_v21, %v1861_v52 }
 0x5be   :  { %v1884_v14 = vpop.xlane.xlu1 %1883 }
 0x5bf   :  { %v1911_v39 = vsub.f32 %v1895_v36, %v1903_v9  ;;  %v1896_v57 = vmul.f32 0.03125, %v1884_v14 }
 0x5c0   :  { %v1848_v63 = vpop.xlane.xlu0 %1847 }
 0x5c1   :  { %v1919_v6 = vmax.f32 %v1911_v39, 0.0  ;;  %v1912_v51 = vsub.f32 %v1896_v57, %v1904_v10  ;;  %v1862_v60 = vmul.f32 0.03125, %v1848_v63 }
 0x5c2   :  { %v1880_v44 = vpop.xlane.xlu1 %1879 }
 0x5c3   :  { %v1935_v45 = vadd.f32 1e-06, %v1919_v6  ;;  %v1920_v38 = vmax.f32 %v1912_v51, 0.0  ;;  %v1902_v59 = vmul.f32 %v1862_v60, %v1862_v60  ;;  %v1894_v61 = vmul.f32 0.03125, %v1880_v44 }
 0x5c4   :  { %v1878_v54 = vpop.xlane.xlu0 %1877  ;;  %v1926_v32 = vsub.f32 %v4595_v58, %v1862_v60 }
 0x5c5   :  { %2805 = vrsqrt.f32 %v1935_v45  ;;  %v1936_v28 = vadd.f32 1e-06, %v1920_v38  ;;  %v1893_v3 = vmul.f32 0.03125, %v1878_v54  ;;  %v1910_v47 = vsub.f32 %v1894_v61, %v1902_v59 }
 0x5c7   :  { %2807 = vrsqrt.f32 %v1936_v28  ;;  %v1909_v24 = vsub.f32 %v1893_v3, %v1901_v23  ;;  %v1918_v20 = vmax.f32 %v1910_v47, 0.0 }
 0x5c9   :  { %v1917_v35 = vmax.f32 %v1909_v24, 0.0  ;;  %v1934_v0 = vadd.f32 1e-06, %v1918_v20 }
 0x5cb   :  { %v1933_v29 = vadd.f32 1e-06, %v1917_v35  ;;  %2809 = vrsqrt.f32 %v1934_v0 }
 0x5cd   :  { %2811 = vrsqrt.f32 %v1933_v29 }
 0x5cf   :  { %v2806_v62 = vpop.eup %2805 }
 0x5d0   :  { %v1951_v19 = vmul.f32 %v2806_v62, %v1927_v17 }
 0x5d1   :  { %v2808_v2 = vpop.eup %2807 }
 0x5d2   :  { %v1963_v33 = vmul.f32 %v4656_v18, %v1951_v19  ;;  %v1952_v25 = vmul.f32 %v2808_v2, %v1928_v22 }
 0x5d4   :  { %v4666_v15 = vadd.f32 %v4662_v11, %v1963_v33  ;;  %v1964_v42 = vmul.f32 %v4656_v18, %v1952_v25  ;;  %v1860_v49 = vpop.xlane.xlu0 %1859 }
 0x5d5   :  { %v4671_v1 = vmul.f32 0.03125, %v1860_v49  ;;  %v2810_v40 = vpop.eup %2809 }
 0x5d6   :  { %v1976_v5 = vadd.f32 %v4662_v11, %v1964_v42  ;;  %v1892_v41 = vpop.xlane.xlu1 %1891  ;;  %v2140_v4 = vrot.slane %v4666_v15, 1  ;;  %v2185_v56 = vrot.slane %v4666_v15, 2  ;;  %v2230_v27 = vrot.slane %v4666_v15, 3 }
 0x5d7   :  { %v2812_v13 = vpop.eup %2811  ;;  %v1950_v43 = vmul.f32 %v2810_v40, %v1926_v32  ;;  %v1900_v37 = vmul.f32 0.03125, %v1892_v41  ;;  %v1908_v8 = vmul.f32 %v4671_v1, %v4671_v1  ;;  %v1932_v50 = vsub.f32 %v4605_v55, %v4671_v1 }
 0x5d8   :  { %v4688_v48 = vsel %vm59_vm0, %v1976_v5, 0.0  ;;  %v1949_v9 = vmul.f32 %v2812_v13, %v1925_v7  ;;  %v1854_v36 = vpop.xlane.xlu0 %1853  ;;  %v4692_v14 = vmul.f32 %v4676_v34, %v4666_v15  ;;  %v2005_v10 = vrot.slane %v4666_v15, 5 }
 0x5d9   :  { %v1962_v39 = vmul.f32 %v4656_v18, %v1950_v43  ;;  %v1916_v57 = vsub.f32 %v1900_v37, %v1908_v8  ;;  %v4696_v63 = vmul.f32 0.03125, %v1854_v36  ;;  %v4700_v52 = vmul.f32 %v4676_v34, %v4688_v48  ;;  %v4762_v37 = vld [vmem:[%s5197_s4 + $0x18] ss:$0 sm:$0xff] }
 0x5da   :  { %v1961_v6 = vmul.f32 %v4656_v18, %v1949_v9  ;;  %v1856_v51 = vpop.xlane.xlu1 %1855  ;;  %v5204_v60 = vrot.slane %v4688_v48, 5  ;;  %v2050_v44 = vrot.slane %v4666_v15, 6  ;;  %v5203_v45 = vrot.slane %v4688_v48, 6 }
 0x5db   :  { %v1974_v38 = vadd.f32 %v4662_v11, %v1962_v39  ;;  %v1924_v59 = vmax.f32 %v1916_v57, 0.0  ;;  %v4707_v61 = vmul.f32 0.03125, %v1856_v51  ;;  %v1905_v54 = vmul.f32 %v4696_v63, %v4696_v63  ;;  %v4775_v57 = vld [vmem:[%s5197_s4 + $0x19] ss:$0 sm:$0xff] }
 0x5dc   :  { %v4712_v23 = vadd.f32 %v4662_v11, %v1961_v6  ;;  %v1929_v28 = vsub.f32 %v4611_v53, %v4696_v63  ;;  %v1858_v3 = vpop.xlane.xlu0 %1857  ;;  %v2015_v47 = vsel %vm231_vm1, %v2005_v10, %v5204_v60  ;;  %v4728_v24 = vsel %vm281_vm3, %v2050_v44, %v5203_v45 }
 0x5dd   :  { %v4732_v20 = vsel %vm59_vm0, %v1974_v38, 0.0  ;;  %v1940_v35 = vadd.f32 1e-06, %v1924_v59  ;;  %v1906_v0 = vmul.f32 %v4707_v61, %v4707_v61  ;;  %v1930_v29 = vsub.f32 %v4614_v26, %v4707_v61 }
 0x5de   :  { %v1886_v17 = vpop.xlane.xlu1 %1885  ;;  %v4738_v62 = vmul.f32 0.03125, %v1858_v3  ;;  %v4742_v22 = vmul.f32 %v4676_v34, %v4712_v23  ;;  %v1996_v19 = vmul.f32 %v4676_v34, %v4732_v20  ;;  %v2003_v2 = vrot.slane %v4712_v23, 5 }
 0x5df   :  { %2813 = vrsqrt.f32 %v1940_v35  ;;  %v1897_v33 = vmul.f32 0.03125, %v1886_v17  ;;  %v2004_v25 = vrot.slane %v4732_v20, 5  ;;  %v2048_v42 = vrot.slane %v4712_v23, 6 }
 0x5e0   :  { %v1907_v49 = vmul.f32 %v4738_v62, %v4738_v62  ;;  %v1931_v7 = vsub.f32 %v4618_v31, %v4738_v62  ;;  %v1888_v32 = vpop.xlane.xlu0 %1887  ;;  %v2049_v40 = vrot.slane %v4732_v20, 6  ;;  %v2093_v5 = vrot.slane %v4712_v23, 7 }
 0x5e1   :  { %v1913_v41 = vsub.f32 %v1897_v33, %v1905_v54  ;;  %v1898_v13 = vmul.f32 0.03125, %v1888_v32  ;;  %v2017_v43 = vsel %vm231_vm1, %v2003_v2, %v2004_v25  ;;  %v2094_v8 = vrot.slane %v4732_v20, 7  ;;  %v4789_v33 = vld [vmem:[%s5197_s4 + $0x1a] ss:$0 sm:$0xff] }
 0x5e2   :  { %v1890_v9 = vpop.xlane.xlu1 %1889  ;;  %v2033_v36 = vmul.f32 %v4762_v37, %v2017_v43  ;;  %v2062_v39 = vsel %vm281_vm3, %v2048_v42, %v2049_v40  ;;  %v5205_v6 = vrot.slane %v4712_v23, 1  ;;  %v2139_v51 = vrot.slane %v4732_v20, 1 }
 0x5e3   :  { %v1921_v38 = vmax.f32 %v1913_v41, 0.0  ;;  %v1899_v59 = vmul.f32 0.03125, %v1890_v9  ;;  %v1914_v54 = vsub.f32 %v1898_v13, %v1906_v0  ;;  %v2078_v3 = vmul.f32 %v4775_v57, %v2062_v39  ;;  %v4803_v9 = vld [vmem:[%s5197_s4 + $0x1c] ss:$0 sm:$0xff] }
 0x5e4   :  { %v2041_v35 = vadd.f32 %v2033_v36, %v1996_v19  ;;  %v2107_v17 = vsel %vm331_vm5, %v2093_v5, %v2094_v8  ;;  %v2151_v0 = vsel %vm381_vm7, %v2139_v51, %v2140_v4  ;;  %v2152_v19 = vsel %vm381_vm7, %v5205_v6, %v2139_v51 }
 0x5e5   :  { %v1937_v32 = vadd.f32 1e-06, %v1921_v38  ;;  %v1915_v41 = vsub.f32 %v1899_v59, %v1907_v49  ;;  %v1922_v13 = vmax.f32 %v1914_v54, 0.0  ;;  %v2123_v43 = vmul.f32 %v4789_v33, %v2107_v17 }
 0x5e6   :  { %v2086_v36 = vadd.f32 %v2078_v3, %v2041_v35  ;;  %v2155_v39 = vsel %vm55_vm9, %v2151_v0, 0.0  ;;  %v4808_v45 = vmul.f32 %v4803_v9, %v2152_v19  ;;  %v2183_v60 = vrot.slane %v4712_v23, 2 }
 0x5e7   :  { %2815 = vrsqrt.f32 %v1937_v32  ;;  %v1923_v51 = vmax.f32 %v1915_v41, 0.0  ;;  %v1938_v49 = vadd.f32 1e-06, %v1922_v13  ;;  %v2168_v38 = vmul.f32 %v4803_v9, %v2155_v39 }
 0x5e8   :  { %v2131_v59 = vadd.f32 %v2123_v43, %v2086_v36  ;;  %v2184_v54 = vrot.slane %v4732_v20, 2  ;;  %v2228_v17 = vrot.slane %v4712_v23, 3  ;;  %v2229_v3 = vrot.slane %v4732_v20, 3 }
 0x5e9   :  { %v2814_v35 = vpop.eup %2813  ;;  %v1939_v6 = vadd.f32 1e-06, %v1923_v51  ;;  %2817 = vrsqrt.f32 %v1938_v49  ;;  %v2016_v0 = vsel %vm231_vm1, %v2004_v25, %v2005_v10  ;;  %v2035_v19 = vmul.f32 %v4762_v37, %v2015_v47  ;;  %v4834_v10 = vld [vmem:[%s5197_s4 + $0x1d] ss:$0 sm:$0xff]  ;;  %v4856_v51 = vld [vmem:[%s5197_s4 + $0x1e] ss:$0 sm:$0xff] }
 0x5ea   :  { %v1956_v32 = vmul.f32 %v2814_v35, %v1932_v50  ;;  %v2176_v41 = vadd.f32 %v2168_v38, %v2131_v59  ;;  %v2196_v13 = vsel %vm431_vm8, %v2184_v54, %v2185_v56  ;;  %v2197_v43 = vsel %vm431_vm8, %v2183_v60, %v2184_v54 }
 0x5eb   :  { %2819 = vrsqrt.f32 %v1939_v6  ;;  %v2200_v1 = vsel %vm57_vm10, %v2196_v13, 0.0  ;;  %v4839_v50 = vmul.f32 %v4834_v10, %v2197_v43  ;;  %v2241_v47 = vsel %vm481_vm11, %v2229_v3, %v2230_v27 }
 0x5ec   :  { %v1968_v25 = vmul.f32 %v4656_v18, %v1956_v32  ;;  %v2213_v36 = vmul.f32 %v4834_v10, %v2200_v1  ;;  %v2242_v6 = vsel %vm481_vm11, %v2228_v17, %v2229_v3  ;;  %v2245_v39 = vsel %vm59_vm0, %v2241_v47, 0.0 }
 0x5ed   :  { %v4859_v49 = vmul.f32 %v4856_v51, %v2242_v6  ;;  %v2258_v38 = vmul.f32 %v4856_v51, %v2245_v39  ;;  %v2021_v59 = vsel %vm48_vm2, %v2016_v0, 0.0  ;;  %v2043_v54 = vadd.f32 %v2035_v19, %v4700_v52 }
 0x5ee   :  { %v1980_v3 = vadd.f32 %v4662_v11, %v1968_v25  ;;  %v2221_v35 = vadd.f32 %v2213_v36, %v2176_v41  ;;  %v2034_v32 = vmul.f32 %v4762_v37, %v2021_v59  ;;  %v2061_v13 = vsel %vm281_vm3, %v2049_v40, %v2050_v44 }
 0x5ef   :  { %v2066_v43 = vsel %vm50_vm4, %v2061_v13, 0.0  ;;  %v2080_v0 = vmul.f32 %v4775_v57, %v4728_v24  ;;  %v2095_v52 = vrot.slane %v4666_v15, 7  ;;  %v2096_v19 = vrot.slane %v4688_v48, 7 }
 0x5f0   :  { %v4881_v41 = vsel %vm59_vm0, %v1980_v3, 0.0  ;;  %v4883_v1 = vadd.f32 %v2258_v38, %v2221_v35  ;;  %v2042_v47 = vadd.f32 %v2034_v32, %v4692_v14  ;;  %v2079_v44 = vmul.f32 %v4775_v57, %v2066_v43 }
 0x5f1   :  { %v2816_v40 = vpop.eup %2815  ;;  %v2010_v25 = vrot.slane %v4881_v41, 5  ;;  %v2055_v36 = vrot.slane %v4881_v41, 6  ;;  %v2100_v24 = vrot.slane %v4881_v41, 7  ;;  %v2088_v6 = vadd.f32 %v2080_v0, %v2043_v54 }
 0x5f2   :  { %v1953_v39 = vmul.f32 %v2816_v40, %v1929_v28  ;;  %v2087_v59 = vadd.f32 %v2079_v44, %v2042_v47  ;;  %v2105_v14 = vsel %vm331_vm5, %v2095_v52, %v2096_v19  ;;  %v2106_v38 = vsel %vm331_vm5, %v2094_v8, %v2095_v52 }
 0x5f3   :  { %v2818_v3 = vpop.eup %2817  ;;  %v2018_v63 = vsel %vm231_vm1, %v2010_v25, %v2003_v2  ;;  %v2063_v28 = vsel %vm281_vm3, %v2055_v36, %v2048_v42  ;;  %v2108_v20 = vsel %vm331_vm5, %v2100_v24, %v2093_v5  ;;  %v2111_v8 = vsel %vm52_vm6, %v2106_v38, 0.0 }
 0x5f4   :  { %v1965_v54 = vmul.f32 %v4656_v18, %v1953_v39  ;;  %v1954_v2 = vmul.f32 %v2818_v3, %v1930_v29  ;;  %v2019_v35 = vsel %vm48_vm2, %v2018_v63, 0.0  ;;  %v2064_v42 = vsel %vm50_vm4, %v2063_v28, 0.0 }
 0x5f5   :  { %v2820_v32 = vpop.eup %2819  ;;  %v2032_v13 = vmul.f32 %v4762_v37, %v2019_v35  ;;  %v2077_v5 = vmul.f32 %v4775_v57, %v2064_v42  ;;  %v2109_v43 = vsel %vm52_vm6, %v2108_v20, 0.0  ;;  %v2124_v0 = vmul.f32 %v4789_v33, %v2111_v8 }
 0x5f6   :  { %v4935_v52 = vadd.f32 %v4662_v11, %v1965_v54  ;;  %v1955_v61 = vmul.f32 %v2820_v32, %v1931_v7  ;;  %v1966_v29 = vmul.f32 %v4656_v18, %v1954_v2  ;;  %v2122_v47 = vmul.f32 %v4789_v33, %v2109_v43 }
 0x5f7   :  { %v2040_v44 = vadd.f32 %v2032_v13, %v4742_v22  ;;  %v2125_v40 = vmul.f32 %v4789_v33, %v2105_v14  ;;  %v2132_v39 = vadd.f32 %v2124_v0, %v2087_v59  ;;  %v2141_v38 = vrot.slane %v4688_v48, 1 }
 0x5f8   :  { %v1967_v3 = vmul.f32 %v4656_v18, %v1955_v61  ;;  %v1978_v63 = vadd.f32 %v4662_v11, %v1966_v29  ;;  %v2142_v28 = vrot.slane %v4935_v52, 1  ;;  %v2186_v62 = vrot.slane %v4688_v48, 2 }
 0x5f9   :  { %v2085_v7 = vadd.f32 %v2077_v5, %v2040_v44  ;;  %v2133_v20 = vadd.f32 %v2125_v40, %v2088_v6  ;;  %v2150_v22 = vsel %vm381_vm7, %v2140_v4, %v2141_v38  ;;  %v2187_v14 = vrot.slane %v4935_v52, 2 }
 0x5fa   :  { %v4955_v59 = vadd.f32 %v4662_v11, %v1967_v3  ;;  %v4959_v18 = vsel %vm59_vm0, %v1978_v63, 0.0  ;;  %v2149_v8 = vsel %vm381_vm7, %v2141_v38, %v2142_v28  ;;  %v2169_v6 = vmul.f32 %v4803_v9, %v2150_v22 }
 0x5fb   :  { %v2130_v54 = vadd.f32 %v2122_v47, %v2085_v7  ;;  %v2157_v4 = vsel %vm55_vm9, %v2149_v8, 0.0  ;;  %v2194_v11 = vsel %vm431_vm8, %v2186_v62, %v2187_v14  ;;  %v2195_v2 = vsel %vm431_vm8, %v2185_v56, %v2186_v62 }
 0x5fc   :  { %v2170_v35 = vmul.f32 %v4803_v9, %v2157_v4  ;;  %v2177_v42 = vadd.f32 %v2169_v6, %v2132_v39  ;;  %v2202_v32 = vsel %vm57_vm10, %v2194_v11, 0.0  ;;  %v2214_v13 = vmul.f32 %v4834_v10, %v2195_v2 }
 0x5fd   :  { %v2175_v5 = vadd.f32 %v4808_v45, %v2130_v54  ;;  %v2215_v43 = vmul.f32 %v4834_v10, %v2202_v32  ;;  %v2231_v0 = vrot.slane %v4688_v48, 3  ;;  %v2232_v61 = vrot.slane %v4935_v52, 3 }
 0x5fe   :  { %v2178_v29 = vadd.f32 %v2170_v35, %v2133_v20  ;;  %v2222_v47 = vadd.f32 %v2214_v13, %v2177_v42  ;;  %v1999_v56 = vmul.f32 %v4676_v34, %v4935_v52  ;;  %v2000_v44 = vmul.f32 %v4676_v34, %v4959_v18 }
 0x5ff   :  { %v2220_v40 = vadd.f32 %v4839_v50, %v2175_v5  ;;  %v2239_v45 = vsel %vm481_vm11, %v2231_v0, %v2232_v61  ;;  %v2240_v39 = vsel %vm481_vm11, %v2230_v27, %v2231_v0  ;;  %v2007_v38 = vrot.slane %v4935_v52, 5 }
 0x600   :  { %v2223_v3 = vadd.f32 %v2215_v43, %v2178_v29  ;;  %v2247_v63 = vsel %vm59_vm0, %v2239_v45, 0.0  ;;  %v2259_v62 = vmul.f32 %v4856_v51, %v2240_v39  ;;  %v2008_v50 = vrot.slane %v4959_v18, 5 }
 0x601   :  { %v2265_v7 = vadd.f32 %v4859_v49, %v2220_v40  ;;  %v2260_v20 = vmul.f32 %v4856_v51, %v2247_v63  ;;  %v5209_v22 = vrot.slane %v4688_v48, 5  ;;  %v2052_v27 = vrot.slane %v4935_v52, 6 }
 0x602   :  { %v2267_v8 = vadd.f32 %v2259_v62, %v2222_v47  ;;  %v2013_v6 = vsel %vm231_vm1, %v2007_v38, %v2008_v50  ;;  %v2053_v49 = vrot.slane %v4959_v18, 6  ;;  %v5210_v32 = vrot.slane %v4688_v48, 6 }
 0x603   :  { %v2014_v15 = vsel %vm231_vm1, %v5209_v22, %v2007_v38  ;;  %v2273_v4 = vpack.c.bf16 %v4883_v1, %v2265_v7  ;;  %v2268_v11 = vadd.f32 %v2260_v20, %v2223_v3  ;;  %v2037_v35 = vmul.f32 %v4762_v37, %v2013_v6 }
 0x604   :  { %v2023_v54 = vsel %vm48_vm2, %v2014_v15, 0.0  ;;  %v2058_v42 = vsel %vm281_vm3, %v2052_v27, %v2053_v49  ;;  %v2059_v13 = vsel %vm281_vm3, %v5210_v32, %v2052_v27  ;;  %v2097_v5 = vrot.slane %v4935_v52, 7 }
 0x605   :  { %v2036_v2 = vmul.f32 %v4762_v37, %v2023_v54  ;;  %v2098_v43 = vrot.slane %v4959_v18, 7  ;;  %2717 = vmatprep.mubr.bf16.mxu1 %v2273_v4  ;;  %v2274_v1 = vpack.c.bf16 %v2268_v11, %v2267_v8  ;;  %v2045_v29 = vadd.f32 %v2037_v35, %v2000_v44 }
 0x606   :  { %v2068_v47 = vsel %vm50_vm4, %v2059_v13, 0.0  ;;  %v2082_v45 = vmul.f32 %v4775_v57, %v2058_v42  ;;  %v2104_v38 = vsel %vm331_vm5, %v2096_v19, %v2097_v5  ;;  %v2143_v3 = vrot.slane %v4959_v18, 1 }
 0x607   :  { %v2044_v0 = vadd.f32 %v2036_v2, %v1999_v56  ;;  %v2081_v40 = vmul.f32 %v4775_v57, %v2068_v47  ;;  %v2103_v39 = vsel %vm331_vm5, %v2097_v5, %v2098_v43  ;;  %2718 = vmatmul.mubr.bf16.vlgmr.msra.gmra.mrb[8].mxu1 %v2274_v1  ;;  %v2113_v56 = vsel %vm52_vm6, %v2104_v38, 0.0 }
 0x608   :  { %v2127_v44 = vmul.f32 %v4789_v33, %v2103_v39  ;;  %v2144_v63 = vrot.slane %v4955_v59, 1  ;;  %v2090_v7 = vadd.f32 %v2082_v45, %v2045_v29  ;;  %v2126_v20 = vmul.f32 %v4789_v33, %v2113_v56 }
 0x609   :  { %v2089_v62 = vadd.f32 %v2081_v40, %v2044_v0  ;;  %v2188_v22 = vrot.slane %v4959_v18, 2  ;;  %v2148_v19 = vsel %vm381_vm7, %v2142_v28, %v2143_v3  ;;  %v2189_v15 = vrot.slane %v4955_v59, 2 }
 0x60a   :  { %v2147_v48 = vsel %vm381_vm7, %v2143_v3, %v2144_v63  ;;  %v2233_v27 = vrot.slane %v4959_v18, 3  ;;  %v2135_v6 = vadd.f32 %v2127_v44, %v2090_v7  ;;  %v2171_v4 = vmul.f32 %v4803_v9, %v2148_v19 }
 0x60b   :  { %v2134_v8 = vadd.f32 %v2126_v20, %v2089_v62  ;;  %v2159_v54 = vsel %vm55_vm9, %v2147_v48, 0.0  ;;  %v2192_v2 = vsel %vm431_vm8, %v2188_v22, %v2189_v15  ;;  %v2193_v28 = vsel %vm431_vm8, %v2187_v14, %v2188_v22 }
 0x60c   :  { %v2172_v11 = vmul.f32 %v4803_v9, %v2159_v54  ;;  %v2234_v35 = vrot.slane %v4955_v59, 3  ;;  %v2204_v32 = vsel %vm57_vm10, %v2192_v2, 0.0  ;;  %v2216_v13 = vmul.f32 %v4834_v10, %v2193_v28 }
 0x60d   :  { %v2179_v42 = vadd.f32 %v2171_v4, %v2134_v8  ;;  %v2238_v5 = vsel %vm481_vm11, %v2232_v61, %v2233_v27  ;;  %v2217_v0 = vmul.f32 %v4834_v10, %v2204_v32  ;;  %v2001_v45 = vmul.f32 %v4676_v34, %v4955_v59 }
 0x60e   :  { %v2180_v1 = vadd.f32 %v2172_v11, %v2135_v6  ;;  %v2237_v29 = vsel %vm481_vm11, %v2233_v27, %v2234_v35  ;;  %v2261_v40 = vmul.f32 %v4856_v51, %v2238_v5  ;;  %v2009_v61 = vrot.slane %v4955_v59, 5 }
 0x60f   :  { %v2224_v14 = vadd.f32 %v2216_v13, %v2179_v42  ;;  %v2249_v47 = vsel %vm59_vm0, %v2237_v29, 0.0  ;;  %v2054_v38 = vrot.slane %v4955_v59, 6  ;;  %v2002_v44 = vmul.f32 %v4676_v34, %v4881_v41 }
 0x610   :  { %v2225_v39 = vadd.f32 %v2217_v0, %v2180_v1  ;;  %v2262_v52 = vmul.f32 %v4856_v51, %v2249_v47  ;;  %v2099_v3 = vrot.slane %v4955_v59, 7  ;;  %v2145_v62 = vrot.slane %v4881_v41, 1 }
 0x611   :  { %v2269_v56 = vadd.f32 %v2261_v40, %v2224_v14  ;;  %v2011_v20 = vsel %vm231_vm1, %v2009_v61, %v2010_v25  ;;  %v2012_v22 = vsel %vm231_vm1, %v2008_v50, %v2009_v61  ;;  %v2056_v34 = vsel %vm281_vm3, %v2054_v38, %v2055_v36 }
 0x612   :  { %v2270_v7 = vadd.f32 %v2262_v52, %v2225_v39  ;;  %v2025_v59 = vsel %vm48_vm2, %v2012_v22, 0.0  ;;  %v2039_v48 = vmul.f32 %v4762_v37, %v2011_v20  ;;  %v2057_v25 = vsel %vm281_vm3, %v2053_v49, %v2054_v38 }
 0x613   :  { %v2190_v19 = vrot.slane %v4881_v41, 2  ;;  %v2038_v50 = vmul.f32 %v4762_v37, %v2025_v59  ;;  %v2070_v8 = vsel %vm50_vm4, %v2057_v25, 0.0  ;;  %v2101_v36 = vsel %vm331_vm5, %v2099_v3, %v2100_v24 }
 0x614   :  { %v2275_v27 = vpack.c.bf16 %v2270_v7, %v2269_v56  ;;  %v2047_v6 = vadd.f32 %v2039_v48, %v2002_v44  ;;  %v2084_v54 = vmul.f32 %v4775_v57, %v2056_v34  ;;  %v2102_v49 = vsel %vm331_vm5, %v2098_v43, %v2099_v3 }
 0x615   :  { %v2046_v4 = vadd.f32 %v2038_v50, %v2001_v45  ;;  %v2083_v37 = vmul.f32 %v4775_v57, %v2070_v8  ;;  %v2115_v11 = vsel %vm52_vm6, %v2102_v49, 0.0  ;;  %v5211_v2 = vrot.slane %v4712_v23, 1 }
 0x616   :  { %2721 = vmatprep.mubr.bf16.mxu1 %v2275_v27  ;;  %v2092_v28 = vadd.f32 %v2084_v54, %v2047_v6  ;;  %v2129_v42 = vmul.f32 %v4789_v33, %v2101_v36  ;;  %v2146_v18 = vsel %vm381_vm7, %v2144_v63, %v2145_v62  ;;  %v2128_v57 = vmul.f32 %v4789_v33, %v2115_v11 }
 0x617   :  { %v2153_v24 = vsel %vm381_vm7, %v2145_v62, %v5211_v2  ;;  %v2091_v32 = vadd.f32 %v2083_v37, %v2046_v4  ;;  %v2198_v5 = vsel %vm431_vm8, %v2190_v19, %v2183_v60  ;;  %v2191_v0 = vsel %vm431_vm8, %v2189_v15, %v2190_v19 }
 0x618   :  { %v2161_v43 = vsel %vm55_vm9, %v2153_v24, 0.0  ;;  %v2137_v1 = vadd.f32 %v2129_v42, %v2092_v28  ;;  %v2206_v63 = vsel %vm57_vm10, %v2198_v5, 0.0  ;;  %v2235_v29 = vrot.slane %v4881_v41, 3 }
 0x619   :  { %v2174_v13 = vmul.f32 %v4803_v9, %v2161_v43  ;;  %v2136_v14 = vadd.f32 %v2128_v57, %v2091_v32  ;;  %v2173_v47 = vmul.f32 %v4803_v9, %v2146_v18  ;;  %v2219_v40 = vmul.f32 %v4834_v10, %v2206_v63 }
 0x61a   :  { %v2236_v45 = vsel %vm481_vm11, %v2234_v35, %v2235_v29  ;;  %v2243_v60 = vsel %vm481_vm11, %v2235_v29, %v2228_v17  ;;  %v2218_v39 = vmul.f32 %v4834_v10, %v2191_v0 }
 0x61b   :  { %v2182_v33 = vadd.f32 %v2174_v13, %v2137_v1  ;;  %v2181_v15 = vadd.f32 %v2173_v47, %v2136_v14  ;;  %v2251_v41 = vsel %vm59_vm0, %v2243_v60, 0.0  ;;  %v2263_v9 = vmul.f32 %v4856_v51, %v2236_v45 }
 0x61c   :  { %v2264_v38 = vmul.f32 %v4856_v51, %v2251_v41 }
 0x61d   :  { %v2227_v52 = vadd.f32 %v2219_v40, %v2182_v33  ;;  %v2226_v61 = vadd.f32 %v2218_v39, %v2181_v15 }
 0x61f   :  { %v2271_v56 = vadd.f32 %v2263_v9, %v2226_v61  ;;  %v2272_v44 = vadd.f32 %v2264_v38, %v2227_v52 }
 0x621   :  { %v2276_v35 = vpack.c.bf16 %v2272_v44, %v2271_v56 }
 0x623   :  { %2722 = vmatmul.mubr.bf16.gmra.mrb[12].mxu1 %v2276_v35 }
 0x6da   :  { %v2719_v23 = vpop.f32.mrb[8].mxu1 }
 0x6db   :  { %v2390_v17 = vadd.f32 %v2719_v23, %v2572_v16  ;;  %v2381_v10 = vpop.f32.mrb[9].mxu1 }
 0x6dc   :  { %v2382_v3 = vadd.f32 %v2572_v16, %v2381_v10  ;;  %v2720_v30 = vpop.f32.mrb[10].mxu1 }
 0x6dd   :  { %v2414_v62 = vmax.f32 %v2390_v17, 0.0  ;;  %v2393_v7 = vadd.f32 %v2720_v30, %v2572_v16  ;;  %v2384_v20 = vpop.f32.mrb[11].mxu1 }
 0x6de   :  { %v2412_v22 = vmax.f32 %v2382_v3, 0.0  ;;  %v2385_v34 = vadd.f32 %v2572_v16, %v2384_v20 }
 0x6df   :  { %v2422_v51 = vadd.f32 %v2414_v62, %v4581_v46  ;;  %v2415_v59 = vmax.f32 %v2393_v7, 0.0 }
 0x6e0   :  { %v2420_v48 = vadd.f32 %v2412_v22, %v4588_v21  ;;  %v2413_v25 = vmax.f32 %v2385_v34, 0.0 }
 0x6e1   :  { %2430 = vst [vmem:[%s5199_s7 + $0x10] sm:$0xff] %v2422_v51  ;;  %v2423_v19 = vadd.f32 %v2415_v59, %v4584_v12 }
 0x6e2   :  { %2428 = vst [vmem:[%s5199_s7] sm:$0xff] %v2420_v48  ;;  %v2421_v27 = vadd.f32 %v2413_v25, %v4595_v58 }
 0x6e3   :  { %2431 = vst [vmem:[%s5199_s7 + $0x18] sm:$0xff] %v2423_v19 }
 0x6e4   :  { %2429 = vst [vmem:[%s5199_s7 + $0x8] sm:$0xff] %v2421_v27 }
 0x6f6   :  { %v2723_v46 = vpop.f32.mrb[12].mxu1 }
 0x6f7   :  { %v2406_v21 = vadd.f32 %v2723_v46, %v2572_v16  ;;  %v2397_v50 = vpop.f32.mrb[13].mxu1 }
 0x6f8   :  { %v2398_v8 = vadd.f32 %v2572_v16, %v2397_v50  ;;  %v2724_v36 = vpop.f32.mrb[14].mxu1 }
 0x6f9   :  { %v2418_v12 = vmax.f32 %v2406_v21, 0.0  ;;  %v2409_v6 = vadd.f32 %v2724_v36, %v2572_v16  ;;  %v2400_v54 = vpop.f32.mrb[15].mxu1 }
 0x6fa   :  { %v2416_v49 = vmax.f32 %v2398_v8, 0.0  ;;  %v2401_v4 = vadd.f32 %v2572_v16, %v2400_v54 }
 0x6fb   :  { %v2426_v58 = vadd.f32 %v2418_v12, %v4618_v31  ;;  %v2419_v37 = vmax.f32 %v2409_v6, 0.0 }
 0x6fc   :  { %v2424_v11 = vadd.f32 %v2416_v49, %v4611_v53  ;;  %v2417_v2 = vmax.f32 %v2401_v4, 0.0 }
 0x6fd   :  { %2434 = vst [vmem:[%s5199_s7 + $0x30] sm:$0xff] %v2426_v58  ;;  %v2427_v24 = vadd.f32 %v2419_v37, %v4605_v55 }
 0x6fe   :  { %2432 = vst [vmem:[%s5199_s7 + $0x20] sm:$0xff] %v2424_v11  ;;  %v2425_v28 = vadd.f32 %v2417_v2, %v4614_v26 }
 0x6ff   :  { %2435 = vst [vmem:[%s5199_s7 + $0x38] sm:$0xff] %v2427_v24 }
 0x700   :  { %2433 = vst [vmem:[%s5199_s7 + $0x28] sm:$0xff] %v2425_v28 }

</bundles_post_ra>
